<compile_context>
chip_gen: v5e
topology: v5e:2x2
jax: 0.10.0
libtpu: 0.0.40
codegen_flags: <defaults>
</compile_context>

<pallas_src>
import jax
import jax.numpy as jnp
from jax.experimental import pallas as pl
from jax.experimental.pallas import tpu as pltpu


def make_ssah(B, C, H, W, Cout, num_iteration=8, lr=0.001,
              m=0.2, alpha=1.0, beta=0.1):
    S = H * W                      # spatial size per plane
    BS = B * S                     # lane axis of the channels-major slab
    f32 = jnp.float32

    assert C == 3, "cifar10 normalize_fn is per-RGB-channel"
    assert H % 2 == 0 and W % 2 == 0, "haar LL needs even H, W"

    # ----- synthetic encoder parameters -------------------------------------
    # TODO(synk): the real SSAH wraps an arbitrary pretrained backbone
    # (model minus last layer + adaptive avg pool); replaced here by a
    # deterministic synthetic 1x1-conv + ReLU + global-average-pool encoder.
    kw, kb = jax.random.split(jax.random.PRNGKey(42))
    W1 = (0.2 * jax.random.normal(kw, (Cout, C))).astype(f32)
    b1 = (0.05 * jax.random.normal(kb, (Cout, 1))).astype(f32)

    # cifar10 normalize_fn folded into the conv:
    #   W1 @ ((x-MEAN)/STD) + b1 == (W1/STD) @ x + (b1 - W1 @ (MEAN/STD))
    mean = jnp.array([0.4914, 0.4822, 0.4465], f32)
    std = jnp.array([0.2471, 0.2435, 0.2616], f32)
    W1_eff = (W1 / std[None, :]).astype(f32)                         # (Cout, C)
    b1_eff = (b1 - jnp.sum(W1 * (mean / std)[None, :], axis=1,
                           keepdims=True)).astype(f32)               # (Cout, 1)

    # global-average-pool as one matmul: pool_t[b, b*S+s] = 1/S       (B, BS)
    col_owner = jnp.arange(BS) // S
    pool_t = ((jnp.arange(B)[:, None] == col_owner[None, :])
              .astype(f32) / float(S))

    # haar LL projection (DWT_2D_tiny -> IDWT_2D_tiny == 2x2 block average)
    # acting on the (C, B*S) slab: symmetric block-diagonal (BS, BS), entries
    # 0.25 for pixels in the same batch element and same 2x2 block.
    col = jnp.arange(BS)
    b_of = col // S
    h_of = (col % S) // W
    w_of = col % W
    same = ((b_of[:, None] == b_of[None, :])
            & ((h_of // 2)[:, None] == (h_of // 2)[None, :])
            & ((w_of // 2)[:, None] == (w_of // 2)[None, :]))
    LLP = jnp.where(same, 0.25, 0.0).astype(f32)                     # (BS, BS)

    # torch.optim.Adam defaults; per-step bias corrections precomputed and
    # read from SMEM inside the kernel (no in-kernel pow).
    beta1, beta2, adam_eps = 0.9, 0.999, 1e-8
    ts = jnp.arange(1, num_iteration + 1, dtype=f32)
    corr = jnp.stack([1.0 / (1.0 - beta1 ** ts),
                      1.0 / (1.0 - beta2 ** ts)], axis=1)            # (iters, 2)

    eps_att = 3e-7
    VMEM = pltpu.MemorySpace.VMEM
    SMEM = pltpu.MemorySpace.SMEM

    # ======================= fused attack kernel ============================
    def ssah_kernel(corr_ref, x_ref, w_ref, bias_ref, pt_ref, llp_ref,
                    out_ref,
                    mod_ref, m1_ref, v1_ref, ifn_ref, ill_ref, hot_ref):
        step = pl.program_id(0)

        # ---- step 0: prep (input features / input LL) + state init --------
        @pl.when(step == 0)
        def _init():
            x = x_ref[...]
            z0 = jnp.dot(w_ref[...], x, preferred_element_type=f32) + bias_ref[...]
            z0 = jnp.maximum(z0, 0.0)
            f0 = jax.lax.dot_general(pt_ref[...], z0, (((1,), (1,)), ((), ())),
                                     preferred_element_type=f32)     # (B, Cout)
            n0 = jnp.sqrt(jnp.sum(f0 * f0, axis=1, keepdims=True))
            ifn_ref[...] = f0 / jnp.maximum(n0, 1e-12)               # F.normalize
            ill_ref[...] = jnp.dot(x, llp_ref[...], preferred_element_type=f32)
            # modifier = arctanh(x*(2-2eps) - 1 + eps)   (log-form, EUP)
            y = x * (2.0 - 2.0 * eps_att) - 1.0 + eps_att
            mod_ref[...] = 0.5 * jnp.log((1.0 + y) / (1.0 - y))
            m1_ref[...] = jnp.zeros_like(m1_ref)
            v1_ref[...] = jnp.zeros_like(v1_ref)

        # ---- forward --------------------------------------------------------
        mod = mod_ref[...]
        th = jnp.tanh(mod)
        adv = 0.5 * (th + 1.0)                                       # (C, BS)

        z = jnp.dot(w_ref[...], adv, preferred_element_type=f32) + bias_ref[...]
        relu_mask = z > 0.0
        zr = jnp.maximum(z, 0.0)
        feat = jax.lax.dot_general(pt_ref[...], zr, (((1,), (1,)), ((), ())),
                                   preferred_element_type=f32)       # (B, Cout)
        rn = jnp.maximum(jnp.sqrt(jnp.sum(feat * feat, axis=1, keepdims=True)),
                         1e-12)
        a = feat / rn
        ifn = ifn_ref[...]
        sim = jax.lax.dot_general(a, ifn, (((1,), (1,)), ((), ())),
                                  preferred_element_type=f32)        # (B, B)

        rows = jax.lax.broadcasted_iota(jnp.int32, (B, B), 0)
        cols = jax.lax.broadcasted_iota(jnp.int32, (B, B), 1)
        eye = (rows == cols).astype(f32)
        pos = jnp.sum(sim * eye, axis=1, keepdims=True)              # (B, 1)

        # hardest negative picked once at step 0 (torch: sort desc, take last
        # column == row-wise argmin over the FULL row, diagonal included, as
        # in the reference module).  Stored as a one-hot so later steps need
        # no gather.
        @pl.when(step == 0)
        def _pick_hardest():
            colsf = cols.astype(f32)
            rmin = jnp.min(sim, axis=1, keepdims=True)
            cand = jnp.where(sim == rmin, colsf, float(B))
            midx = jnp.min(cand, axis=1, keepdims=True)
            hot_ref[...] = (colsf == midx).astype(f32)

        hot = hot_ref[...]
        neg = jnp.sum(sim * hot, axis=1, keepdims=True)              # (B, 1)
        w_p = jnp.maximum(pos - m, 0.0)                              # detached
        w_n = jnp.maximum(1.0 + m - neg, 0.0)                        # detached
        act = ((w_p * pos - w_n * neg) > 0.0).astype(f32)            # clamp gate

        # ---- manual backward -------------------------------------------------
        # adv_cost = alpha * sum(max(w_p*pos - w_n*neg, 0))
        hot_ifn = jnp.dot(hot, ifn, preferred_element_type=f32)      # (B, Cout)
        g_a = alpha * act * (w_p * ifn - w_n * hot_ifn)              # d/d a
        g_feat = (g_a - a * jnp.sum(g_a * a, axis=1, keepdims=True)) / rn
        g_zr = jax.lax.dot_general(g_feat, pt_ref[...], (((0,), (0,)), ((), ())),
                                   preferred_element_type=f32)       # (Cout, BS)
        g_z = jnp.where(relu_mask, g_zr, 0.0)
        g_adv_fea = jax.lax.dot_general(w_ref[...], g_z, (((0,), (0,)), ((), ())),
                                        preferred_element_type=f32)  # (C, BS)

        # lowFre_cost = beta * SmoothL1(adv_ll, inputs_ll, sum); LL self-adjoint
        ll = jnp.dot(adv, llp_ref[...], preferred_element_type=f32)
        dclip = jnp.clip(ll - ill_ref[...], -1.0, 1.0)
        g_adv_lf = jnp.dot(dclip, llp_ref[...], preferred_element_type=f32)

        g_adv = g_adv_fea + beta * g_adv_lf
        g_mod = g_adv * 0.5 * (1.0 - th * th)                        # d adv/d mod

        # ---- Adam update (torch defaults, bias-corrected) --------------------
        m1 = beta1 * m1_ref[...] + (1.0 - beta1) * g_mod
        v1 = beta2 * v1_ref[...] + (1.0 - beta2) * g_mod * g_mod
        c1 = corr_ref[step, 0]
        c2 = corr_ref[step, 1]
        new_mod = mod - lr * (m1 * c1) / (jnp.sqrt(v1 * c2) + adam_eps)
        m1_ref[...] = m1
        v1_ref[...] = v1
        mod_ref[...] = new_mod

        @pl.when(step == pl.num_programs(0) - 1)
        def _finalize():
            out_ref[...] = 0.5 * (jnp.tanh(new_mod) + 1.0)

    grid_spec = pltpu.PrefetchScalarGridSpec(
        num_scalar_prefetch=0,
        grid=(num_iteration,),
        in_specs=[
            pl.BlockSpec(memory_space=SMEM),                   # Adam bias corr
            pl.BlockSpec((C, BS), lambda i: (0, 0)),           # input slab
            pl.BlockSpec((Cout, C), lambda i: (0, 0)),         # folded conv W
            pl.BlockSpec((Cout, 1), lambda i: (0, 0)),         # folded conv b
            pl.BlockSpec((B, BS), lambda i: (0, 0)),           # pooling matrix
            pl.BlockSpec((BS, BS), lambda i: (0, 0)),          # haar LL matrix
        ],
        out_specs=pl.BlockSpec((C, BS), lambda i: (0, 0)),
        scratch_shapes=[
            pltpu.VMEM((C, BS), f32),       # modifier
            pltpu.VMEM((C, BS), f32),       # Adam m
            pltpu.VMEM((C, BS), f32),       # Adam v
            pltpu.VMEM((B, Cout), f32),     # normalized input features
            pltpu.VMEM((C, BS), f32),       # inputs LL
            pltpu.VMEM((B, B), f32),        # hardest-negative one-hot
        ],
    )

    attack_kernel = pl.pallas_call(
        ssah_kernel,
        grid_spec=grid_spec,
        out_shape=jax.ShapeDtypeStruct((C, BS), f32),
        compiler_params=pltpu.CompilerParams(
            dimension_semantics=("arbitrary",)),
    )

    def attack(inputs):                      # inputs in [0,1], NCHW (B,C,H,W)
        # one-time layout transform to the channels-major lane-dense slab
        x_slab = jnp.transpose(inputs, (1, 0, 2, 3)).reshape(C, BS)
        adv_slab = attack_kernel(corr, x_slab, W1_eff, b1_eff, pool_t, LLP)
        return jnp.transpose(adv_slab.reshape(C, B, H, W), (1, 0, 2, 3))

    return jax.jit(attack)


if __name__ == "__main__":
    B, C, H, W_img, Cout = 2, 3, 16, 16, 32
    # num_iteration kept small for the demo (PyTorch default is 150)
    attack = make_ssah(B, C, H, W_img, Cout, num_iteration=8)

    key = jax.random.PRNGKey(0)
    x = jax.random.uniform(key, (B, C, H, W_img), dtype=jnp.float32)

    adv = attack(x)
    adv = jax.block_until_ready(adv)

    assert adv.shape == (B, C, H, W_img)
    assert adv.dtype == jnp.float32
    assert bool(jnp.all(jnp.isfinite(adv)))
    print("KERNEL_OK")
</pallas_src>

<mosaic_0001>
module attributes {stable_mosaic.version = 11 : i64} {
  func.func @ssah_kernel(%arg0: i32, %arg1: memref<8x2xf32, #tpu.memory_space<smem>>, %arg2: memref<3x512xf32, #tpu.memory_space<vmem>>, %arg3: memref<32x3xf32, #tpu.memory_space<vmem>>, %arg4: memref<32x1xf32, #tpu.memory_space<vmem>>, %arg5: memref<2x512xf32, #tpu.memory_space<vmem>>, %arg6: memref<512x512xf32, #tpu.memory_space<vmem>>, %arg7: memref<3x512xf32, #tpu.memory_space<vmem>>, %arg8: memref<3x512xf32, #tpu.memory_space<vmem>>, %arg9: memref<3x512xf32, #tpu.memory_space<vmem>>, %arg10: memref<3x512xf32, #tpu.memory_space<vmem>>, %arg11: memref<2x32xf32, #tpu.memory_space<vmem>>, %arg12: memref<3x512xf32, #tpu.memory_space<vmem>>, %arg13: memref<2x2xf32, #tpu.memory_space<vmem>>) attributes {dimension_semantics = [#tpu.dimension_semantics<arbitrary>], iteration_bounds = array<i64: 8>, scalar_prefetch = 0 : i64, scratch_operands = 6 : i64, tpu.core_type = #tpu.core_type<tc>, window_params = [{transform_indices = @transform_0, window_bounds = array<i64: 8, 2>}, {pipeline_mode = #tpu.pipeline_mode<synchronous>, transform_indices = @transform_1, window_bounds = array<i64: 3, 512>}, {pipeline_mode = #tpu.pipeline_mode<synchronous>, transform_indices = @transform_2, window_bounds = array<i64: 32, 3>}, {pipeline_mode = #tpu.pipeline_mode<synchronous>, transform_indices = @transform_3, window_bounds = array<i64: 32, 1>}, {pipeline_mode = #tpu.pipeline_mode<synchronous>, transform_indices = @transform_4, window_bounds = array<i64: 2, 512>}, {pipeline_mode = #tpu.pipeline_mode<synchronous>, transform_indices = @transform_5, window_bounds = array<i64: 512, 512>}, {pipeline_mode = #tpu.pipeline_mode<synchronous>, transform_indices = @transform_6, window_bounds = array<i64: 3, 512>}]} {
    %c0_i32 = arith.constant 0 : i32
    %0 = arith.cmpi eq, %arg0, %c0_i32 : i32
    %1 = arith.extui %0 : i1 to i32
    %c0_i32_0 = arith.constant 0 : i32
    %2 = arith.cmpi ne, %1, %c0_i32_0 : i32
    scf.if %2 {
      %c0_70 = arith.constant 0 : index
      %c0_71 = arith.constant 0 : index
      %137 = vector.load %arg2[%c0_70, %c0_71] : memref<3x512xf32, #tpu.memory_space<vmem>>, vector<3x512xf32>
      %c0_72 = arith.constant 0 : index
      %c0_73 = arith.constant 0 : index
      %138 = vector.load %arg3[%c0_72, %c0_73] : memref<32x3xf32, #tpu.memory_space<vmem>>, vector<32x3xf32>
      %cst_74 = arith.constant dense<0.000000e+00> : vector<32x512xf32>
      %139 = tpu.matmul %138, %137, %cst_74 {dimension_numbers = #tpu.dot_dimension_numbers<[1], [0], [0], [1], [0, 0, 1, 1], [], []>} : vector<32x3xf32>, vector<3x512xf32>, vector<32x512xf32> -> vector<32x512xf32>
      %c0_75 = arith.constant 0 : index
      %c0_76 = arith.constant 0 : index
      %140 = vector.load %arg4[%c0_75, %c0_76] : memref<32x1xf32, #tpu.memory_space<vmem>>, vector<32x1xf32>
      %141 = vector.broadcast %140 : vector<32x1xf32> to vector<32x512xf32>
      %142 = arith.addf %139, %141 : vector<32x512xf32>
      %cst_77 = arith.constant 0.000000e+00 : f32
      %143 = vector.broadcast %cst_77 : f32 to vector<32x512xf32>
      %144 = arith.maximumf %142, %143 : vector<32x512xf32>
      %c0_78 = arith.constant 0 : index
      %c0_79 = arith.constant 0 : index
      %145 = vector.load %arg5[%c0_78, %c0_79] : memref<2x512xf32, #tpu.memory_space<vmem>>, vector<2x512xf32>
      %cst_80 = arith.constant dense<0.000000e+00> : vector<2x32xf32>
      %146 = tpu.matmul %145, %144, %cst_80 {dimension_numbers = #tpu.dot_dimension_numbers<[1], [1], [0], [0], [0, 0, 1, 0], [], []>} : vector<2x512xf32>, vector<32x512xf32>, vector<2x32xf32> -> vector<2x32xf32>
      %147 = arith.mulf %146, %146 : vector<2x32xf32>
      %cst_81 = arith.constant dense<0.000000e+00> : vector<2xf32>
      %148 = vector.multi_reduction <add>, %147, %cst_81 [1] : vector<2x32xf32> to vector<2xf32>
      %149 = vector.shape_cast %148 : vector<2xf32> to vector<2x1xf32>
      %150 = math.sqrt %149 : vector<2x1xf32>
      %cst_82 = arith.constant 9.99999996E-13 : f32
      %151 = vector.broadcast %cst_82 : f32 to vector<2x1xf32>
      %152 = arith.maximumf %150, %151 : vector<2x1xf32>
      %153 = vector.broadcast %152 : vector<2x1xf32> to vector<2x32xf32>
      %154 = arith.divf %146, %153 : vector<2x32xf32>
      %c0_83 = arith.constant 0 : index
      %c0_84 = arith.constant 0 : index
      %155 = vector.load %arg11[%c0_83, %c0_84] : memref<2x32xf32, #tpu.memory_space<vmem>>, vector<2x32xf32>
      tpu.vector_store %arg11[%c0_83, %c0_84], %154 {strides = array<i32>} : memref<2x32xf32, #tpu.memory_space<vmem>>, vector<2x32xf32>,
      %c0_85 = arith.constant 0 : index
      %c0_86 = arith.constant 0 : index
      %156 = vector.load %arg6[%c0_85, %c0_86] : memref<512x512xf32, #tpu.memory_space<vmem>>, vector<512x512xf32>
      %cst_87 = arith.constant dense<0.000000e+00> : vector<3x512xf32>
      %157 = tpu.matmul %137, %156, %cst_87 {dimension_numbers = #tpu.dot_dimension_numbers<[1], [0], [0], [1], [0, 0, 1, 1], [], []>} : vector<3x512xf32>, vector<512x512xf32>, vector<3x512xf32> -> vector<3x512xf32>
      %c0_88 = arith.constant 0 : index
      %c0_89 = arith.constant 0 : index
      %158 = vector.load %arg12[%c0_88, %c0_89] : memref<3x512xf32, #tpu.memory_space<vmem>>, vector<3x512xf32>
      tpu.vector_store %arg12[%c0_88, %c0_89], %157 {strides = array<i32>} : memref<3x512xf32, #tpu.memory_space<vmem>>, vector<3x512xf32>,
      %cst_90 = arith.constant 1.9999994 : f32
      %159 = vector.broadcast %cst_90 : f32 to vector<3x512xf32>
      %160 = arith.mulf %137, %159 : vector<3x512xf32>
      %cst_91 = arith.constant 1.000000e+00 : f32
      %161 = vector.broadcast %cst_91 : f32 to vector<3x512xf32>
      %162 = arith.subf %160, %161 : vector<3x512xf32>
      %cst_92 = arith.constant 3.000000e-07 : f32
      %163 = vector.broadcast %cst_92 : f32 to vector<3x512xf32>
      %164 = arith.addf %162, %163 : vector<3x512xf32>
      %cst_93 = arith.constant 1.000000e+00 : f32
      %165 = vector.broadcast %cst_93 : f32 to vector<3x512xf32>
      %166 = arith.addf %165, %164 : vector<3x512xf32>
      %cst_94 = arith.constant 1.000000e+00 : f32
      %167 = vector.broadcast %cst_94 : f32 to vector<3x512xf32>
      %168 = arith.subf %167, %164 : vector<3x512xf32>
      %169 = arith.divf %166, %168 : vector<3x512xf32>
      %170 = math.log %169 : vector<3x512xf32>
      %cst_95 = arith.constant 5.000000e-01 : f32
      %171 = vector.broadcast %cst_95 : f32 to vector<3x512xf32>
      %172 = arith.mulf %171, %170 : vector<3x512xf32>
      %c0_96 = arith.constant 0 : index
      %c0_97 = arith.constant 0 : index
      %173 = vector.load %arg8[%c0_96, %c0_97] : memref<3x512xf32, #tpu.memory_space<vmem>>, vector<3x512xf32>
      tpu.vector_store %arg8[%c0_96, %c0_97], %172 {strides = array<i32>} : memref<3x512xf32, #tpu.memory_space<vmem>>, vector<3x512xf32>,
      %cst_98 = arith.constant 0.000000e+00 : f32
      %174 = vector.broadcast %cst_98 : f32 to vector<3x512xf32>
      %c0_99 = arith.constant 0 : index
      %c0_100 = arith.constant 0 : index
      %175 = vector.load %arg9[%c0_99, %c0_100] : memref<3x512xf32, #tpu.memory_space<vmem>>, vector<3x512xf32>
      tpu.vector_store %arg9[%c0_99, %c0_100], %174 {strides = array<i32>} : memref<3x512xf32, #tpu.memory_space<vmem>>, vector<3x512xf32>,
      %cst_101 = arith.constant 0.000000e+00 : f32
      %176 = vector.broadcast %cst_101 : f32 to vector<3x512xf32>
      %c0_102 = arith.constant 0 : index
      %c0_103 = arith.constant 0 : index
      %177 = vector.load %arg10[%c0_102, %c0_103] : memref<3x512xf32, #tpu.memory_space<vmem>>, vector<3x512xf32>
      tpu.vector_store %arg10[%c0_102, %c0_103], %176 {strides = array<i32>} : memref<3x512xf32, #tpu.memory_space<vmem>>, vector<3x512xf32>,
    } else {
    }
    %c0 = arith.constant 0 : index
    %c0_1 = arith.constant 0 : index
    %3 = vector.load %arg8[%c0, %c0_1] : memref<3x512xf32, #tpu.memory_space<vmem>>, vector<3x512xf32>
    %4 = math.tanh %3 : vector<3x512xf32>
    %cst = arith.constant 1.000000e+00 : f32
    %5 = vector.broadcast %cst : f32 to vector<3x512xf32>
    %6 = arith.addf %4, %5 : vector<3x512xf32>
    %cst_2 = arith.constant 5.000000e-01 : f32
    %7 = vector.broadcast %cst_2 : f32 to vector<3x512xf32>
    %8 = arith.mulf %7, %6 : vector<3x512xf32>
    %c0_3 = arith.constant 0 : index
    %c0_4 = arith.constant 0 : index
    %9 = vector.load %arg3[%c0_3, %c0_4] : memref<32x3xf32, #tpu.memory_space<vmem>>, vector<32x3xf32>
    %cst_5 = arith.constant dense<0.000000e+00> : vector<32x512xf32>
    %10 = tpu.matmul %9, %8, %cst_5 {dimension_numbers = #tpu.dot_dimension_numbers<[1], [0], [0], [1], [0, 0, 1, 1], [], []>} : vector<32x3xf32>, vector<3x512xf32>, vector<32x512xf32> -> vector<32x512xf32>
    %c0_6 = arith.constant 0 : index
    %c0_7 = arith.constant 0 : index
    %11 = vector.load %arg4[%c0_6, %c0_7] : memref<32x1xf32, #tpu.memory_space<vmem>>, vector<32x1xf32>
    %12 = vector.broadcast %11 : vector<32x1xf32> to vector<32x512xf32>
    %13 = arith.addf %10, %12 : vector<32x512xf32>
    %cst_8 = arith.constant 0.000000e+00 : f32
    %14 = vector.broadcast %cst_8 : f32 to vector<32x512xf32>
    %15 = arith.cmpf ogt, %13, %14 : vector<32x512xf32>
    %cst_9 = arith.constant 0.000000e+00 : f32
    %16 = vector.broadcast %cst_9 : f32 to vector<32x512xf32>
    %17 = arith.maximumf %13, %16 : vector<32x512xf32>
    %c0_10 = arith.constant 0 : index
    %c0_11 = arith.constant 0 : index
    %18 = vector.load %arg5[%c0_10, %c0_11] : memref<2x512xf32, #tpu.memory_space<vmem>>, vector<2x512xf32>
    %cst_12 = arith.constant dense<0.000000e+00> : vector<2x32xf32>
    %19 = tpu.matmul %18, %17, %cst_12 {dimension_numbers = #tpu.dot_dimension_numbers<[1], [1], [0], [0], [0, 0, 1, 0], [], []>} : vector<2x512xf32>, vector<32x512xf32>, vector<2x32xf32> -> vector<2x32xf32>
    %20 = arith.mulf %19, %19 : vector<2x32xf32>
    %cst_13 = arith.constant dense<0.000000e+00> : vector<2xf32>
    %21 = vector.multi_reduction <add>, %20, %cst_13 [1] : vector<2x32xf32> to vector<2xf32>
    %22 = vector.shape_cast %21 : vector<2xf32> to vector<2x1xf32>
    %23 = math.sqrt %22 : vector<2x1xf32>
    %cst_14 = arith.constant 9.99999996E-13 : f32
    %24 = vector.broadcast %cst_14 : f32 to vector<2x1xf32>
    %25 = arith.maximumf %23, %24 : vector<2x1xf32>
    %26 = vector.broadcast %25 : vector<2x1xf32> to vector<2x32xf32>
    %27 = arith.divf %19, %26 : vector<2x32xf32>
    %c0_15 = arith.constant 0 : index
    %c0_16 = arith.constant 0 : index
    %28 = vector.load %arg11[%c0_15, %c0_16] : memref<2x32xf32, #tpu.memory_space<vmem>>, vector<2x32xf32>
    %cst_17 = arith.constant dense<0.000000e+00> : vector<2x2xf32>
    %29 = tpu.matmul %27, %28, %cst_17 {dimension_numbers = #tpu.dot_dimension_numbers<[1], [1], [0], [0], [0, 0, 1, 0], [], []>} : vector<2x32xf32>, vector<2x32xf32>, vector<2x2xf32> -> vector<2x2xf32>
    %30 = tpu.iota {dimensions = array<i32: 0>} : vector<2x2xi32>
    %31 = tpu.iota {dimensions = array<i32: 1>} : vector<2x2xi32>
    %32 = arith.cmpi eq, %30, %31 : vector<2x2xi32>
    %33 = arith.extui %32 : vector<2x2xi1> to vector<2x2xi32>
    %34 = arith.sitofp %33 : vector<2x2xi32> to vector<2x2xf32>
    %35 = arith.mulf %29, %34 : vector<2x2xf32>
    %cst_18 = arith.constant dense<0.000000e+00> : vector<2xf32>
    %36 = vector.multi_reduction <add>, %35, %cst_18 [1] : vector<2x2xf32> to vector<2xf32>
    %37 = vector.shape_cast %36 : vector<2xf32> to vector<2x1xf32>
    %c0_i32_19 = arith.constant 0 : i32
    %38 = arith.cmpi eq, %arg0, %c0_i32_19 : i32
    %39 = arith.extui %38 : i1 to i32
    %c0_i32_20 = arith.constant 0 : i32
    %40 = arith.cmpi ne, %39, %c0_i32_20 : i32
    scf.if %40 {
      %137 = arith.sitofp %31 : vector<2x2xi32> to vector<2x2xf32>
      %cst_70 = arith.constant dense<0x7F800000> : vector<2xf32>
      %138 = vector.multi_reduction <minimumf>, %29, %cst_70 [1] : vector<2x2xf32> to vector<2xf32>
      %139 = vector.shape_cast %138 : vector<2xf32> to vector<2x1xf32>
      %140 = vector.broadcast %139 : vector<2x1xf32> to vector<2x2xf32>
      %141 = arith.cmpf oeq, %29, %140 : vector<2x2xf32>
      %cst_71 = arith.constant 2.000000e+00 : f32
      %142 = vector.broadcast %cst_71 : f32 to vector<2x2xf32>
      %143 = arith.select %141, %137, %142 : vector<2x2xi1>, vector<2x2xf32>
      %cst_72 = arith.constant dense<0x7F800000> : vector<2xf32>
      %144 = vector.multi_reduction <minimumf>, %143, %cst_72 [1] : vector<2x2xf32> to vector<2xf32>
      %145 = vector.shape_cast %144 : vector<2xf32> to vector<2x1xf32>
      %146 = vector.broadcast %145 : vector<2x1xf32> to vector<2x2xf32>
      %147 = arith.cmpf oeq, %137, %146 : vector<2x2xf32>
      %148 = arith.extui %147 : vector<2x2xi1> to vector<2x2xi32>
      %149 = arith.sitofp %148 : vector<2x2xi32> to vector<2x2xf32>
      %c0_73 = arith.constant 0 : index
      %c0_74 = arith.constant 0 : index
      %150 = vector.load %arg13[%c0_73, %c0_74] : memref<2x2xf32, #tpu.memory_space<vmem>>, vector<2x2xf32>
      tpu.vector_store %arg13[%c0_73, %c0_74], %149 {strides = array<i32>} : memref<2x2xf32, #tpu.memory_space<vmem>>, vector<2x2xf32>,
    } else {
    }
    %c0_21 = arith.constant 0 : index
    %c0_22 = arith.constant 0 : index
    %41 = vector.load %arg13[%c0_21, %c0_22] : memref<2x2xf32, #tpu.memory_space<vmem>>, vector<2x2xf32>
    %42 = arith.mulf %29, %41 : vector<2x2xf32>
    %cst_23 = arith.constant dense<0.000000e+00> : vector<2xf32>
    %43 = vector.multi_reduction <add>, %42, %cst_23 [1] : vector<2x2xf32> to vector<2xf32>
    %44 = vector.shape_cast %43 : vector<2xf32> to vector<2x1xf32>
    %cst_24 = arith.constant 2.000000e-01 : f32
    %45 = vector.broadcast %cst_24 : f32 to vector<2x1xf32>
    %46 = arith.subf %37, %45 : vector<2x1xf32>
    %cst_25 = arith.constant 0.000000e+00 : f32
    %47 = vector.broadcast %cst_25 : f32 to vector<2x1xf32>
    %48 = arith.maximumf %46, %47 : vector<2x1xf32>
    %cst_26 = arith.constant 1.200000e+00 : f32
    %49 = vector.broadcast %cst_26 : f32 to vector<2x1xf32>
    %50 = arith.subf %49, %44 : vector<2x1xf32>
    %cst_27 = arith.constant 0.000000e+00 : f32
    %51 = vector.broadcast %cst_27 : f32 to vector<2x1xf32>
    %52 = arith.maximumf %50, %51 : vector<2x1xf32>
    %53 = arith.mulf %48, %37 : vector<2x1xf32>
    %54 = arith.mulf %52, %44 : vector<2x1xf32>
    %55 = arith.subf %53, %54 : vector<2x1xf32>
    %cst_28 = arith.constant 0.000000e+00 : f32
    %56 = vector.broadcast %cst_28 : f32 to vector<2x1xf32>
    %57 = arith.cmpf ogt, %55, %56 : vector<2x1xf32>
    %58 = arith.extui %57 : vector<2x1xi1> to vector<2x1xi32>
    %59 = arith.sitofp %58 : vector<2x1xi32> to vector<2x1xf32>
    %cst_29 = arith.constant dense<0.000000e+00> : vector<2x32xf32>
    %60 = tpu.matmul %41, %28, %cst_29 {dimension_numbers = #tpu.dot_dimension_numbers<[1], [0], [0], [1], [0, 0, 1, 1], [], []>} : vector<2x2xf32>, vector<2x32xf32>, vector<2x32xf32> -> vector<2x32xf32>
    %cst_30 = arith.constant 1.000000e+00 : f32
    %61 = vector.broadcast %cst_30 : f32 to vector<2x1xf32>
    %62 = arith.mulf %61, %59 : vector<2x1xf32>
    %63 = vector.broadcast %48 : vector<2x1xf32> to vector<2x32xf32>
    %64 = arith.mulf %63, %28 : vector<2x32xf32>
    %65 = vector.broadcast %52 : vector<2x1xf32> to vector<2x32xf32>
    %66 = arith.mulf %65, %60 : vector<2x32xf32>
    %67 = arith.subf %64, %66 : vector<2x32xf32>
    %68 = vector.broadcast %62 : vector<2x1xf32> to vector<2x32xf32>
    %69 = arith.mulf %68, %67 : vector<2x32xf32>
    %70 = arith.mulf %69, %27 : vector<2x32xf32>
    %cst_31 = arith.constant dense<0.000000e+00> : vector<2xf32>
    %71 = vector.multi_reduction <add>, %70, %cst_31 [1] : vector<2x32xf32> to vector<2xf32>
    %72 = vector.shape_cast %71 : vector<2xf32> to vector<2x1xf32>
    %73 = vector.broadcast %72 : vector<2x1xf32> to vector<2x32xf32>
    %74 = arith.mulf %27, %73 : vector<2x32xf32>
    %75 = arith.subf %69, %74 : vector<2x32xf32>
    %76 = vector.broadcast %25 : vector<2x1xf32> to vector<2x32xf32>
    %77 = arith.divf %75, %76 : vector<2x32xf32>
    %c0_32 = arith.constant 0 : index
    %c0_33 = arith.constant 0 : index
    %78 = vector.load %arg5[%c0_32, %c0_33] : memref<2x512xf32, #tpu.memory_space<vmem>>, vector<2x512xf32>
    %cst_34 = arith.constant dense<0.000000e+00> : vector<32x512xf32>
    %79 = tpu.matmul %77, %78, %cst_34 {dimension_numbers = #tpu.dot_dimension_numbers<[0], [0], [1], [1], [0, 1, 1, 1], [], []>} : vector<2x32xf32>, vector<2x512xf32>, vector<32x512xf32> -> vector<32x512xf32>
    %cst_35 = arith.constant 0.000000e+00 : f32
    %80 = vector.broadcast %cst_35 : f32 to vector<32x512xf32>
    %81 = arith.select %15, %79, %80 : vector<32x512xi1>, vector<32x512xf32>
    %c0_36 = arith.constant 0 : index
    %c0_37 = arith.constant 0 : index
    %82 = vector.load %arg3[%c0_36, %c0_37] : memref<32x3xf32, #tpu.memory_space<vmem>>, vector<32x3xf32>
    %cst_38 = arith.constant dense<0.000000e+00> : vector<3x512xf32>
    %83 = tpu.matmul %82, %81, %cst_38 {dimension_numbers = #tpu.dot_dimension_numbers<[0], [0], [1], [1], [0, 1, 1, 1], [], []>} : vector<32x3xf32>, vector<32x512xf32>, vector<3x512xf32> -> vector<3x512xf32>
    %c0_39 = arith.constant 0 : index
    %c0_40 = arith.constant 0 : index
    %84 = vector.load %arg6[%c0_39, %c0_40] : memref<512x512xf32, #tpu.memory_space<vmem>>, vector<512x512xf32>
    %cst_41 = arith.constant dense<0.000000e+00> : vector<3x512xf32>
    %85 = tpu.matmul %8, %84, %cst_41 {dimension_numbers = #tpu.dot_dimension_numbers<[1], [0], [0], [1], [0, 0, 1, 1], [], []>} : vector<3x512xf32>, vector<512x512xf32>, vector<3x512xf32> -> vector<3x512xf32>
    %c0_42 = arith.constant 0 : index
    %c0_43 = arith.constant 0 : index
    %86 = vector.load %arg12[%c0_42, %c0_43] : memref<3x512xf32, #tpu.memory_space<vmem>>, vector<3x512xf32>
    %87 = arith.subf %85, %86 : vector<3x512xf32>
    %cst_44 = arith.constant -1.000000e+00 : f32
    %cst_45 = arith.constant 1.000000e+00 : f32
    %88 = vector.broadcast %cst_44 : f32 to vector<3x512xf32>
    %89 = arith.maximumf %88, %87 : vector<3x512xf32>
    %90 = vector.broadcast %cst_45 : f32 to vector<3x512xf32>
    %91 = arith.minimumf %90, %89 : vector<3x512xf32>
    %c0_46 = arith.constant 0 : index
    %c0_47 = arith.constant 0 : index
    %92 = vector.load %arg6[%c0_46, %c0_47] : memref<512x512xf32, #tpu.memory_space<vmem>>, vector<512x512xf32>
    %cst_48 = arith.constant dense<0.000000e+00> : vector<3x512xf32>
    %93 = tpu.matmul %91, %92, %cst_48 {dimension_numbers = #tpu.dot_dimension_numbers<[1], [0], [0], [1], [0, 0, 1, 1], [], []>} : vector<3x512xf32>, vector<512x512xf32>, vector<3x512xf32> -> vector<3x512xf32>
    %cst_49 = arith.constant 1.000000e-01 : f32
    %94 = vector.broadcast %cst_49 : f32 to vector<3x512xf32>
    %95 = arith.mulf %94, %93 : vector<3x512xf32>
    %96 = arith.addf %83, %95 : vector<3x512xf32>
    %cst_50 = arith.constant 5.000000e-01 : f32
    %97 = vector.broadcast %cst_50 : f32 to vector<3x512xf32>
    %98 = arith.mulf %96, %97 : vector<3x512xf32>
    %99 = arith.mulf %4, %4 : vector<3x512xf32>
    %cst_51 = arith.constant 1.000000e+00 : f32
    %100 = vector.broadcast %cst_51 : f32 to vector<3x512xf32>
    %101 = arith.subf %100, %99 : vector<3x512xf32>
    %102 = arith.mulf %98, %101 : vector<3x512xf32>
    %c0_52 = arith.constant 0 : index
    %c0_53 = arith.constant 0 : index
    %103 = vector.load %arg9[%c0_52, %c0_53] : memref<3x512xf32, #tpu.memory_space<vmem>>, vector<3x512xf32>
    %cst_54 = arith.constant 0.899999976 : f32
    %104 = vector.broadcast %cst_54 : f32 to vector<3x512xf32>
    %105 = arith.mulf %104, %103 : vector<3x512xf32>
    %cst_55 = arith.constant 1.000000e-01 : f32
    %106 = vector.broadcast %cst_55 : f32 to vector<3x512xf32>
    %107 = arith.mulf %106, %102 : vector<3x512xf32>
    %108 = arith.addf %105, %107 : vector<3x512xf32>
    %c0_56 = arith.constant 0 : index
    %c0_57 = arith.constant 0 : index
    %109 = vector.load %arg10[%c0_56, %c0_57] : memref<3x512xf32, #tpu.memory_space<vmem>>, vector<3x512xf32>
    %cst_58 = arith.constant 9.990000e-01 : f32
    %110 = vector.broadcast %cst_58 : f32 to vector<3x512xf32>
    %111 = arith.mulf %110, %109 : vector<3x512xf32>
    %cst_59 = arith.constant 1.000000e-03 : f32
    %112 = vector.broadcast %cst_59 : f32 to vector<3x512xf32>
    %113 = arith.mulf %112, %102 : vector<3x512xf32>
    %114 = arith.mulf %113, %102 : vector<3x512xf32>
    %115 = arith.addf %111, %114 : vector<3x512xf32>
    %116 = arith.index_cast %arg0 : i32 to index
    %c0_60 = arith.constant 0 : index
    %117 = memref.load %arg1[%116, %c0_60] : memref<8x2xf32, #tpu.memory_space<smem>>
    %118 = arith.index_cast %arg0 : i32 to index
    %c1 = arith.constant 1 : index
    %119 = memref.load %arg1[%118, %c1] : memref<8x2xf32, #tpu.memory_space<smem>>
    %120 = vector.broadcast %117 : f32 to vector<3x512xf32>
    %121 = arith.mulf %108, %120 : vector<3x512xf32>
    %cst_61 = arith.constant 1.000000e-03 : f32
    %122 = vector.broadcast %cst_61 : f32 to vector<3x512xf32>
    %123 = arith.mulf %122, %121 : vector<3x512xf32>
    %124 = vector.broadcast %119 : f32 to vector<3x512xf32>
    %125 = arith.mulf %115, %124 : vector<3x512xf32>
    %126 = math.sqrt %125 : vector<3x512xf32>
    %cst_62 = arith.constant 9.99999993E-9 : f32
    %127 = vector.broadcast %cst_62 : f32 to vector<3x512xf32>
    %128 = arith.addf %126, %127 : vector<3x512xf32>
    %129 = arith.divf %123, %128 : vector<3x512xf32>
    %130 = arith.subf %3, %129 : vector<3x512xf32>
    %c0_63 = arith.constant 0 : index
    %c0_64 = arith.constant 0 : index
    %131 = vector.load %arg9[%c0_63, %c0_64] : memref<3x512xf32, #tpu.memory_space<vmem>>, vector<3x512xf32>
    tpu.vector_store %arg9[%c0_63, %c0_64], %108 {strides = array<i32>} : memref<3x512xf32, #tpu.memory_space<vmem>>, vector<3x512xf32>,
    %c0_65 = arith.constant 0 : index
    %c0_66 = arith.constant 0 : index
    %132 = vector.load %arg10[%c0_65, %c0_66] : memref<3x512xf32, #tpu.memory_space<vmem>>, vector<3x512xf32>
    tpu.vector_store %arg10[%c0_65, %c0_66], %115 {strides = array<i32>} : memref<3x512xf32, #tpu.memory_space<vmem>>, vector<3x512xf32>,
    %c0_67 = arith.constant 0 : index
    %c0_68 = arith.constant 0 : index
    %133 = vector.load %arg8[%c0_67, %c0_68] : memref<3x512xf32, #tpu.memory_space<vmem>>, vector<3x512xf32>
    tpu.vector_store %arg8[%c0_67, %c0_68], %130 {strides = array<i32>} : memref<3x512xf32, #tpu.memory_space<vmem>>, vector<3x512xf32>,
    %c7_i32 = arith.constant 7 : i32
    %134 = arith.cmpi eq, %arg0, %c7_i32 : i32
    %135 = arith.extui %134 : i1 to i32
    %c0_i32_69 = arith.constant 0 : i32
    %136 = arith.cmpi ne, %135, %c0_i32_69 : i32
    scf.if %136 {
      %137 = math.tanh %130 : vector<3x512xf32>
      %cst_70 = arith.constant 1.000000e+00 : f32
      %138 = vector.broadcast %cst_70 : f32 to vector<3x512xf32>
      %139 = arith.addf %137, %138 : vector<3x512xf32>
      %cst_71 = arith.constant 5.000000e-01 : f32
      %140 = vector.broadcast %cst_71 : f32 to vector<3x512xf32>
      %141 = arith.mulf %140, %139 : vector<3x512xf32>
      %c0_72 = arith.constant 0 : index
      %c0_73 = arith.constant 0 : index
      %142 = vector.load %arg7[%c0_72, %c0_73] : memref<3x512xf32, #tpu.memory_space<vmem>>, vector<3x512xf32>
      tpu.vector_store %arg7[%c0_72, %c0_73], %141 {strides = array<i32>} : memref<3x512xf32, #tpu.memory_space<vmem>>, vector<3x512xf32>,
    } else {
    }
    return
  }
  func.func @transform_0(%arg0: i32) -> (i32, i32) {
    %c0_i32 = arith.constant 0 : i32
    %c0_i32_0 = arith.constant 0 : i32
    %c0_i32_1 = arith.constant 0 : i32
    return %c0_i32, %c0_i32_0 : i32, i32
  }
  func.func @transform_1(%arg0: i32) -> (i32, i32) {
    %c0_i32 = arith.constant 0 : i32
    %c0_i32_0 = arith.constant 0 : i32
    %c0_i32_1 = arith.constant 0 : i32
    return %c0_i32, %c0_i32_0 : i32, i32
  }
  func.func @transform_2(%arg0: i32) -> (i32, i32) {
    %c0_i32 = arith.constant 0 : i32
    %c0_i32_0 = arith.constant 0 : i32
    %c0_i32_1 = arith.constant 0 : i32
    return %c0_i32, %c0_i32_0 : i32, i32
  }
  func.func @transform_3(%arg0: i32) -> (i32, i32) {
    %c0_i32 = arith.constant 0 : i32
    %c0_i32_0 = arith.constant 0 : i32
    %c0_i32_1 = arith.constant 0 : i32
    return %c0_i32, %c0_i32_0 : i32, i32
  }
  func.func @transform_4(%arg0: i32) -> (i32, i32) {
    %c0_i32 = arith.constant 0 : i32
    %c0_i32_0 = arith.constant 0 : i32
    %c0_i32_1 = arith.constant 0 : i32
    return %c0_i32, %c0_i32_0 : i32, i32
  }
  func.func @transform_5(%arg0: i32) -> (i32, i32) {
    %c0_i32 = arith.constant 0 : i32
    %c0_i32_0 = arith.constant 0 : i32
    %c0_i32_1 = arith.constant 0 : i32
    return %c0_i32, %c0_i32_0 : i32, i32
  }
  func.func @transform_6(%arg0: i32) -> (i32, i32) {
    %c0_i32 = arith.constant 0 : i32
    %c0_i32_0 = arith.constant 0 : i32
    %c0_i32_1 = arith.constant 0 : i32
    return %c0_i32, %c0_i32_0 : i32, i32
  }
}

</mosaic_0001>

<bundles_post_ra>
// kernel: attack.1
= control target key start
LH: loop header
LB: loop body
LE: loop exit
PB: predicated region body
PF: predicated region fallthrough
CT: control target
= control target key end

     0   :  { %11 = vsyncpa [#allocation10], 0  ;;  %s4727_s0 = inlined_call_operand.vmem [shape: f32[8,2], index: 0, kind: input, shape index: {}]   ;;  %s4728_s1 = inlined_call_operand.vmem [shape: f32[3,512], index: 1, kind: input, shape index: {}]   ;;  %s4729_s2 = inlined_call_operand.vmem [shape: f32[32,3], index: 2, kind: input, shape index: {}]   ;;  %s4730_s3 = inlined_call_operand.vmem [shape: f32[32,1], index: 3, kind: input, shape index: {}]   ;;  %s4731_s4 = inlined_call_operand.vmem [shape: f32[2,512], index: 4, kind: input, shape index: {}]   ;;  %s4732_s5 = inlined_call_operand.hbm [shape: f32[512,512], index: 5, kind: input, shape index: {}]   ;;  %s4733_s6 = inlined_call_operand.vmem [shape: f32[3,512], index: 6, kind: output, shape index: {}]  }
   0x1   :  { %12 = vsyncpa [#allocation9], 0  ;;  %s3473_s21 = smov 0  }
   0x2 LB: > { %s182_s24 = sshll.u32 %s4727_s0, 4  ;;  %s3482_s25 = sadd.s32 4294967295, %s3427_s21   ;;  %s3427_s21 = sphi %s3473_s21, %s18_s21   ;;  %s183_s24 = int_to_ptr.vmem [resolvable:$true] %s182_s24 }
   0x3   : > { %p3117_p0 = scmp.ge.s32.totalorder %s3427_s21, 1  ;;  %p170_p1 = scmp.lt.s32.totalorder %s3427_s21, 9 }
   0x4   : > { %p3118_p2 = scmp.ne.s32.totalorder %s3482_s25, 0  ;;  %p3238_p3 = scmp.eq.s32.totalorder %s3482_s25, 0 }
   0x5   : > { %p3488_p4 = pnand %p3117_p0, %p170_p1  ;;  %s203_s29 = sshll.u32 %s4732_s5, 4  ;;  %s204_s29 = int_to_ptr.hbm [resolvable:$true] %s203_s29 }
   0x6   : > { %s3429_s30 = smov [#allocation11]   ;;  %s3430_s8 = smov [#allocation8]  }
   0x7   : > { %p3231_p5 = pneg %p3488_p4  ;;  %s205_s7 = sshll.u32 %s3429_s30, 4  ;;  %s206_s7 = int_to_ptr.vmem [resolvable:$true] %s205_s7 }
   0x8   : > { %s3431_s9 = smov 512   ;;  %s3432_s10 = smov 32  }
   0x9   : > { %p3232_p6 = pnand %p3238_p3, %p3231_p5  ;;  %221 = sbr.rel (%p3488_p4) target bundleno = 2492 (0x9bc), region = 44 }
   0xb   : > { %3234 = dma.vmem_to_smem (!%p3232_p6), %s183_s24, 128, %s3430_s8, [#allocation10]  }
   0xc   : > { %3237 = dma.hbm_to_vmem [thread:$0]  (!%p3232_p6), %s204_s29, 32768, %s206_s7, [#allocation9], %s3431_s9, %s3431_s9, %s3432_s10  }
   0xe   : > { %3418 = dma.done.wait (%p3238_p3), [#allocation10], 128  }
   0xf   : > { %3420 = vsyncadd (%p3238_p3), [#allocation10], 4294967168 }
  0x10   : > { %3422 = dma.done.wait (%p3238_p3), [#allocation9], 32768  }
  0x11   : > { %3424 = vsyncadd (%p3238_p3), [#allocation9], 4294934528 }
  0x12   : > { %233 = sfence }
  0x13   : > { %251 = sbr.rel (%p3118_p2) target bundleno = 509 (0x1fd), region = 56 }
  0x18   : > { %v3514_v0 = vld [vmem:[%s4728_s1] sm:$0x77]  ;;  %v3519_v1 = vld [vmem:[%s4728_s1 + $0x8] sm:$0x77]  ;;  %v3433_v3 = vmov 0   ;;  %v261_v6 = vld [vmem:[%s4730_s3 + $0x18] sm:$0xff] }
  0x19   : > { %284 = vst [vmem:[#allocation1] ss:$2 sm:$0xff] %v3514_v0  ;;  %v1170_v2 = vmul.f32 1.9999994, %v3514_v0  ;;  %3260 = vset.pattern.permute.xlu1 %v3433_v3  ;;  %v259_v4 = vld [vmem:[%s4730_s3 + $0x8] sm:$0xff]  ;;  %3259 = vset.pattern.permute.xlu0 %v3433_v3  ;;  %vm304_vm0 = vcmask 1042432  }
  0x1a   : > { %286 = vst [vmem:[#allocation1 + $0x10] ss:$2 sm:$0xff] %v3519_v1  ;;  %269 = vperm.xlu1 %3260, %v259_v4   ;;  %279 = vperm.xlu0 %3259, %v261_v6   ;;  %v1171_v9 = vmul.f32 1.9999994, %v3519_v1  ;;  %v254_v10 = vld [vmem:[%s4729_s2] sm:$0xff]  ;;  %vm291_vm1 = vcmask 23552  }
  0x1b   : > { %v3144_v5 = vadd.f32 -1.0, %v1170_v2  ;;  %v258_v16 = vld [vmem:[%s4730_s3] sm:$0xff]  ;;  %v260_v18 = vld [vmem:[%s4730_s3 + $0x10] sm:$0xff]  ;;  %v255_v22 = vld [vmem:[%s4729_s2 + $0x8] sm:$0xff]  ;;  %vm537_vm10 = vcmask 254976   ;;  %vm1163_vm11 = vcmask 1043456  }
  0x1c   : > { %v3145_v14 = vadd.f32 -1.0, %v1171_v9  ;;  %v445_v20 = vld [vmem:[%s4731_s4] sm:$0xff]  ;;  %v256_v33 = vld [vmem:[%s4729_s2 + $0x10] sm:$0xff]  ;;  %v257_v45 = vld [vmem:[%s4729_s2 + $0x18] sm:$0xff] }
  0x1d   : > { %v1174_v7 = vadd.f32 3e-07, %v3144_v5 }
  0x1e   : > { %v1175_v17 = vadd.f32 3e-07, %v3145_v14 }
  0x1f   : > { %v1178_v8 = vsub.f32 1.0, %v1174_v7  ;;  %v1176_v30 = vadd.f32 1.0, %v1174_v7 }
  0x20   : > { %v287_v11 = vld.sshfl [vmem:[#allocation1] sm:$0xff pattern:$0x75316420]  ;;  %v288_v12 = vld.sshfl [vmem:[#allocation1 + $0x8] sm:$0xff pattern:$0x75316420] }
  0x21   : > { %3124 = vmatpush.msk.msra.mxu0 %vm304_vm0, %v287_v11  ;;  %3261 = vrcp.f32 %v1178_v8  ;;  %3129 = vmatpush.msk.msra.mxu1 %vm304_vm0, %v288_v12  ;;  %v289_v13 = vld.sshfl [vmem:[#allocation1 + $0x10] sm:$0xff pattern:$0x75316420]  ;;  %v290_v15 = vld.sshfl [vmem:[#allocation1 + $0x18] sm:$0xff pattern:$0x75316420]  ;;  %vm1185_vm2 = vweird.f32 %v1178_v8 }
  0x22   : > { %3134 = vmatpush.msk.msra.mxu2 %vm304_vm0, %v289_v13  ;;  %3125 = vmatmul.msk.f32.vlgmr.msra.gmra.mxu0 %vm291_vm1, %v254_v10  ;;  %v1179_v19 = vsub.f32 1.0, %v1175_v17  ;;  %447 = vst [vmem:[#allocation1] ss:$4 sm:$0xff] %v445_v20  ;;  %v1191_v24 = vand.u32 2147483648, %v1178_v8  ;;  %v1189_v26 = vand.u32 2147483647, %v1178_v8 }
  0x23   : > { %3139 = vmatpush.msk.msra.mxu3 %vm304_vm0, %v290_v15  ;;  %3130 = vmatmul.msk.f32.vlgmr.msra.gmra.mxu1 %vm291_vm1, %v254_v10  ;;  %v1177_v42 = vadd.f32 1.0, %v1175_v17 }
  0x24   : > { %3135 = vmatmul.msk.f32.vlgmr.msra.gmra.mxu2 %vm291_vm1, %v254_v10  ;;  %3140 = vmatmul.msk.f32.vlgmr.msra.gmra.mxu3 %vm291_vm1, %v254_v10  ;;  %3263 = vrcp.f32 %v1179_v19  ;;  %v1192_v28 = vor.u32 1.1754944e-38, %v1191_v24  ;;  %vm1190_vm5 = vcmp.eq.f32.partialorder %v1189_v26, 8.507059e+37  ;;  %vm1200_vm6 = vweird.f32 %v1179_v19 }
  0x25   : > { %264 = vperm.xlu1 %3260, %v258_v16   ;;  %274 = vperm.xlu0 %3259, %v260_v18   ;;  %v1206_v35 = vand.u32 2147483648, %v1179_v19  ;;  %v1204_v38 = vand.u32 2147483647, %v1179_v19 }
  0x27   : > { %v3262_v21 = vpop.eup %3261  ;;  %v1207_v41 = vor.u32 1.1754944e-38, %v1206_v35  ;;  %vm1205_vm9 = vcmp.eq.f32.partialorder %v1204_v38, 8.507059e+37 }
  0x28   : > { %v1181_v23 = vmul.f32 %v3262_v21, %v1178_v8  ;;  %vm1186_vm3 = vweird.f32 %v3262_v21 }
  0x29   : > { %vm1187_vm4 = vmor %vm1185_vm2, %vm1186_vm3  ;;  %v3576_v3 = vld.sshfl [vmem:[#allocation1 + $0x10] sm:$0xff pattern:$0x73625140]  ;;  %v3578_v4 = vld.sshfl [vmem:[#allocation1 + $0x18] sm:$0xff pattern:$0x73625140] }
  0x2a   : > { %v1182_v25 = vsub.f32 1.0, %v1181_v23  ;;  %3126 = vmatmul.msk.f32.gmra.mxu0 %vm291_vm1, %v255_v22  ;;  %v3264_v29 = vpop.eup %3263  ;;  %828 = vst [vmem:[#allocation1 + $0x10] ss:$2 sm:$0xff] %v3519_v1  ;;  %v448_v5 = vld.sshfl [vmem:[#allocation1] sm:$0xff pattern:$0x73625140] }
  0x2b   : > { %3131 = vmatmul.msk.f32.gmra.mxu1 %vm291_vm1, %v255_v22  ;;  %v1196_v32 = vmul.f32 %v3264_v29, %v1179_v19  ;;  %vm1201_vm7 = vweird.f32 %v3264_v29  ;;  %v449_v6 = vld.sshfl [vmem:[#allocation1 + $0x8] sm:$0xff pattern:$0x73625140] }
  0x2c   : > { %v1183_v27 = vmul.f32 %v3262_v21, %v1182_v25  ;;  %3136 = vmatmul.msk.f32.gmra.mxu2 %vm291_vm1, %v255_v22  ;;  %3141 = vmatmul.msk.f32.gmra.mxu3 %vm291_vm1, %v255_v22  ;;  %vm1202_vm8 = vmor %vm1200_vm6, %vm1201_vm7  ;;  %826 = vst [vmem:[#allocation1] ss:$2 sm:$0xff] %v3514_v0 }
  0x2d   : > { %v1197_v37 = vsub.f32 1.0, %v1196_v32 }
  0x2e   : > { %v1184_v31 = vadd.f32 %v3262_v21, %v1183_v27 }
  0x2f   : > { %v1198_v40 = vmul.f32 %v3264_v29, %v1197_v37 }
  0x30   : > { %v1188_v34 = vsel %vm1187_vm4, %v3262_v21, %v1184_v31 }
  0x31   : > { %v1193_v36 = vsel %vm1190_vm5, %v1192_v28, %v1188_v34  ;;  %v1199_v43 = vadd.f32 %v3264_v29, %v1198_v40  ;;  %v630_v40 = vld [vmem:[#allocation11 + $0x1e0] sm:$0xff] }
  0x32   : > { %v1194_v39 = vmul.f32 %v1193_v36, %v1176_v30  ;;  %3127 = vmatmul.msk.f32.gmra.mxu0 %vm291_vm1, %v256_v33 }
  0x33   : > { %3132 = vmatmul.msk.f32.gmra.mxu1 %vm291_vm1, %v256_v33  ;;  %v1203_v44 = vsel %vm1202_vm8, %v3264_v29, %v1199_v43 }
  0x34   : > { %3265 = vlog2.f32 %v1194_v39  ;;  %3137 = vmatmul.msk.f32.gmra.mxu2 %vm291_vm1, %v256_v33  ;;  %3142 = vmatmul.msk.f32.gmra.mxu3 %vm291_vm1, %v256_v33  ;;  %v1208_v46 = vsel %vm1205_vm9, %v1207_v41, %v1203_v44  ;;  %v694_v41 = vld [vmem:[#allocation11 + $0x3e0] sm:$0xff] }
  0x35   : > { %v1209_v47 = vmul.f32 %v1208_v46, %v1177_v42  ;;  %v626_v46 = vld [vmem:[#allocation11 + $0x1c0] sm:$0xff] }
  0x37   : > { %3267 = vlog2.f32 %v1209_v47  ;;  %v690_v47 = vld [vmem:[#allocation11 + $0x3c0] sm:$0xff] }
  0x3a   : > { %v3266_v48 = vpop.eup %3265  ;;  %3128 = vmatmul.msk.f32.gmra.mxu0 %vm291_vm1, %v257_v45 }
  0x3b   : > { %v1211_v49 = vmul.f32 0.6931472, %v3266_v48  ;;  %3133 = vmatmul.msk.f32.gmra.mxu1 %vm291_vm1, %v257_v45 }
  0x3c   : > { %3138 = vmatmul.msk.f32.gmra.mxu2 %vm291_vm1, %v257_v45  ;;  %3143 = vmatmul.msk.f32.gmra.mxu3 %vm291_vm1, %v257_v45 }
  0x3d   : > { %v1214_v50 = vmul.f32 0.5, %v1211_v49  ;;  %v3268_v51 = vpop.eup %3267 }
  0x3e   : > { %v1213_v52 = vmul.f32 0.6931472, %v3268_v51  ;;  %v822_v51 = vld [vmem:[#allocation11 + $0x7e0] sm:$0xff] }
  0x3f   : > { %1216 = vst [vmem:[#allocation2] sm:$0x77] %v1214_v50  ;;  %v758_v50 = vld [vmem:[#allocation11 + $0x5e0] sm:$0xff] }
  0x40   : > { %v1215_v53 = vmul.f32 0.5, %v1213_v52  ;;  %v622_v52 = vld [vmem:[#allocation11 + $0x1a0] sm:$0xff] }
  0x42   : > { %1217 = vst [vmem:[#allocation2 + $0x8] sm:$0x77] %v1215_v53  ;;  %v686_v53 = vld [vmem:[#allocation11 + $0x3a0] sm:$0xff] }
  0x8c   : > { %v280_v60 = vpop.permute.xlu0 %279  ;;  %v270_v7 = vpop.permute.xlu1 %269 }
  0x97   : > { %v275_v14 = vpop.permute.xlu0 %274  ;;  %v265_v25 = vpop.permute.xlu1 %264 }
  0x9f   : > { %v330_v54 = vpop.f32.mrf.mxu0 }
  0xa0   : > { %v359_v55 = vpop.f32.mrf.mxu1  ;;  %v331_v32 = vadd.f32 %v330_v54, %v265_v25  ;;  %v754_v54 = vld [vmem:[#allocation11 + $0x5c0] sm:$0xff] }
  0xa1   : > { %v360_v33 = vadd.f32 %v359_v55, %v265_v25  ;;  %v818_v55 = vld [vmem:[#allocation11 + $0x7c0] sm:$0xff] }
  0xa2   : > { %v429_v38 = vmax.f32 %v331_v32, 0.0  ;;  %v578_v32 = vld [vmem:[#allocation11 + $0x40] sm:$0xff] }
  0xa3   : > { %v430_v39 = vmax.f32 %v360_v33, 0.0  ;;  %v642_v33 = vld [vmem:[#allocation11 + $0x240] sm:$0xff] }
  0xa7   : > { %v3572_v56 = vpop.f32.mrf.mxu2  ;;  %v3574_v57 = vpop.f32.mrf.mxu3 }
  0xa8   : > { %v333_v58 = vpop.f32.mrf.mxu0  ;;  %v362_v59 = vpop.f32.mrf.mxu1  ;;  %v389_v42 = vadd.f32 %v3572_v56, %v265_v25  ;;  %v418_v43 = vadd.f32 %v3574_v57, %v265_v25  ;;  %v618_v56 = vld [vmem:[#allocation11 + $0x180] sm:$0xff] }
  0xa9   : > { %v334_v19 = vadd.f32 %v333_v58, %v270_v7  ;;  %v363_v1 = vadd.f32 %v362_v59, %v270_v7  ;;  %v682_v57 = vld [vmem:[#allocation11 + $0x380] sm:$0xff] }
  0xaa   : > { %v431_v48 = vmax.f32 %v389_v42, 0.0  ;;  %v432_v49 = vmax.f32 %v418_v43, 0.0  ;;  %v750_v58 = vld [vmem:[#allocation11 + $0x5a0] sm:$0xff] }
  0xab   : > { %v433_v30 = vmax.f32 %v334_v19, 0.0  ;;  %v434_v31 = vmax.f32 %v363_v1, 0.0  ;;  %v814_v59 = vld [vmem:[#allocation11 + $0x7a0] sm:$0xff] }
  0xac   : > { %v658_v19 = vld [vmem:[#allocation11 + $0x2c0] sm:$0xff] }
  0xad   : > { %v726_v1 = vld [vmem:[#allocation11 + $0x4e0] sm:$0xff] }
  0xae   : > { %v650_v25 = vld [vmem:[#allocation11 + $0x280] sm:$0xff] }
  0xaf   : > { %v391_v61 = vpop.f32.mrf.mxu2  ;;  %v420_v62 = vpop.f32.mrf.mxu3  ;;  %v702_v42 = vld [vmem:[#allocation11 + $0x420] sm:$0xff] }
  0xb0   : > { %v336_v63 = vpop.f32.mrf.mxu0  ;;  %v365_v2 = vpop.f32.mrf.mxu1  ;;  %v392_v34 = vadd.f32 %v391_v61, %v270_v7  ;;  %v421_v35 = vadd.f32 %v420_v62, %v270_v7  ;;  %v678_v61 = vld [vmem:[#allocation11 + $0x360] sm:$0xff] }
  0xb1   : > { %v337_v17 = vadd.f32 %v336_v63, %v275_v14  ;;  %v366_v18 = vadd.f32 %v365_v2, %v275_v14  ;;  %v746_v62 = vld [vmem:[#allocation11 + $0x580] sm:$0xff] }
  0xb2   : > { %v435_v44 = vmax.f32 %v392_v34, 0.0  ;;  %v436_v45 = vmax.f32 %v421_v35, 0.0  ;;  %v810_v63 = vld [vmem:[#allocation11 + $0x780] sm:$0xff] }
  0xb3   : > { %v437_v22 = vmax.f32 %v337_v17, 0.0  ;;  %v438_v23 = vmax.f32 %v366_v18, 0.0  ;;  %v610_v2 = vld [vmem:[#allocation11 + $0x140] sm:$0xff] }
  0xb4   : > { %v806_v7 = vld [vmem:[#allocation11 + $0x760] sm:$0xff] }
  0xb5   : > { %v794_v17 = vld [vmem:[#allocation11 + $0x700] sm:$0xff] }
  0xb6   : > { %v594_v18 = vld [vmem:[#allocation11 + $0xc0] sm:$0xff] }
  0xb7   : > { %v394_v8 = vpop.f32.mrf.mxu2  ;;  %v423_v9 = vpop.f32.mrf.mxu3  ;;  %v710_v34 = vld [vmem:[#allocation11 + $0x460] sm:$0xff] }
  0xb8   : > { %v339_v10 = vpop.f32.mrf.mxu0  ;;  %v368_v11 = vpop.f32.mrf.mxu1  ;;  %v395_v26 = vadd.f32 %v394_v8, %v275_v14  ;;  %v424_v27 = vadd.f32 %v423_v9, %v275_v14  ;;  %v738_v8 = vld [vmem:[#allocation11 + $0x540] sm:$0xff] }
  0xb9   : > { %v340_v12 = vadd.f32 %v339_v10, %v280_v60  ;;  %v369_v13 = vadd.f32 %v368_v11, %v280_v60  ;;  %v802_v9 = vld [vmem:[#allocation11 + $0x740] sm:$0xff] }
  0xba   : > { %v439_v36 = vmax.f32 %v395_v26, 0.0  ;;  %v440_v37 = vmax.f32 %v424_v27, 0.0  ;;  %v602_v10 = vld [vmem:[#allocation11 + $0x100] sm:$0xff] }
  0xbb   : > { %v441_v15 = vmax.f32 %v340_v12, 0.0  ;;  %v442_v16 = vmax.f32 %v369_v13, 0.0  ;;  %v666_v11 = vld [vmem:[#allocation11 + $0x300] sm:$0xff] }
  0xbc   : > { %v734_v12 = vld [vmem:[#allocation11 + $0x520] sm:$0xff] }
  0xbd   : > { %468 = vmatpush.xpose.msrb.mxu0 %v441_v15  ;;  %488 = vmatpush.xpose.msrb.mxu1 %v442_v16  ;;  %v798_v13 = vld [vmem:[#allocation11 + $0x720] sm:$0xff] }
  0xbe   : > { %v598_v14 = vld [vmem:[#allocation11 + $0xe0] sm:$0xff] }
  0xbf   : > { %v397_v20 = vpop.f32.mrf.mxu2  ;;  %v426_v21 = vpop.f32.mrf.mxu3  ;;  %v662_v15 = vld [vmem:[#allocation11 + $0x2e0] sm:$0xff] }
  0xc0   : > { %v398_v0 = vadd.f32 %v397_v20, %v280_v60  ;;  %v427_v24 = vadd.f32 %v426_v21, %v280_v60  ;;  %v614_v60 = vld [vmem:[#allocation11 + $0x160] sm:$0xff] }
  0xc1   : > { %469 = vmatpush.xpose.msrb.mxu0 %v437_v22  ;;  %489 = vmatpush.xpose.msrb.mxu1 %v438_v23  ;;  %v730_v16 = vld [vmem:[#allocation11 + $0x500] sm:$0xff] }
  0xc2   : > { %v443_v28 = vmax.f32 %v398_v0, 0.0  ;;  %v444_v29 = vmax.f32 %v427_v24, 0.0  ;;  %v790_v20 = vld [vmem:[#allocation11 + $0x6e0] sm:$0xff] }
  0xc3   : > { %v590_v21 = vld [vmem:[#allocation11 + $0xa0] sm:$0xff] }
  0xc4   : > { %508 = vmatpush.xpose.msrb.mxu2 %v443_v28  ;;  %528 = vmatpush.xpose.msrb.mxu3 %v444_v29  ;;  %v654_v22 = vld [vmem:[#allocation11 + $0x2a0] sm:$0xff] }
  0xc5   : > { %470 = vmatpush.xpose.msrb.mxu0 %v433_v30  ;;  %490 = vmatpush.xpose.msrb.mxu1 %v434_v31  ;;  %v722_v23 = vld [vmem:[#allocation11 + $0x4c0] sm:$0xff] }
  0xc6   : > { %v786_v0 = vld [vmem:[#allocation11 + $0x6c0] sm:$0xff] }
  0xc7   : > { %v586_v24 = vld [vmem:[#allocation11 + $0x80] sm:$0xff] }
  0xc8   : > { %509 = vmatpush.xpose.msrb.mxu2 %v439_v36  ;;  %529 = vmatpush.xpose.msrb.mxu3 %v440_v37  ;;  %v718_v26 = vld [vmem:[#allocation11 + $0x4a0] sm:$0xff] }
  0xc9   : > { %471 = vmatpush.xpose.msrb.mxu0 %v429_v38  ;;  %491 = vmatpush.xpose.msrb.mxu1 %v430_v39  ;;  %v782_v27 = vld [vmem:[#allocation11 + $0x6a0] sm:$0xff] }
  0xca   : > { %v582_v28 = vld [vmem:[#allocation11 + $0x60] sm:$0xff] }
  0xcb   : > { %v646_v29 = vld [vmem:[#allocation11 + $0x260] sm:$0xff] }
  0xcc   : > { %510 = vmatpush.xpose.msrb.mxu2 %v435_v44  ;;  %530 = vmatpush.xpose.msrb.mxu3 %v436_v45  ;;  %v714_v30 = vld [vmem:[#allocation11 + $0x480] sm:$0xff]  ;;  %v631_v44 = vld [vmem:[#allocation11 + $0x1e8] sm:$0xff] }
  0xcd   : > { %837 = vmatpush.msra.mxu0 %v630_v40  ;;  %857 = vmatpush.msra.mxu1 %v694_v41  ;;  %v778_v31 = vld [vmem:[#allocation11 + $0x680] sm:$0xff]  ;;  %v695_v45 = vld [vmem:[#allocation11 + $0x3e8] sm:$0xff] }
  0xce   : > { %472 = vmatmul.f32.vlgmr.msrb.gmra.mxu0 %v448_v5  ;;  %492 = vmatmul.f32.vlgmr.msrb.gmra.mxu1 %v449_v6  ;;  %v674_v5 = vld [vmem:[#allocation11 + $0x340] sm:$0xff] }
  0xcf   : > { %838 = vmatpush.msra.mxu0 %v626_v46  ;;  %858 = vmatpush.msra.mxu1 %v690_v47  ;;  %v742_v6 = vld [vmem:[#allocation11 + $0x560] sm:$0xff] }
  0xd0   : > { %511 = vmatpush.xpose.msrb.mxu2 %v431_v48  ;;  %531 = vmatpush.xpose.msrb.mxu3 %v432_v49  ;;  %v774_v35 = vld [vmem:[#allocation11 + $0x660] sm:$0xff]  ;;  %v759_v48 = vld [vmem:[#allocation11 + $0x5e8] sm:$0xff] }
  0xd1   : > { %839 = vmatpush.msra.mxu0 %v622_v52  ;;  %859 = vmatpush.msra.mxu1 %v686_v53  ;;  %v574_v36 = vld [vmem:[#allocation11 + $0x20] sm:$0xff]  ;;  %v823_v49 = vld [vmem:[#allocation11 + $0x7e8] sm:$0xff] }
  0xd2   : > { %v638_v37 = vld [vmem:[#allocation11 + $0x220] sm:$0xff]  ;;  %v755_v52 = vld [vmem:[#allocation11 + $0x5c8] sm:$0xff] }
  0xd3   : > { %512 = vmatmul.f32.vlgmr.msrb.gmra.mxu2 %v3576_v3  ;;  %532 = vmatmul.f32.vlgmr.msrb.gmra.mxu3 %v3578_v4  ;;  %v606_v3 = vld [vmem:[#allocation11 + $0x120] sm:$0xff]  ;;  %v819_v53 = vld [vmem:[#allocation11 + $0x7c8] sm:$0xff] }
  0xd4   : > { %877 = vmatpush.msra.mxu2 %v758_v50  ;;  %897 = vmatpush.msra.mxu3 %v822_v51  ;;  %v670_v4 = vld [vmem:[#allocation11 + $0x320] sm:$0xff]  ;;  %v627_v50 = vld [vmem:[#allocation11 + $0x1c8] sm:$0xff] }
  0xd5   : > { %840 = vmatpush.msra.mxu0 %v618_v56  ;;  %860 = vmatpush.msra.mxu1 %v682_v57  ;;  %v706_v38 = vld [vmem:[#allocation11 + $0x440] sm:$0xff]  ;;  %v691_v51 = vld [vmem:[#allocation11 + $0x3c8] sm:$0xff] }
  0xd6   : > { %878 = vmatpush.msra.mxu2 %v754_v54  ;;  %898 = vmatpush.msra.mxu3 %v818_v55  ;;  %v770_v39 = vld [vmem:[#allocation11 + $0x640] sm:$0xff]  ;;  %v623_v54 = vld [vmem:[#allocation11 + $0x1a8] sm:$0xff] }
  0xd7   : > { %841 = vmatpush.msra.mxu0 %v614_v60  ;;  %861 = vmatpush.msra.mxu1 %v678_v61  ;;  %v570_v40 = vld [vmem:[#allocation11] sm:$0xff]  ;;  %v687_v55 = vld [vmem:[#allocation11 + $0x3a8] sm:$0xff] }
  0xd8   : > { %879 = vmatpush.msra.mxu2 %v750_v58  ;;  %899 = vmatpush.msra.mxu3 %v814_v59  ;;  %v634_v41 = vld [vmem:[#allocation11 + $0x200] sm:$0xff]  ;;  %v751_v56 = vld [vmem:[#allocation11 + $0x5a8] sm:$0xff] }
  0xd9   : > { %842 = vmatpush.msra.mxu0 %v610_v2  ;;  %862 = vmatpush.msra.mxu1 %v674_v5  ;;  %v766_v43 = vld [vmem:[#allocation11 + $0x620] sm:$0xff]  ;;  %v815_v57 = vld [vmem:[#allocation11 + $0x7a8] sm:$0xff] }
  0xda   : > { %880 = vmatpush.msra.mxu2 %v746_v62  ;;  %900 = vmatpush.msra.mxu3 %v810_v63  ;;  %v698_v46 = vld [vmem:[#allocation11 + $0x400] sm:$0xff]  ;;  %v619_v58 = vld [vmem:[#allocation11 + $0x188] sm:$0xff] }
  0xdb   : > { %843 = vmatpush.msra.mxu0 %v606_v3  ;;  %863 = vmatpush.msra.mxu1 %v670_v4  ;;  %v762_v47 = vld [vmem:[#allocation11 + $0x600] sm:$0xff]  ;;  %v683_v59 = vld [vmem:[#allocation11 + $0x388] sm:$0xff] }
  0xdc   : > { %881 = vmatpush.msra.mxu2 %v742_v6  ;;  %901 = vmatpush.msra.mxu3 %v806_v7  ;;  %v747_v60 = vld [vmem:[#allocation11 + $0x588] sm:$0xff] }
  0xdd   : > { %844 = vmatpush.msra.mxu0 %v602_v10  ;;  %864 = vmatpush.msra.mxu1 %v666_v11  ;;  %v811_v61 = vld [vmem:[#allocation11 + $0x788] sm:$0xff] }
  0xde   : > { %882 = vmatpush.msra.mxu2 %v738_v8  ;;  %902 = vmatpush.msra.mxu3 %v802_v9  ;;  %v615_v62 = vld [vmem:[#allocation11 + $0x168] sm:$0xff] }
  0xdf   : > { %845 = vmatpush.msra.mxu0 %v598_v14  ;;  %865 = vmatpush.msra.mxu1 %v662_v15  ;;  %v679_v63 = vld [vmem:[#allocation11 + $0x368] sm:$0xff] }
  0xe0   : > { %883 = vmatpush.msra.mxu2 %v734_v12  ;;  %903 = vmatpush.msra.mxu3 %v798_v13  ;;  %v743_v2 = vld [vmem:[#allocation11 + $0x568] sm:$0xff] }
  0xe1   : > { %846 = vmatpush.msra.mxu0 %v594_v18  ;;  %866 = vmatpush.msra.mxu1 %v658_v19  ;;  %v807_v5 = vld [vmem:[#allocation11 + $0x768] sm:$0xff] }
  0xe2   : > { %884 = vmatpush.msra.mxu2 %v730_v16  ;;  %904 = vmatpush.msra.mxu3 %v794_v17  ;;  %v611_v6 = vld [vmem:[#allocation11 + $0x148] sm:$0xff] }
  0xe3   : > { %847 = vmatpush.msra.mxu0 %v590_v21  ;;  %867 = vmatpush.msra.mxu1 %v654_v22  ;;  %v675_v7 = vld [vmem:[#allocation11 + $0x348] sm:$0xff] }
  0xe4   : > { %885 = vmatpush.msra.mxu2 %v726_v1  ;;  %905 = vmatpush.msra.mxu3 %v790_v20  ;;  %v739_v3 = vld [vmem:[#allocation11 + $0x548] sm:$0xff] }
  0xe5   : > { %848 = vmatpush.msra.mxu0 %v586_v24  ;;  %868 = vmatpush.msra.mxu1 %v650_v25  ;;  %v803_v4 = vld [vmem:[#allocation11 + $0x748] sm:$0xff] }
  0xe6   : > { %886 = vmatpush.msra.mxu2 %v722_v23  ;;  %906 = vmatpush.msra.mxu3 %v786_v0  ;;  %v607_v8 = vld [vmem:[#allocation11 + $0x128] sm:$0xff] }
  0xe7   : > { %849 = vmatpush.msra.mxu0 %v582_v28  ;;  %869 = vmatpush.msra.mxu1 %v646_v29  ;;  %v671_v9 = vld [vmem:[#allocation11 + $0x328] sm:$0xff] }
  0xe8   : > { %887 = vmatpush.msra.mxu2 %v718_v26  ;;  %907 = vmatpush.msra.mxu3 %v782_v27  ;;  %v735_v10 = vld [vmem:[#allocation11 + $0x528] sm:$0xff] }
  0xe9   : > { %850 = vmatpush.msra.mxu0 %v578_v32  ;;  %870 = vmatpush.msra.mxu1 %v642_v33  ;;  %v799_v11 = vld [vmem:[#allocation11 + $0x728] sm:$0xff] }
  0xea   : > { %888 = vmatpush.msra.mxu2 %v714_v30  ;;  %908 = vmatpush.msra.mxu3 %v778_v31  ;;  %v603_v12 = vld [vmem:[#allocation11 + $0x108] sm:$0xff] }
  0xeb   : > { %851 = vmatpush.msra.mxu0 %v574_v36  ;;  %871 = vmatpush.msra.mxu1 %v638_v37  ;;  %v667_v13 = vld [vmem:[#allocation11 + $0x308] sm:$0xff] }
  0xec   : > { %889 = vmatpush.msra.mxu2 %v710_v34  ;;  %909 = vmatpush.msra.mxu3 %v774_v35  ;;  %v731_v14 = vld [vmem:[#allocation11 + $0x508] sm:$0xff] }
  0xed   : > { %852 = vmatpush.msra.mxu0 %v570_v40  ;;  %872 = vmatpush.msra.mxu1 %v634_v41  ;;  %v795_v15 = vld [vmem:[#allocation11 + $0x708] sm:$0xff] }
  0xee   : > { %890 = vmatpush.msra.mxu2 %v706_v38  ;;  %910 = vmatpush.msra.mxu3 %v770_v39  ;;  %v599_v16 = vld [vmem:[#allocation11 + $0xe8] sm:$0xff] }
  0xef   : > { %917 = vmatpush.msrb.mxu0 %v631_v44  ;;  %937 = vmatpush.msrb.mxu1 %v695_v45  ;;  %v663_v17 = vld [vmem:[#allocation11 + $0x2e8] sm:$0xff] }
  0xf0   : > { %891 = vmatpush.msra.mxu2 %v702_v42  ;;  %911 = vmatpush.msra.mxu3 %v766_v43  ;;  %v727_v18 = vld [vmem:[#allocation11 + $0x4e8] sm:$0xff] }
  0xf1   : > { %918 = vmatpush.msrb.mxu0 %v627_v50  ;;  %938 = vmatpush.msrb.mxu1 %v691_v51  ;;  %v791_v19 = vld [vmem:[#allocation11 + $0x6e8] sm:$0xff]  ;;  %v756_v50 = vld [vmem:[#allocation11 + $0x5d0] sm:$0xff] }
  0xf2   : > { %892 = vmatpush.msra.mxu2 %v698_v46  ;;  %912 = vmatpush.msra.mxu3 %v762_v47  ;;  %v595_v1 = vld [vmem:[#allocation11 + $0xc8] sm:$0xff]  ;;  %v760_v46 = vld [vmem:[#allocation11 + $0x5f0] sm:$0xff] }
  0xf3   : > { %919 = vmatpush.msrb.mxu0 %v623_v54  ;;  %939 = vmatpush.msrb.mxu1 %v687_v55  ;;  %v659_v20 = vld [vmem:[#allocation11 + $0x2c8] sm:$0xff]  ;;  %v824_v47 = vld [vmem:[#allocation11 + $0x7f0] sm:$0xff] }
  0xf4   : > { %957 = vmatpush.msrb.mxu2 %v759_v48  ;;  %977 = vmatpush.msrb.mxu3 %v823_v49  ;;  %v723_v21 = vld [vmem:[#allocation11 + $0x4c8] sm:$0xff]  ;;  %v3592_v51 = vld.sshfl [vmem:[#allocation1] sm:$0xff pattern:$0x75316420] }
  0xf5   : > { %920 = vmatpush.msrb.mxu0 %v619_v58  ;;  %940 = vmatpush.msrb.mxu1 %v683_v59  ;;  %v787_v22 = vld [vmem:[#allocation11 + $0x6c8] sm:$0xff]  ;;  %v696_v54 = vld [vmem:[#allocation11 + $0x3f0] sm:$0xff] }
  0xf6   : > { %958 = vmatpush.msrb.mxu2 %v755_v52  ;;  %978 = vmatpush.msrb.mxu3 %v819_v53  ;;  %v591_v23 = vld [vmem:[#allocation11 + $0xa8] sm:$0xff]  ;;  %v3594_v52 = vld.sshfl [vmem:[#allocation1 + $0x8] sm:$0xff pattern:$0x75316420]  ;;  %v632_v53 = vld [vmem:[#allocation11 + $0x1f0] sm:$0xff] }
  0xf7   : > { %921 = vmatpush.msrb.mxu0 %v615_v62  ;;  %941 = vmatpush.msrb.mxu1 %v679_v63  ;;  %v655_v0 = vld [vmem:[#allocation11 + $0x2a8] sm:$0xff]  ;;  %v752_v55 = vld [vmem:[#allocation11 + $0x5b0] sm:$0xff] }
  0xf8   : > { %959 = vmatpush.msrb.mxu2 %v751_v56  ;;  %979 = vmatpush.msrb.mxu3 %v815_v57  ;;  %v719_v24 = vld [vmem:[#allocation11 + $0x4a8] sm:$0xff]  ;;  %v820_v56 = vld [vmem:[#allocation11 + $0x7d0] sm:$0xff] }
  0xf9   : > { %922 = vmatpush.msrb.mxu0 %v611_v6  ;;  %942 = vmatpush.msrb.mxu1 %v675_v7  ;;  %v783_v25 = vld [vmem:[#allocation11 + $0x6a8] sm:$0xff]  ;;  %v628_v57 = vld [vmem:[#allocation11 + $0x1d0] sm:$0xff] }
  0xfa   : > { %960 = vmatpush.msrb.mxu2 %v747_v60  ;;  %980 = vmatpush.msrb.mxu3 %v811_v61  ;;  %v587_v26 = vld [vmem:[#allocation11 + $0x88] sm:$0xff]  ;;  %v692_v58 = vld [vmem:[#allocation11 + $0x3d0] sm:$0xff] }
  0xfb   : > { %923 = vmatpush.msrb.mxu0 %v607_v8  ;;  %943 = vmatpush.msrb.mxu1 %v671_v9  ;;  %v651_v27 = vld [vmem:[#allocation11 + $0x288] sm:$0xff]  ;;  %v748_v59 = vld [vmem:[#allocation11 + $0x590] sm:$0xff] }
  0xfc   : > { %961 = vmatpush.msrb.mxu2 %v743_v2  ;;  %981 = vmatpush.msrb.mxu3 %v807_v5  ;;  %v715_v28 = vld [vmem:[#allocation11 + $0x488] sm:$0xff]  ;;  %v816_v60 = vld [vmem:[#allocation11 + $0x7b0] sm:$0xff] }
  0xfd   : > { %924 = vmatpush.msrb.mxu0 %v603_v12  ;;  %944 = vmatpush.msrb.mxu1 %v667_v13  ;;  %v779_v29 = vld [vmem:[#allocation11 + $0x688] sm:$0xff]  ;;  %v624_v61 = vld [vmem:[#allocation11 + $0x1b0] sm:$0xff] }
  0xfe   : > { %962 = vmatpush.msrb.mxu2 %v739_v3  ;;  %982 = vmatpush.msrb.mxu3 %v803_v4  ;;  %v583_v30 = vld [vmem:[#allocation11 + $0x68] sm:$0xff]  ;;  %v688_v62 = vld [vmem:[#allocation11 + $0x3b0] sm:$0xff] }
  0xff   : > { %925 = vmatpush.msrb.mxu0 %v599_v16  ;;  %945 = vmatpush.msrb.mxu1 %v663_v17  ;;  %v647_v31 = vld [vmem:[#allocation11 + $0x268] sm:$0xff]  ;;  %v744_v63 = vld [vmem:[#allocation11 + $0x570] sm:$0xff] }
 0x100   : > { %963 = vmatpush.msrb.mxu2 %v735_v10  ;;  %983 = vmatpush.msrb.mxu3 %v799_v11  ;;  %v711_v32 = vld [vmem:[#allocation11 + $0x468] sm:$0xff]  ;;  %v812_v2 = vld [vmem:[#allocation11 + $0x790] sm:$0xff] }
 0x101   : > { %926 = vmatpush.msrb.mxu0 %v595_v1  ;;  %946 = vmatpush.msrb.mxu1 %v659_v20  ;;  %v775_v33 = vld [vmem:[#allocation11 + $0x668] sm:$0xff]  ;;  %v620_v5 = vld [vmem:[#allocation11 + $0x190] sm:$0xff] }
 0x102   : > { %964 = vmatpush.msrb.mxu2 %v731_v14  ;;  %984 = vmatpush.msrb.mxu3 %v795_v15  ;;  %v579_v34 = vld [vmem:[#allocation11 + $0x48] sm:$0xff]  ;;  %v684_v6 = vld [vmem:[#allocation11 + $0x390] sm:$0xff] }
 0x103   : > { %927 = vmatpush.msrb.mxu0 %v591_v23  ;;  %947 = vmatpush.msrb.mxu1 %v655_v0  ;;  %v643_v35 = vld [vmem:[#allocation11 + $0x248] sm:$0xff]  ;;  %v740_v7 = vld [vmem:[#allocation11 + $0x550] sm:$0xff] }
 0x104   : > { %965 = vmatpush.msrb.mxu2 %v727_v18  ;;  %985 = vmatpush.msrb.mxu3 %v791_v19  ;;  %v707_v36 = vld [vmem:[#allocation11 + $0x448] sm:$0xff]  ;;  %v808_v3 = vld [vmem:[#allocation11 + $0x770] sm:$0xff] }
 0x105   : > { %928 = vmatpush.msrb.mxu0 %v587_v26  ;;  %948 = vmatpush.msrb.mxu1 %v651_v27  ;;  %v771_v37 = vld [vmem:[#allocation11 + $0x648] sm:$0xff]  ;;  %v616_v4 = vld [vmem:[#allocation11 + $0x170] sm:$0xff] }
 0x106   : > { %966 = vmatpush.msrb.mxu2 %v723_v21  ;;  %986 = vmatpush.msrb.mxu3 %v787_v22  ;;  %v3586_v38 = vld.sshfl [vmem:[#allocation1 + $0x10] sm:$0xff pattern:$0x75316420]  ;;  %v3588_v43 = vld.sshfl [vmem:[#allocation1 + $0x18] sm:$0xff pattern:$0x75316420] }
 0x107   : > { %929 = vmatpush.msrb.mxu0 %v583_v30  ;;  %949 = vmatpush.msrb.mxu1 %v647_v31  ;;  %v575_v39 = vld [vmem:[#allocation11 + $0x28] sm:$0xff]  ;;  %v680_v8 = vld [vmem:[#allocation11 + $0x370] sm:$0xff] }
 0x108   : > { %967 = vmatpush.msrb.mxu2 %v719_v24  ;;  %987 = vmatpush.msrb.mxu3 %v783_v25  ;;  %v703_v40 = vld [vmem:[#allocation11 + $0x428] sm:$0xff]  ;;  %v736_v9 = vld [vmem:[#allocation11 + $0x530] sm:$0xff] }
 0x109   : > { %930 = vmatpush.msrb.mxu0 %v579_v34  ;;  %950 = vmatpush.msrb.mxu1 %v643_v35  ;;  %v767_v41 = vld [vmem:[#allocation11 + $0x628] sm:$0xff]  ;;  %v804_v10 = vld [vmem:[#allocation11 + $0x750] sm:$0xff] }
 0x10a   : > { %968 = vmatpush.msrb.mxu2 %v715_v28  ;;  %988 = vmatpush.msrb.mxu3 %v779_v29  ;;  %v639_v42 = vld [vmem:[#allocation11 + $0x228] sm:$0xff]  ;;  %v612_v11 = vld [vmem:[#allocation11 + $0x150] sm:$0xff] }
 0x10b   : > { %v699_v44 = vld [vmem:[#allocation11 + $0x408] sm:$0xff]  ;;  %893 = vmatmul.f32.vlgmr.msra.gmra.mxu2 %v3586_v38  ;;  %931 = vmatpush.msrb.mxu0 %v575_v39  ;;  %v676_v12 = vld [vmem:[#allocation11 + $0x350] sm:$0xff] }
 0x10c   : > { %969 = vmatpush.msrb.mxu2 %v711_v32  ;;  %989 = vmatpush.msrb.mxu3 %v775_v33  ;;  %v763_v45 = vld [vmem:[#allocation11 + $0x608] sm:$0xff]  ;;  %v732_v13 = vld [vmem:[#allocation11 + $0x510] sm:$0xff] }
 0x10d   : > { %951 = vmatpush.msrb.mxu1 %v639_v42  ;;  %913 = vmatmul.f32.vlgmr.msra.gmra.mxu3 %v3588_v43  ;;  %v571_v48 = vld [vmem:[#allocation11 + $0x8] sm:$0xff]  ;;  %v800_v14 = vld [vmem:[#allocation11 + $0x730] sm:$0xff] }
 0x10e   : > { %970 = vmatpush.msrb.mxu2 %v707_v36  ;;  %990 = vmatpush.msrb.mxu3 %v771_v37  ;;  %v635_v49 = vld [vmem:[#allocation11 + $0x208] sm:$0xff]  ;;  %v608_v15 = vld [vmem:[#allocation11 + $0x130] sm:$0xff] }
 0x10f   : > { %932 = vmatpush.msrb.mxu0 %v571_v48  ;;  %952 = vmatpush.msrb.mxu1 %v635_v49  ;;  %v672_v16 = vld [vmem:[#allocation11 + $0x330] sm:$0xff] }
 0x110   : > { %971 = vmatpush.msrb.mxu2 %v703_v40  ;;  %991 = vmatpush.msrb.mxu3 %v767_v41  ;;  %v728_v17 = vld [vmem:[#allocation11 + $0x4f0] sm:$0xff] }
 0x111   : > { %853 = vmatmul.f32.vlgmr.msra.gmra.mxu0 %v3592_v51  ;;  %873 = vmatmul.f32.vlgmr.msra.gmra.mxu1 %v3594_v52  ;;  %v796_v18 = vld [vmem:[#allocation11 + $0x710] sm:$0xff] }
 0x112   : > { %972 = vmatpush.msrb.mxu2 %v699_v44  ;;  %992 = vmatpush.msrb.mxu3 %v763_v45  ;;  %v604_v19 = vld [vmem:[#allocation11 + $0x110] sm:$0xff] }
 0x113   : > { %997 = vmatpush.msra.mxu0 %v632_v53  ;;  %1017 = vmatpush.msra.mxu1 %v696_v54  ;;  %v668_v1 = vld [vmem:[#allocation11 + $0x310] sm:$0xff]  ;;  %v757_v53 = vld [vmem:[#allocation11 + $0x5d8] sm:$0xff] }
 0x114   : > { %1037 = vmatpush.msra.mxu2 %v760_v46  ;;  %1057 = vmatpush.msra.mxu3 %v824_v47  ;;  %v724_v20 = vld [vmem:[#allocation11 + $0x4d0] sm:$0xff]  ;;  %v761_v47 = vld [vmem:[#allocation11 + $0x5f8] sm:$0xff] }
 0x115   : > { %998 = vmatpush.msra.mxu0 %v628_v57  ;;  %1018 = vmatpush.msra.mxu1 %v692_v58  ;;  %v792_v21 = vld [vmem:[#allocation11 + $0x6f0] sm:$0xff]  ;;  %v825_v54 = vld [vmem:[#allocation11 + $0x7f8] sm:$0xff] }
 0x116   : > { %1038 = vmatpush.msra.mxu2 %v756_v50  ;;  %1058 = vmatpush.msra.mxu3 %v820_v56  ;;  %v600_v22 = vld [vmem:[#allocation11 + $0xf0] sm:$0xff]  ;;  %v633_v57 = vld [vmem:[#allocation11 + $0x1f8] sm:$0xff] }
 0x117   : > { %973 = vmatmul.f32.vlgmr.msrb.gmra.mxu2 %v3586_v38  ;;  %999 = vmatpush.msra.mxu0 %v624_v61  ;;  %v664_v23 = vld [vmem:[#allocation11 + $0x2f0] sm:$0xff]  ;;  %v697_v58 = vld [vmem:[#allocation11 + $0x3f8] sm:$0xff] }
 0x118   : > { %1039 = vmatpush.msra.mxu2 %v752_v55  ;;  %1059 = vmatpush.msra.mxu3 %v816_v60  ;;  %v720_v0 = vld [vmem:[#allocation11 + $0x4b0] sm:$0xff]  ;;  %v821_v60 = vld [vmem:[#allocation11 + $0x7d8] sm:$0xff] }
 0x119   : > { %1019 = vmatpush.msra.mxu1 %v688_v62  ;;  %993 = vmatmul.f32.vlgmr.msrb.gmra.mxu3 %v3588_v43  ;;  %v788_v24 = vld [vmem:[#allocation11 + $0x6d0] sm:$0xff]  ;;  %v629_v61 = vld [vmem:[#allocation11 + $0x1d8] sm:$0xff] }
 0x11a   : > { %1040 = vmatpush.msra.mxu2 %v748_v59  ;;  %1060 = vmatpush.msra.mxu3 %v812_v2  ;;  %v596_v25 = vld [vmem:[#allocation11 + $0xd0] sm:$0xff]  ;;  %v753_v59 = vld [vmem:[#allocation11 + $0x5b8] sm:$0xff] }
 0x11b   : > { %1000 = vmatpush.msra.mxu0 %v620_v5  ;;  %1020 = vmatpush.msra.mxu1 %v684_v6  ;;  %v660_v26 = vld [vmem:[#allocation11 + $0x2d0] sm:$0xff]  ;;  %v693_v62 = vld [vmem:[#allocation11 + $0x3d8] sm:$0xff] }
 0x11c   : > { %1041 = vmatpush.msra.mxu2 %v744_v63  ;;  %1061 = vmatpush.msra.mxu3 %v808_v3  ;;  %v716_v27 = vld [vmem:[#allocation11 + $0x490] sm:$0xff]  ;;  %v749_v63 = vld [vmem:[#allocation11 + $0x598] sm:$0xff] }
 0x11d   : > { %933 = vmatmul.f32.vlgmr.msrb.gmra.mxu0 %v3592_v51  ;;  %953 = vmatmul.f32.vlgmr.msrb.gmra.mxu1 %v3594_v52  ;;  %v784_v28 = vld [vmem:[#allocation11 + $0x6b0] sm:$0xff]  ;;  %v817_v2 = vld [vmem:[#allocation11 + $0x7b8] sm:$0xff] }
 0x11e   : > { %1042 = vmatpush.msra.mxu2 %v740_v7  ;;  %1001 = vmatpush.msra.mxu0 %v616_v4  ;;  %v592_v29 = vld [vmem:[#allocation11 + $0xb0] sm:$0xff]  ;;  %v625_v5 = vld [vmem:[#allocation11 + $0x1b8] sm:$0xff] }
 0x11f   : > { %1021 = vmatpush.msra.mxu1 %v680_v8  ;;  %1062 = vmatpush.msra.mxu3 %v804_v10  ;;  %v656_v30 = vld [vmem:[#allocation11 + $0x2b0] sm:$0xff]  ;;  %v689_v6 = vld [vmem:[#allocation11 + $0x3b8] sm:$0xff] }
 0x120   : > { %1043 = vmatpush.msra.mxu2 %v736_v9  ;;  %1002 = vmatpush.msra.mxu0 %v612_v11  ;;  %v712_v31 = vld [vmem:[#allocation11 + $0x470] sm:$0xff]  ;;  %v745_v7 = vld [vmem:[#allocation11 + $0x578] sm:$0xff] }
 0x121   : > { %1022 = vmatpush.msra.mxu1 %v676_v12  ;;  %1063 = vmatpush.msra.mxu3 %v800_v14  ;;  %v780_v32 = vld [vmem:[#allocation11 + $0x690] sm:$0xff]  ;;  %v813_v3 = vld [vmem:[#allocation11 + $0x798] sm:$0xff] }
 0x122   : > { %1044 = vmatpush.msra.mxu2 %v732_v13  ;;  %1003 = vmatpush.msra.mxu0 %v608_v15  ;;  %v588_v33 = vld [vmem:[#allocation11 + $0x90] sm:$0xff]  ;;  %v621_v4 = vld [vmem:[#allocation11 + $0x198] sm:$0xff] }
 0x123   : > { %1023 = vmatpush.msra.mxu1 %v672_v16  ;;  %1064 = vmatpush.msra.mxu3 %v796_v18  ;;  %v652_v34 = vld [vmem:[#allocation11 + $0x290] sm:$0xff]  ;;  %v685_v8 = vld [vmem:[#allocation11 + $0x398] sm:$0xff] }
 0x124   : > { %1045 = vmatpush.msra.mxu2 %v728_v17  ;;  %1004 = vmatpush.msra.mxu0 %v604_v19  ;;  %v708_v35 = vld [vmem:[#allocation11 + $0x450] sm:$0xff]  ;;  %v741_v9 = vld [vmem:[#allocation11 + $0x558] sm:$0xff] }
 0x125   : > { %1024 = vmatpush.msra.mxu1 %v668_v1  ;;  %1065 = vmatpush.msra.mxu3 %v792_v21  ;;  %v776_v36 = vld [vmem:[#allocation11 + $0x670] sm:$0xff]  ;;  %v809_v10 = vld [vmem:[#allocation11 + $0x778] sm:$0xff] }
 0x126   : > { %1046 = vmatpush.msra.mxu2 %v724_v20  ;;  %1005 = vmatpush.msra.mxu0 %v600_v22  ;;  %v584_v37 = vld [vmem:[#allocation11 + $0x70] sm:$0xff]  ;;  %v617_v11 = vld [vmem:[#allocation11 + $0x178] sm:$0xff] }
 0x127   : > { %1025 = vmatpush.msra.mxu1 %v664_v23  ;;  %1066 = vmatpush.msra.mxu3 %v788_v24  ;;  %v648_v39 = vld [vmem:[#allocation11 + $0x270] sm:$0xff]  ;;  %v681_v12 = vld [vmem:[#allocation11 + $0x378] sm:$0xff] }
 0x128   : > { %1047 = vmatpush.msra.mxu2 %v720_v0  ;;  %1006 = vmatpush.msra.mxu0 %v596_v25  ;;  %v704_v40 = vld [vmem:[#allocation11 + $0x430] sm:$0xff]  ;;  %v737_v13 = vld [vmem:[#allocation11 + $0x538] sm:$0xff] }
 0x129   : > { %1026 = vmatpush.msra.mxu1 %v660_v26  ;;  %1067 = vmatpush.msra.mxu3 %v784_v28  ;;  %v772_v41 = vld [vmem:[#allocation11 + $0x650] sm:$0xff]  ;;  %v805_v14 = vld [vmem:[#allocation11 + $0x758] sm:$0xff] }
 0x12a   : > { %1048 = vmatpush.msra.mxu2 %v716_v27  ;;  %1007 = vmatpush.msra.mxu0 %v592_v29  ;;  %v580_v42 = vld [vmem:[#allocation11 + $0x50] sm:$0xff]  ;;  %v613_v15 = vld [vmem:[#allocation11 + $0x158] sm:$0xff] }
 0x12b   : > { %1027 = vmatpush.msra.mxu1 %v656_v30  ;;  %1068 = vmatpush.msra.mxu3 %v780_v32  ;;  %v644_v44 = vld [vmem:[#allocation11 + $0x250] sm:$0xff]  ;;  %v677_v16 = vld [vmem:[#allocation11 + $0x358] sm:$0xff] }
 0x12c   : > { %1049 = vmatpush.msra.mxu2 %v712_v31  ;;  %1008 = vmatpush.msra.mxu0 %v588_v33  ;;  %v700_v45 = vld [vmem:[#allocation11 + $0x410] sm:$0xff]  ;;  %v733_v17 = vld [vmem:[#allocation11 + $0x518] sm:$0xff] }
 0x12d   : > { %1028 = vmatpush.msra.mxu1 %v652_v34  ;;  %1069 = vmatpush.msra.mxu3 %v776_v36  ;;  %v768_v46 = vld [vmem:[#allocation11 + $0x630] sm:$0xff]  ;;  %v801_v18 = vld [vmem:[#allocation11 + $0x738] sm:$0xff] }
 0x12e   : > { %1050 = vmatpush.msra.mxu2 %v708_v35  ;;  %1009 = vmatpush.msra.mxu0 %v584_v37  ;;  %v576_v48 = vld [vmem:[#allocation11 + $0x30] sm:$0xff]  ;;  %v609_v19 = vld [vmem:[#allocation11 + $0x138] sm:$0xff] }
 0x12f   : > { %1029 = vmatpush.msra.mxu1 %v648_v39  ;;  %1070 = vmatpush.msra.mxu3 %v772_v41  ;;  %v640_v49 = vld [vmem:[#allocation11 + $0x230] sm:$0xff]  ;;  %v673_v1 = vld [vmem:[#allocation11 + $0x338] sm:$0xff] }
 0x130   : > { %1051 = vmatpush.msra.mxu2 %v704_v40  ;;  %1010 = vmatpush.msra.mxu0 %v580_v42  ;;  %v764_v50 = vld [vmem:[#allocation11 + $0x610] sm:$0xff]  ;;  %v729_v20 = vld [vmem:[#allocation11 + $0x4f8] sm:$0xff] }
 0x131   : > { %1030 = vmatpush.msra.mxu1 %v644_v44  ;;  %1071 = vmatpush.msra.mxu3 %v768_v46  ;;  %v572_v55 = vld [vmem:[#allocation11 + $0x10] sm:$0xff]  ;;  %v797_v21 = vld [vmem:[#allocation11 + $0x718] sm:$0xff] }
 0x132   : > { %1052 = vmatpush.msra.mxu2 %v700_v45  ;;  %1011 = vmatpush.msra.mxu0 %v576_v48  ;;  %v636_v56 = vld [vmem:[#allocation11 + $0x210] sm:$0xff]  ;;  %v605_v22 = vld [vmem:[#allocation11 + $0x118] sm:$0xff] }
 0x133   : > { %1031 = vmatpush.msra.mxu1 %v640_v49  ;;  %1072 = vmatpush.msra.mxu3 %v764_v50  ;;  %v669_v23 = vld [vmem:[#allocation11 + $0x318] sm:$0xff] }
 0x134   : > { %1117 = vmatpush.msrb.mxu2 %v761_v47  ;;  %1012 = vmatpush.msra.mxu0 %v572_v55  ;;  %v725_v0 = vld [vmem:[#allocation11 + $0x4d8] sm:$0xff] }
 0x135   : > { %1137 = vmatpush.msrb.mxu3 %v825_v54  ;;  %1032 = vmatpush.msra.mxu1 %v636_v56  ;;  %v793_v24 = vld [vmem:[#allocation11 + $0x6f8] sm:$0xff] }
 0x136   : > { %1118 = vmatpush.msrb.mxu2 %v757_v53  ;;  %1077 = vmatpush.msrb.mxu0 %v633_v57  ;;  %v601_v25 = vld [vmem:[#allocation11 + $0xf8] sm:$0xff] }
 0x137   : > { %1097 = vmatpush.msrb.mxu1 %v697_v58  ;;  %1138 = vmatpush.msrb.mxu3 %v821_v60  ;;  %v665_v26 = vld [vmem:[#allocation11 + $0x2f8] sm:$0xff] }
 0x138   : > { %1119 = vmatpush.msrb.mxu2 %v753_v59  ;;  %1078 = vmatpush.msrb.mxu0 %v629_v61  ;;  %v721_v27 = vld [vmem:[#allocation11 + $0x4b8] sm:$0xff] }
 0x139   : > { %1098 = vmatpush.msrb.mxu1 %v693_v62  ;;  %1139 = vmatpush.msrb.mxu3 %v817_v2  ;;  %v789_v28 = vld [vmem:[#allocation11 + $0x6d8] sm:$0xff] }
 0x13a   : > { %1120 = vmatpush.msrb.mxu2 %v749_v63  ;;  %1079 = vmatpush.msrb.mxu0 %v625_v5  ;;  %v597_v29 = vld [vmem:[#allocation11 + $0xd8] sm:$0xff] }
 0x13b   : > { %1099 = vmatpush.msrb.mxu1 %v689_v6  ;;  %1140 = vmatpush.msrb.mxu3 %v813_v3  ;;  %v661_v30 = vld [vmem:[#allocation11 + $0x2d8] sm:$0xff] }
 0x13c   : > { %1121 = vmatpush.msrb.mxu2 %v745_v7  ;;  %1080 = vmatpush.msrb.mxu0 %v621_v4  ;;  %v717_v31 = vld [vmem:[#allocation11 + $0x498] sm:$0xff] }
 0x13d   : > { %1100 = vmatpush.msrb.mxu1 %v685_v8  ;;  %1141 = vmatpush.msrb.mxu3 %v809_v10  ;;  %v785_v32 = vld [vmem:[#allocation11 + $0x6b8] sm:$0xff] }
 0x13e   : > { %1122 = vmatpush.msrb.mxu2 %v741_v9  ;;  %1081 = vmatpush.msrb.mxu0 %v617_v11  ;;  %v593_v33 = vld [vmem:[#allocation11 + $0xb8] sm:$0xff] }
 0x13f   : > { %1101 = vmatpush.msrb.mxu1 %v681_v12  ;;  %1142 = vmatpush.msrb.mxu3 %v805_v14  ;;  %v657_v34 = vld [vmem:[#allocation11 + $0x2b8] sm:$0xff] }
 0x140   : > { %1123 = vmatpush.msrb.mxu2 %v737_v13  ;;  %1082 = vmatpush.msrb.mxu0 %v613_v15  ;;  %v713_v35 = vld [vmem:[#allocation11 + $0x478] sm:$0xff] }
 0x141   : > { %1102 = vmatpush.msrb.mxu1 %v677_v16  ;;  %1143 = vmatpush.msrb.mxu3 %v801_v18  ;;  %v781_v36 = vld [vmem:[#allocation11 + $0x698] sm:$0xff] }
 0x142   : > { %1124 = vmatpush.msrb.mxu2 %v733_v17  ;;  %1083 = vmatpush.msrb.mxu0 %v609_v19  ;;  %v589_v37 = vld [vmem:[#allocation11 + $0x98] sm:$0xff] }
 0x143   : > { %1103 = vmatpush.msrb.mxu1 %v673_v1  ;;  %1144 = vmatpush.msrb.mxu3 %v797_v21  ;;  %v653_v39 = vld [vmem:[#allocation11 + $0x298] sm:$0xff] }
 0x144   : > { %1125 = vmatpush.msrb.mxu2 %v729_v20  ;;  %1084 = vmatpush.msrb.mxu0 %v605_v22  ;;  %v709_v40 = vld [vmem:[#allocation11 + $0x458] sm:$0xff] }
 0x145   : > { %1104 = vmatpush.msrb.mxu1 %v669_v23  ;;  %1145 = vmatpush.msrb.mxu3 %v793_v24  ;;  %v777_v41 = vld [vmem:[#allocation11 + $0x678] sm:$0xff] }
 0x146   : > { %1126 = vmatpush.msrb.mxu2 %v725_v0  ;;  %1085 = vmatpush.msrb.mxu0 %v601_v25  ;;  %v585_v42 = vld [vmem:[#allocation11 + $0x78] sm:$0xff] }
 0x147   : > { %1105 = vmatpush.msrb.mxu1 %v665_v26  ;;  %1146 = vmatpush.msrb.mxu3 %v789_v28  ;;  %v649_v44 = vld [vmem:[#allocation11 + $0x278] sm:$0xff] }
 0x148   : > { %1127 = vmatpush.msrb.mxu2 %v721_v27  ;;  %1086 = vmatpush.msrb.mxu0 %v597_v29  ;;  %v705_v45 = vld [vmem:[#allocation11 + $0x438] sm:$0xff] }
 0x149   : > { %1106 = vmatpush.msrb.mxu1 %v661_v30  ;;  %1147 = vmatpush.msrb.mxu3 %v785_v32  ;;  %v773_v46 = vld [vmem:[#allocation11 + $0x658] sm:$0xff] }
 0x14a   : > { %1128 = vmatpush.msrb.mxu2 %v717_v31  ;;  %1087 = vmatpush.msrb.mxu0 %v593_v33  ;;  %v581_v47 = vld [vmem:[#allocation11 + $0x58] sm:$0xff] }
 0x14b   : > { %1053 = vmatmul.f32.vlgmr.msra.gmra.mxu2 %v3586_v38  ;;  %1107 = vmatpush.msrb.mxu1 %v657_v34  ;;  %v645_v48 = vld [vmem:[#allocation11 + $0x258] sm:$0xff]  ;;  %v473_v50 = vpop.f32.mrf.mxu0  ;;  %v493_v53 = vpop.f32.mrf.mxu1  ;;  %v3434_v34 = vmov 0.0  }
 0x14c   : > { %1129 = vmatpush.msrb.mxu2 %v713_v35  ;;  %1148 = vmatpush.msrb.mxu3 %v781_v36  ;;  %v701_v49 = vld [vmem:[#allocation11 + $0x418] sm:$0xff]  ;;  %v494_v58 = vadd.f32 %v493_v53, %v473_v50  ;;  %1218 = vst [vmem:[#allocation3 + $0x8] sm:$0x77] %v3434_v34 }
 0x14d   : > { %1073 = vmatmul.f32.vlgmr.msra.gmra.mxu3 %v3588_v43  ;;  %1088 = vmatpush.msrb.mxu0 %v589_v37  ;;  %v769_v54 = vld [vmem:[#allocation11 + $0x638] sm:$0xff]  ;;  %1219 = vst [vmem:[#allocation3] sm:$0x77] %v3434_v34 }
 0x14e   : > { %1108 = vmatpush.msrb.mxu1 %v653_v39  ;;  %1130 = vmatpush.msrb.mxu2 %v709_v40  ;;  %v577_v55 = vld [vmem:[#allocation11 + $0x38] sm:$0xff]  ;;  %1220 = vst [vmem:[#allocation4 + $0x8] sm:$0x77] %v3434_v34 }
 0x14f   : > { %1149 = vmatpush.msrb.mxu3 %v777_v41  ;;  %1013 = vmatmul.f32.vlgmr.msra.gmra.mxu0 %v3592_v51  ;;  %v641_v56 = vld [vmem:[#allocation11 + $0x238] sm:$0xff]  ;;  %1221 = vst [vmem:[#allocation4] sm:$0x77] %v3434_v34 }
 0x150   : > { %1033 = vmatmul.f32.vlgmr.msra.gmra.mxu1 %v3594_v52  ;;  %1089 = vmatpush.msrb.mxu0 %v585_v42  ;;  %v765_v57 = vld [vmem:[#allocation11 + $0x618] sm:$0xff] }
 0x151   : > { %1109 = vmatpush.msrb.mxu1 %v649_v44  ;;  %1131 = vmatpush.msrb.mxu2 %v705_v45  ;;  %v573_v59 = vld [vmem:[#allocation11 + $0x18] sm:$0xff] }
 0x152   : > { %1150 = vmatpush.msrb.mxu3 %v773_v46  ;;  %1090 = vmatpush.msrb.mxu0 %v581_v47  ;;  %v637_v60 = vld [vmem:[#allocation11 + $0x218] sm:$0xff] }
 0x153   : > { %1110 = vmatpush.msrb.mxu1 %v645_v48  ;;  %1132 = vmatpush.msrb.mxu2 %v701_v49 }
 0x154   : > { %1151 = vmatpush.msrb.mxu3 %v769_v54  ;;  %1133 = vmatmul.f32.vlgmr.msrb.gmra.mxu2 %v3586_v38 }
 0x155   : > { %1091 = vmatpush.msrb.mxu0 %v577_v55  ;;  %1111 = vmatpush.msrb.mxu1 %v641_v56 }
 0x156   : > { %1152 = vmatpush.msrb.mxu3 %v765_v57  ;;  %v513_v61 = vpop.f32.mrf.mxu2  ;;  %v533_v62 = vpop.f32.mrf.mxu3 }
 0x157   : > { %1153 = vmatmul.f32.vlgmr.msrb.gmra.mxu3 %v3588_v43  ;;  %1092 = vmatpush.msrb.mxu0 %v573_v59  ;;  %v514_v63 = vadd.f32 %v513_v61, %v494_v58 }
 0x158   : > { %1112 = vmatpush.msrb.mxu1 %v637_v60  ;;  %1093 = vmatmul.f32.vlgmr.msrb.gmra.mxu0 %v3592_v51 }
 0x159   : > { %1113 = vmatmul.f32.vlgmr.msrb.gmra.mxu1 %v3594_v52  ;;  %v3610_v2 = vadd.f32 %v533_v62, %v514_v63 }
 0x15b   : > { %v536_v38 = vmul.f32 %v3610_v2, %v3610_v2 }
 0x15d   : > { %v538_v5 = vsel %vm537_vm10, %v536_v38, 0.0 }
 0x15e   : > { %539 = vadd.xlane.f32.xlu2 %v538_v5 }
 0x18e   : > { %v854_v6 = vpop.f32.mrf.mxu0  ;;  %v874_v7 = vpop.f32.mrf.mxu1 }
 0x18f   : > { %v894_v3 = vpop.f32.mrf.mxu2  ;;  %v875_v4 = vadd.f32 %v874_v7, %v854_v6 }
 0x190   : > { %v914_v43 = vpop.f32.mrf.mxu3 }
 0x191   : > { %v895_v51 = vadd.f32 %v894_v3, %v875_v4 }
 0x193   : > { %v915_v13 = vadd.f32 %v914_v43, %v895_v51 }
 0x19a   : > { %v934_v8 = vpop.f32.mrf.mxu0  ;;  %v954_v9 = vpop.f32.mrf.mxu1 }
 0x19b   : > { %v974_v10 = vpop.f32.mrf.mxu2  ;;  %v955_v11 = vadd.f32 %v954_v9, %v934_v8 }
 0x19c   : > { %v994_v12 = vpop.f32.mrf.mxu3 }
 0x19d   : > { %v975_v52 = vadd.f32 %v974_v10, %v955_v11 }
 0x19f   : > { %v995_v14 = vadd.f32 %v994_v12, %v975_v52 }
 0x1a1   : > { %v1161_v15 = vrot.slane %v995_v14, 4 }
 0x1a3   : > { %v1164_v16 = vsel %vm1163_vm11, %v915_v13, %v1161_v15 }
 0x1a4   : > { %1168 = vst [vmem:[#allocation6] sm:$0x77] %v1164_v16 }
 0x1cc   : > { %v1014_v17 = vpop.f32.mrf.mxu0 }
 0x1cd   : > { %v1034_v18 = vpop.f32.mrf.mxu1 }
 0x1ce   : > { %v1054_v19 = vpop.f32.mrf.mxu2  ;;  %v1035_v21 = vadd.f32 %v1034_v18, %v1014_v17 }
 0x1d0   : > { %v1074_v1 = vpop.f32.mrf.mxu3  ;;  %v1055_v0 = vadd.f32 %v1054_v19, %v1035_v21 }
 0x1d1   : > { %v540_v20 = vpop.xlane.xlu2 %539 }
 0x1d2   : > { %3269 = vrsqrt.f32 %v540_v20  ;;  %v1075_v30 = vadd.f32 %v1074_v1, %v1055_v0  ;;  %vm548_vm12 = vcmp.eq.f32.partialorder %v540_v20, inf  ;;  %v551_v41 = vand.u32 2147483648, %v540_v20 }
 0x1d3   : > { %vm550_vm13 = vcmp.eq.f32.partialorder %v540_v20, 0.0 }
 0x1d5   : > { %v1094_v22 = vpop.f32.mrf.mxu0 }
 0x1d6   : > { %v1114_v23 = vpop.f32.mrf.mxu1 }
 0x1d7   : > { %v1115_v24 = vadd.f32 %v1114_v23, %v1094_v22  ;;  %v1134_v25 = vpop.f32.mrf.mxu2 }
 0x1d8   : > { %v3270_v26 = vpop.eup %3269 }
 0x1d9   : > { %v1135_v27 = vadd.f32 %v1134_v25, %v1115_v24  ;;  %v542_v28 = vmul.f32 %v3270_v26, %v540_v20 }
 0x1da   : > { %v1154_v29 = vpop.f32.mrf.mxu3 }
 0x1db   : > { %v1155_v31 = vadd.f32 %v1154_v29, %v1135_v27  ;;  %v543_v32 = vmul.f32 %v3270_v26, %v542_v28 }
 0x1dd   : > { %v1162_v33 = vrot.slane %v1155_v31, 4  ;;  %v544_v35 = vmul.f32 0.5, %v543_v32 }
 0x1df   : > { %v1165_v36 = vsel %vm1163_vm11, %v1075_v30, %v1162_v33  ;;  %v545_v37 = vsub.f32 1.5, %v544_v35 }
 0x1e0   : > { %1169 = vst [vmem:[#allocation6 + $0x8] sm:$0x77] %v1165_v36 }
 0x1e1   : > { %v546_v39 = vmul.f32 %v3270_v26, %v545_v37 }
 0x1e3   : > { %v547_v40 = vmul.f32 %v546_v39, %v540_v20 }
 0x1e5   : > { %v549_v42 = vsel %vm548_vm12, %v540_v20, %v547_v40 }
 0x1e6   : > { %v552_v44 = vsel %vm550_vm13, %v551_v41, %v549_v42 }
 0x1e7   : > { %v553_v45 = vmax.f32 %v552_v44, 1e-12 }
 0x1e9   : > { %3271 = vrcp.f32 %v553_v45  ;;  %v565_v49 = vand.u32 2147483648, %v553_v45  ;;  %v563_v53 = vand.u32 2147483647, %v553_v45  ;;  %vm559_vm15 = vweird.f32 %v553_v45 }
 0x1eb   : > { %v566_v55 = vor.u32 1.1754944e-38, %v565_v49  ;;  %vm564_vm1 = vcmp.eq.f32.partialorder %v563_v53, 8.507059e+37 }
 0x1ef   : > { %v3272_v46 = vpop.eup %3271 }
 0x1f0   : > { %v555_v47 = vmul.f32 %v3272_v46, %v553_v45  ;;  %vm560_vm14 = vweird.f32 %v3272_v46 }
 0x1f1   : > { %vm561_vm0 = vmor %vm559_vm15, %vm560_vm14 }
 0x1f2   : > { %v556_v48 = vsub.f32 1.0, %v555_v47 }
 0x1f4   : > { %v557_v50 = vmul.f32 %v3272_v46, %v556_v48 }
 0x1f6   : > { %v558_v54 = vadd.f32 %v3272_v46, %v557_v50 }
 0x1f8   : > { %v562_v56 = vsel %vm561_vm0, %v3272_v46, %v558_v54 }
 0x1f9   : > { %v567_v57 = vsel %vm564_vm1, %v566_v55, %v562_v56 }
 0x1fa   : > { %v568_v58 = vmul.f32 %v567_v57, %v3610_v2 }
 0x1fc   : > { %569 = vst.msk [vmem:[#allocation5] sm:$0x3] %vm537_vm10, %v568_v58 }
 0x1fd PF: > { %v3619_v59 = vld [vmem:[#allocation2] sm:$0x77]  ;;  %v3621_v60 = vld [vmem:[#allocation2 + $0x8] sm:$0x77]  ;;  %v3435_v62 = vmov 0   ;;  %v1234_v5 = vld [vmem:[%s4730_s3] sm:$0xff] }
 0x1fe   : > { %4887 = vst [vmem:[#allocation14_spill] sm:$0xff] %v3619_v59  ;;  %3275 = vtanh.f32 %v3619_v59  ;;  %v1235_v61 = vld [vmem:[%s4730_s3 + $0x8] sm:$0xff]  ;;  %3274 = vset.pattern.permute.xlu1 %v3435_v62  ;;  %3273 = vset.pattern.permute.xlu0 %v3435_v62  ;;  %v1237_v43 = vld [vmem:[%s4730_s3 + $0x18] sm:$0xff]  ;;  %vm1280_vm2 = vcmask 1042432   ;;  %v1437_v4 = vld [vmem:[%s4731_s4] sm:$0xff]  ;;  %vm1267_vm3 = vcmask 23552  }
 0x1ff   : > { %4888 = vst [vmem:[#allocation15_spill] sm:$0xff] %v3621_v60  ;;  %3277 = vtanh.f32 %v3621_v60  ;;  %1245 = vperm.xlu1 %3274, %v1235_v61   ;;  %1255 = vperm.xlu0 %3273, %v1237_v43   ;;  %v1230_v8 = vld [vmem:[%s4729_s2] sm:$0xff]  ;;  %v1236_v52 = vld [vmem:[%s4730_s3 + $0x10] sm:$0xff]  ;;  %v1231_v12 = vld [vmem:[%s4729_s2 + $0x8] sm:$0xff]  ;;  %vm1529_vm7 = vcmask 254976   ;;  %vm1562_vm11 = vcmask 261120  }
 0x200   : > { %v1232_v13 = vld [vmem:[%s4729_s2 + $0x10] sm:$0xff]  ;;  %v1233_v14 = vld [vmem:[%s4729_s2 + $0x18] sm:$0xff] }
 0x204   : > { %v3628_v63 = vpop.eup %3275 }
 0x205   : > { %v3630_v2 = vpop.eup %3277  ;;  %v1226_v38 = vadd.f32 1.0, %v3628_v63 }
 0x206   : > { %4889 = vst [vmem:[#allocation16_spill] sm:$0xff] %v3630_v2  ;;  %v1227_v6 = vadd.f32 1.0, %v3630_v2 }
 0x207   : > { %v3637_v7 = vmul.f32 0.5, %v1226_v38  ;;  %1240 = vperm.xlu1 %3274, %v1234_v5   ;;  %1250 = vperm.xlu0 %3273, %v1236_v52  }
 0x208   : > { %v3639_v3 = vmul.f32 0.5, %v1227_v6 }
 0x209   : > { %1260 = vst [vmem:[#allocation1] ss:$2 sm:$0xff] %v3637_v7 }
 0x20a   : > { %1262 = vst [vmem:[#allocation1 + $0x10] ss:$2 sm:$0xff] %v3639_v3 }
 0x210   : > { %v1263_v9 = vld.sshfl [vmem:[#allocation1] sm:$0xff pattern:$0x75316420]  ;;  %v1264_v10 = vld.sshfl [vmem:[#allocation1 + $0x8] sm:$0xff pattern:$0x75316420] }
 0x211   : > { %3146 = vmatpush.msk.msra.mxu0 %vm1280_vm2, %v1263_v9  ;;  %3151 = vmatpush.msk.msra.mxu1 %vm1280_vm2, %v1264_v10  ;;  %v1265_v51 = vld.sshfl [vmem:[#allocation1 + $0x10] sm:$0xff pattern:$0x75316420]  ;;  %v1266_v11 = vld.sshfl [vmem:[#allocation1 + $0x18] sm:$0xff pattern:$0x75316420] }
 0x212   : > { %3156 = vmatpush.msk.msra.mxu2 %vm1280_vm2, %v1265_v51  ;;  %3161 = vmatpush.msk.msra.mxu3 %vm1280_vm2, %v1266_v11  ;;  %1439 = vst [vmem:[#allocation1] ss:$4 sm:$0xff] %v1437_v4 }
 0x213   : > { %3147 = vmatmul.msk.f32.vlgmr.msra.gmra.mxu0 %vm1267_vm3, %v1230_v8  ;;  %3152 = vmatmul.msk.f32.vlgmr.msra.gmra.mxu1 %vm1267_vm3, %v1230_v8 }
 0x214   : > { %3157 = vmatmul.msk.f32.vlgmr.msra.gmra.mxu2 %vm1267_vm3, %v1230_v8  ;;  %3162 = vmatmul.msk.f32.vlgmr.msra.gmra.mxu3 %vm1267_vm3, %v1230_v8 }
 0x219   : > { %v1440_v9 = vld.sshfl [vmem:[#allocation1] sm:$0xff pattern:$0x73625140]  ;;  %v1441_v10 = vld.sshfl [vmem:[#allocation1 + $0x8] sm:$0xff pattern:$0x73625140] }
 0x21a   : > { %v1442_v52 = vld.sshfl [vmem:[#allocation1 + $0x10] sm:$0xff pattern:$0x73625140] }
 0x21b   : > { %3148 = vmatmul.msk.f32.gmra.mxu0 %vm1267_vm3, %v1231_v12  ;;  %3153 = vmatmul.msk.f32.gmra.mxu1 %vm1267_vm3, %v1231_v12 }
 0x21c   : > { %3158 = vmatmul.msk.f32.gmra.mxu2 %vm1267_vm3, %v1231_v12  ;;  %3163 = vmatmul.msk.f32.gmra.mxu3 %vm1267_vm3, %v1231_v12  ;;  %v1443_v12 = vld.sshfl [vmem:[#allocation1 + $0x18] sm:$0xff pattern:$0x73625140] }
 0x223   : > { %3149 = vmatmul.msk.f32.gmra.mxu0 %vm1267_vm3, %v1232_v13  ;;  %3154 = vmatmul.msk.f32.gmra.mxu1 %vm1267_vm3, %v1232_v13 }
 0x224   : > { %3159 = vmatmul.msk.f32.gmra.mxu2 %vm1267_vm3, %v1232_v13  ;;  %3164 = vmatmul.msk.f32.gmra.mxu3 %vm1267_vm3, %v1232_v13 }
 0x22b   : > { %3150 = vmatmul.msk.f32.gmra.mxu0 %vm1267_vm3, %v1233_v14  ;;  %3155 = vmatmul.msk.f32.gmra.mxu1 %vm1267_vm3, %v1233_v14 }
 0x22c   : > { %3160 = vmatmul.msk.f32.gmra.mxu2 %vm1267_vm3, %v1233_v14  ;;  %3165 = vmatmul.msk.f32.gmra.mxu3 %vm1267_vm3, %v1233_v14 }
 0x271   : > { %v1246_v15 = vpop.permute.xlu1 %1245  ;;  %v1256_v20 = vpop.permute.xlu0 %1255 }
 0x279   : > { %v1241_v16 = vpop.permute.xlu1 %1240  ;;  %v1251_v28 = vpop.permute.xlu0 %1250 }
 0x290   : > { %v1306_v17 = vpop.f32.mrf.mxu0  ;;  %v1335_v18 = vpop.f32.mrf.mxu1 }
 0x291   : > { %v3680_v19 = vadd.f32 %v1306_v17, %v1241_v16  ;;  %v3682_v1 = vadd.f32 %v1335_v18, %v1241_v16 }
 0x293   : > { %4890 = vst [vmem:[#allocation17_spill] sm:$0xff] %v3680_v19  ;;  %vm1405_vm4 = vcmp.gt.f32.partialorder %v3680_v19, 0.0  ;;  %vm1406_vm5 = vcmp.gt.f32.partialorder %v3682_v1, 0.0  ;;  %v1421_v6 = vmax.f32 %v3680_v19, 0.0  ;;  %v1422_v43 = vmax.f32 %v3682_v1, 0.0 }
 0x294   : > { %4891 = vst [vmem:[#allocation18_spill] sm:$0xff] %v3682_v1 }
 0x297   : > { %v1364_v21 = vpop.f32.mrf.mxu2  ;;  %v1393_v22 = vpop.f32.mrf.mxu3 }
 0x298   : > { %v3686_v23 = vadd.f32 %v1364_v21, %v1241_v16  ;;  %v3688_v0 = vadd.f32 %v1393_v22, %v1241_v16  ;;  %v1309_v24 = vpop.f32.mrf.mxu0  ;;  %v1338_v25 = vpop.f32.mrf.mxu1 }
 0x299   : > { %v3690_v26 = vadd.f32 %v1309_v24, %v1246_v15  ;;  %v3692_v27 = vadd.f32 %v1338_v25, %v1246_v15  ;;  %v3745_v24 = vld [vmem:[#allocation5] sm:$0x3] }
 0x29a   : > { %4892 = vst [vmem:[#allocation19_spill] sm:$0xff] %v3686_v23  ;;  %v1423_v51 = vmax.f32 %v3686_v23, 0.0  ;;  %v1424_v11 = vmax.f32 %v3688_v0, 0.0 }
 0x29b   : > { %4893 = vst [vmem:[#allocation20_spill] sm:$0xff] %v3688_v0  ;;  %vm1409_vm8 = vcmp.gt.f32.partialorder %v3690_v26, 0.0  ;;  %vm1410_vm9 = vcmp.gt.f32.partialorder %v3692_v27, 0.0  ;;  %v1425_v61 = vmax.f32 %v3690_v26, 0.0  ;;  %v1426_v62 = vmax.f32 %v3692_v27, 0.0 }
 0x29c   : > { %4894 = vst [vmem:[#allocation21_spill] sm:$0xff] %v3690_v26 }
 0x29d   : > { %4895 = vst [vmem:[#allocation22_spill] sm:$0xff] %v3692_v27 }
 0x29f   : > { %v1367_v29 = vpop.f32.mrf.mxu2  ;;  %v1396_v30 = vpop.f32.mrf.mxu3 }
 0x2a0   : > { %v3698_v31 = vadd.f32 %v1367_v29, %v1246_v15  ;;  %v3700_v32 = vadd.f32 %v1396_v30, %v1246_v15  ;;  %v1312_v33 = vpop.f32.mrf.mxu0  ;;  %v1341_v34 = vpop.f32.mrf.mxu1 }
 0x2a1   : > { %v3702_v35 = vadd.f32 %v1312_v33, %v1251_v28  ;;  %v3704_v36 = vadd.f32 %v1341_v34, %v1251_v28 }
 0x2a2   : > { %4896 = vst [vmem:[#allocation23_spill] sm:$0xff] %v3698_v31  ;;  %v1427_v4 = vmax.f32 %v3698_v31, 0.0  ;;  %v1428_v8 = vmax.f32 %v3700_v32, 0.0 }
 0x2a3   : > { %4897 = vst [vmem:[#allocation24_spill] sm:$0xff] %v3700_v32  ;;  %vm1413_vm12 = vcmp.gt.f32.partialorder %v3702_v35, 0.0  ;;  %vm1414_vm13 = vcmp.gt.f32.partialorder %v3704_v36, 0.0  ;;  %v1429_v53 = vmax.f32 %v3702_v35, 0.0  ;;  %v1430_v54 = vmax.f32 %v3704_v36, 0.0 }
 0x2a4   : > { %4898 = vst [vmem:[#allocation25_spill] sm:$0xff] %v3702_v35 }
 0x2a5   : > { %4899 = vst [vmem:[#allocation26_spill] sm:$0xff] %v3704_v36 }
 0x2a7   : > { %v1370_v37 = vpop.f32.mrf.mxu2  ;;  %v1399_v39 = vpop.f32.mrf.mxu3 }
 0x2a8   : > { %v3710_v40 = vadd.f32 %v1370_v37, %v1251_v28  ;;  %v3712_v41 = vadd.f32 %v1399_v39, %v1251_v28  ;;  %v1315_v42 = vpop.f32.mrf.mxu0  ;;  %v1344_v44 = vpop.f32.mrf.mxu1 }
 0x2a9   : > { %v3714_v45 = vadd.f32 %v1315_v42, %v1256_v20  ;;  %v3716_v46 = vadd.f32 %v1344_v44, %v1256_v20 }
 0x2aa   : > { %4900 = vst [vmem:[#allocation27_spill] sm:$0xff] %v3710_v40  ;;  %v1431_v38 = vmax.f32 %v3710_v40, 0.0  ;;  %v1432_v5 = vmax.f32 %v3712_v41, 0.0 }
 0x2ab   : > { %4901 = vst [vmem:[#allocation28_spill] sm:$0xff] %v3712_v41  ;;  %vm1417_vm0 = vcmp.gt.f32.partialorder %v3714_v45, 0.0  ;;  %vm1418_vm1 = vcmp.gt.f32.partialorder %v3716_v46, 0.0  ;;  %v1433_v47 = vmax.f32 %v3714_v45, 0.0  ;;  %v1434_v48 = vmax.f32 %v3716_v46, 0.0 }
 0x2ac   : > { %4902 = vst [vmem:[#allocation29_spill] sm:$0xff] %v3714_v45 }
 0x2ad   : > { %4903 = vst [vmem:[#allocation30_spill] sm:$0xff] %v3716_v46  ;;  %1460 = vmatpush.xpose.msrb.mxu0 %v1433_v47  ;;  %1480 = vmatpush.xpose.msrb.mxu1 %v1434_v48 }
 0x2af   : > { %v1373_v49 = vpop.f32.mrf.mxu2  ;;  %v1402_v50 = vpop.f32.mrf.mxu3 }
 0x2b0   : > { %v3726_v55 = vadd.f32 %v1373_v49, %v1256_v20  ;;  %v3728_v56 = vadd.f32 %v1402_v50, %v1256_v20 }
 0x2b1   : > { %1461 = vmatpush.xpose.msrb.mxu0 %v1429_v53  ;;  %1481 = vmatpush.xpose.msrb.mxu1 %v1430_v54 }
 0x2b2   : > { %4904 = vst [vmem:[#allocation31_spill] sm:$0xff] %v3726_v55  ;;  %v1435_v57 = vmax.f32 %v3726_v55, 0.0  ;;  %v1436_v58 = vmax.f32 %v3728_v56, 0.0 }
 0x2b3   : > { %4905 = vst [vmem:[#allocation32_spill] sm:$0xff] %v3728_v56 }
 0x2b4   : > { %1500 = vmatpush.xpose.msrb.mxu2 %v1435_v57  ;;  %1520 = vmatpush.xpose.msrb.mxu3 %v1436_v58 }
 0x2b5   : > { %1462 = vmatpush.xpose.msrb.mxu0 %v1425_v61  ;;  %1482 = vmatpush.xpose.msrb.mxu1 %v1426_v62 }
 0x2b8   : > { %1501 = vmatpush.xpose.msrb.mxu2 %v1431_v38  ;;  %1521 = vmatpush.xpose.msrb.mxu3 %v1432_v5 }
 0x2b9   : > { %1463 = vmatpush.xpose.msrb.mxu0 %v1421_v6  ;;  %1483 = vmatpush.xpose.msrb.mxu1 %v1422_v43  ;;  %v1589_v43 = vlaneseq }
 0x2bc   : > { %1502 = vmatpush.xpose.msrb.mxu2 %v1427_v4  ;;  %1522 = vmatpush.xpose.msrb.mxu3 %v1428_v8  ;;  %v1590_v4 = vshrl.u32 %v1589_v43, 7  ;;  %v1592_v8 = vand.u32 127, %v1589_v43 }
 0x2bd   : > { %1464 = vmatmul.f32.vlgmr.msrb.gmra.mxu0 %v1440_v9  ;;  %1484 = vmatmul.f32.vlgmr.msrb.gmra.mxu1 %v1441_v10  ;;  %v3436_v9 = vmov 0.0  }
 0x2be   : > { %3166 = vmatpush.xpose.msk.msra.mxu0 %vm1562_vm11, %v3745_v24 }
 0x2c0   : > { %1503 = vmatpush.xpose.msrb.mxu2 %v1423_v51  ;;  %1523 = vmatpush.xpose.msrb.mxu3 %v1424_v11 }
 0x2c3   : > { %1504 = vmatmul.f32.vlgmr.msrb.gmra.mxu2 %v1442_v52  ;;  %1524 = vmatmul.f32.vlgmr.msrb.gmra.mxu3 %v1443_v12 }
 0x33a   : > { %v1465_v13 = vpop.f32.mrf.mxu0  ;;  %v1485_v14 = vpop.f32.mrf.mxu1 }
 0x33b   : > { %v1486_v15 = vadd.f32 %v1485_v14, %v1465_v13 }
 0x346   : > { %v1505_v16 = vpop.f32.mrf.mxu2  ;;  %v1525_v17 = vpop.f32.mrf.mxu3 }
 0x347   : > { %v1506_v18 = vadd.f32 %v1505_v16, %v1486_v15 }
 0x349   : > { %v1526_v20 = vadd.f32 %v1525_v17, %v1506_v18 }
 0x34b   : > { %v1528_v21 = vmul.f32 %v1526_v20, %v1526_v20 }
 0x34d   : > { %v1530_v22 = vsel %vm1529_vm7, %v1528_v21, 0.0 }
 0x34e   : > { %1531 = vadd.xlane.f32.xlu2 %v1530_v22 }
 0x3c1   : > { %v1532_v25 = vpop.xlane.xlu2 %1531 }
 0x3c2   : > { %3279 = vrsqrt.f32 %v1532_v25  ;;  %vm1540_vm15 = vcmp.eq.f32.partialorder %v1532_v25, inf  ;;  %v1543_v42 = vand.u32 2147483648, %v1532_v25  ;;  %vm1542_vm3 = vcmp.eq.f32.partialorder %v1532_v25, 0.0 }
 0x3c8   : > { %v3280_v28 = vpop.eup %3279 }
 0x3c9   : > { %v1534_v29 = vmul.f32 %v3280_v28, %v1532_v25 }
 0x3cb   : > { %v1535_v30 = vmul.f32 %v3280_v28, %v1534_v29 }
 0x3cd   : > { %v1536_v33 = vmul.f32 0.5, %v1535_v30 }
 0x3cf   : > { %v1537_v34 = vsub.f32 1.5, %v1536_v33 }
 0x3d1   : > { %v1538_v37 = vmul.f32 %v3280_v28, %v1537_v34 }
 0x3d3   : > { %v1539_v39 = vmul.f32 %v1538_v37, %v1532_v25 }
 0x3d5   : > { %v1541_v44 = vsel %vm1540_vm15, %v1532_v25, %v1539_v39  ;;  %vm1593_vm15 = vcmp.eq.s32.totalorder %v1590_v4, %v1592_v8 }
 0x3d6   : > { %v1544_v47 = vsel %vm1542_vm3, %v1543_v42, %v1541_v44  ;;  %v3168_v10 = vsel %vm1593_vm15, 1.0, %v3436_v9  ;;  %vm1597_vm3 = vcmask 9216  }
 0x3d7   : > { %v1545_v48 = vmax.f32 %v1544_v47, 1e-12 }
 0x3d9   : > { %3281 = vrcp.f32 %v1545_v48  ;;  %v1557_v54 = vand.u32 2147483648, %v1545_v48  ;;  %v1555_v58 = vand.u32 2147483647, %v1545_v48  ;;  %vm1551_vm10 = vweird.f32 %v1545_v48 }
 0x3db   : > { %v1558_v62 = vor.u32 1.1754944e-38, %v1557_v54  ;;  %vm1556_vm2 = vcmp.eq.f32.partialorder %v1555_v58, 8.507059e+37 }
 0x3df   : > { %v3282_v49 = vpop.eup %3281 }
 0x3e0   : > { %v1547_v50 = vmul.f32 %v3282_v49, %v1545_v48  ;;  %vm1552_vm6 = vweird.f32 %v3282_v49 }
 0x3e1   : > { %vm1553_vm14 = vmor %vm1551_vm10, %vm1552_vm6 }
 0x3e2   : > { %v1548_v53 = vsub.f32 1.0, %v1547_v50 }
 0x3e4   : > { %v1549_v57 = vmul.f32 %v3282_v49, %v1548_v53 }
 0x3e6   : > { %v1550_v61 = vadd.f32 %v3282_v49, %v1549_v57 }
 0x3e8   : > { %v1554_v38 = vsel %vm1553_vm14, %v3282_v49, %v1550_v61 }
 0x3e9   : > { %v3749_v5 = vsel %vm1556_vm2, %v1558_v62, %v1554_v38 }
 0x3ea   : > { %v3752_v6 = vmul.f32 %v3749_v5, %v1526_v20 }
 0x3ec   : > { %3167 = vmatmul.msk.f32.vlgmr.msra.gmra.mxu0 %vm1562_vm11, %v3752_v6 }
 0x469   : > { %v1586_v51 = vpop.f32.mrf.mxu0 }
 0x46a   : > { %v1596_v11 = vmul.f32 %v3168_v10, %v1586_v51 }
 0x46c   : > { %v1598_v52 = vsel %vm1597_vm3, %v1596_v11, 0.0 }
 0x46d   : > { %1599 = vadd.xlane.f32.xlu2 %v1598_v52 }
 0x4dc   : > { %1603 = sbr.rel (%p3118_p2) target bundleno = 1488 (0x5d0), region = 60 }
 0x4e0   : > { %v1600_v12 = vpop.xlane.xlu2 %1599 }
 0x4e1   : > { %v1605_v13 = vsel %vm1597_vm3, %v1586_v51, inf  ;;  %v1604_v14 = vcvt.s32.f32 %v1592_v8  ;;  %v3437_v20 = vmov 0.0  }
 0x4e2   : > { %1606 = vmin.xlane.f32.xlu0 %v1605_v13 }
 0x555   : > { %v1607_v15 = vpop.xlane.xlu0 %1606 }
 0x556   : > { %vm1608_vm6 = vcmp.eq.f32.partialorder %v1586_v51, %v1607_v15 }
 0x557   : > { %v1609_v16 = vsel %vm1608_vm6, %v1604_v14, 2.0 }
 0x558   : > { %v1610_v17 = vsel %vm1597_vm3, %v1609_v16, inf }
 0x559   : > { %1611 = vmin.xlane.f32.xlu0 %v1610_v17 }
 0x5cc   : > { %v1612_v18 = vpop.xlane.xlu0 %1611 }
 0x5cd   : > { %vm1613_vm10 = vcmp.eq.f32.partialorder %v1604_v14, %v1612_v18 }
 0x5ce   : > { %v3170_v21 = vsel %vm1613_vm10, 1.0, %v3437_v20 }
 0x5cf   : > { %1616 = vst.msk [vmem:[#allocation7] sm:$0x3] %vm1597_vm3, %v3170_v21 }
 0x5d0 PF: > { %vm1636_vm14 = vcmask 1041408   ;;  %vm1632_vm2 = vcmask 15360   ;;  %v3171_v29 = vadd.f32 -0.2, %v1600_v12  ;;  %v1670_v61 = vld [vmem:[%s4731_s4] sm:$0xff]  ;;  %v1925_v62 = vld [vmem:[#allocation11 + $0x1e0] sm:$0xff] }
 0x5d1   : > { %3173 = vmatpush.msk.msra.mxu1 %vm1636_vm14, %v3745_v24  ;;  %1704 = vst [vmem:[#allocation1] ss:$4 sm:$0xff] %v1670_v61  ;;  %v1921_v38 = vld [vmem:[#allocation11 + $0x1c0] sm:$0xff]  ;;  %v3920_v60 = vld [vmem:[#allocation11 + $0x268] sm:$0xff]  ;;  %v3961_v36 = vld [vmem:[#allocation11 + $0x1f0] sm:$0xff]  ;;  %s3219_s17 = sshll.u32 %s3482_s25, 7 }
 0x5d2   : > { %v1623_v30 = vmax.f32 %v3171_v29, 0.0  ;;  %v1985_v8 = vld [vmem:[#allocation11 + $0x3c0] sm:$0xff]  ;;  %v3924_v59 = vld [vmem:[#allocation11 + $0x4c8] sm:$0xff]  ;;  %4910 = vst [vmem:[#allocation37_spill] sm:$0xff] %v3961_v36  ;;  %v3963_v46 = vld [vmem:[#allocation11 + $0x3f0] sm:$0xff]  ;;  %s2990_s18 = sadd.s32 1, %s3219_s17 }
 0x5d3   : > { %v2053_v10 = vld [vmem:[#allocation11 + $0x5e0] sm:$0xff]  ;;  %v3926_v0 = vld [vmem:[#allocation11 + $0x6c8] sm:$0xff]  ;;  %4911 = vst [vmem:[#allocation38_spill] sm:$0xff] %v3963_v46  ;;  %v3974_v35 = vld [vmem:[#allocation11 + $0x1d0] sm:$0xff]  ;;  %s4694_s19 = sld [smem:[#allocation8 + %s2990_s18]]  ;;  %p3220_p7 = scmp.ne.s32.totalorder %s3482_s25, 7 }
 0x5d4   : > { %v1626_v37 = vmul.f32 %v1623_v30, %v1600_v12  ;;  %v1659_v47 = vmul.f32 %v1623_v30, %v3745_v24  ;;  %v1989_v24 = vld [vmem:[#allocation11 + $0x3e0] sm:$0xff]  ;;  %4906 = vst [vmem:[#allocation33_spill] sm:$0xff] %v3926_v0  ;;  %v3930_v32 = vld [vmem:[#allocation11 + $0x48] sm:$0xff]  ;;  %v3976_v45 = vld [vmem:[#allocation11 + $0x3d0] sm:$0xff]  ;;  %s4703_s20 = sld [smem:[#allocation8 + %s3219_s17]] }
 0x5d5   : > { %v2117_v11 = vld [vmem:[#allocation11 + $0x7e0] sm:$0xff]  ;;  %v3932_v41 = vld [vmem:[#allocation11 + $0x248] sm:$0xff]  ;;  %4914 = vst [vmem:[#allocation41_spill] sm:$0xff] %v3974_v35 }
 0x5d6   : > { %v1617_v22 = vld [vmem:[#allocation7] sm:$0x3]  ;;  %v1917_v52 = vld [vmem:[#allocation11 + $0x1a0] sm:$0xff]  ;;  %v3936_v56 = vld [vmem:[#allocation11 + $0x4a8] sm:$0xff]  ;;  %4915 = vst [vmem:[#allocation42_spill] sm:$0xff] %v3976_v45 }
 0x5d7   : > { %v1618_v25 = vmul.f32 %v1617_v22, %v1586_v51  ;;  %3174 = vmatmul.msk.f32.vlgmr.msra.gmra.mxu1 %vm1632_vm2, %v1617_v22  ;;  %v1981_v12 = vld [vmem:[#allocation11 + $0x3a0] sm:$0xff]  ;;  %v3938_v23 = vld [vmem:[#allocation11 + $0x6a8] sm:$0xff] }
 0x5d8   : > { %v1705_v43 = vld.sshfl [vmem:[#allocation1] sm:$0xff pattern:$0x73625140]  ;;  %v1706_v4 = vld.sshfl [vmem:[#allocation1 + $0x8] sm:$0xff pattern:$0x73625140] }
 0x5d9   : > { %v1619_v28 = vsel %vm1597_vm3, %v1618_v25, 0.0  ;;  %3175 = vmatpush.msk.msra.mxu2 %vm1636_vm14, %v1705_v43  ;;  %3180 = vmatpush.msk.msra.mxu3 %vm1636_vm14, %v1706_v4  ;;  %2121 = vst [vmem:[#allocation1] ss:$2 sm:$0xff] %v3637_v7  ;;  %v1708_v51 = vld.sshfl [vmem:[#allocation1 + $0x18] sm:$0xff pattern:$0x73625140] }
 0x5da   : > { %1620 = vadd.xlane.f32.xlu0 %v1619_v28  ;;  %3190 = vmatpush.msk.msrb.mxu1 %vm1636_vm14, %v1708_v51  ;;  %v2049_v13 = vld [vmem:[#allocation11 + $0x5c0] sm:$0xff]  ;;  %4907 = vst [vmem:[#allocation34_spill] sm:$0xff] %v3938_v23  ;;  %v3941_v31 = vld [vmem:[#allocation11 + $0x28] sm:$0xff] }
 0x5db   : > { %2132 = vmatpush.msrb.mxu2 %v1925_v62  ;;  %2152 = vmatpush.msrb.mxu3 %v1989_v24  ;;  %v2113_v14 = vld [vmem:[#allocation11 + $0x7c0] sm:$0xff]  ;;  %v3943_v40 = vld [vmem:[#allocation11 + $0x228] sm:$0xff] }
 0x5dc   : > { %v1913_v7 = vld [vmem:[#allocation11 + $0x180] sm:$0xff]  ;;  %2192 = vmatpush.msra.mxu1 %v2117_v11  ;;  %v3950_v55 = vld [vmem:[#allocation11 + $0x688] sm:$0xff] }
 0x5dd   : > { %2133 = vmatpush.msrb.mxu2 %v1921_v38  ;;  %2153 = vmatpush.msrb.mxu3 %v1985_v8  ;;  %v1977_v15 = vld [vmem:[#allocation11 + $0x380] sm:$0xff]  ;;  %4908 = vst [vmem:[#allocation35_spill] sm:$0xff] %v3950_v55  ;;  %v3953_v1 = vld [vmem:[#allocation11 + $0x8] sm:$0xff] }
 0x5de   : > { %v2045_v16 = vld [vmem:[#allocation11 + $0x5a0] sm:$0xff]  ;;  %2193 = vmatpush.msra.mxu1 %v2113_v14  ;;  %v3955_v27 = vld [vmem:[#allocation11 + $0x208] sm:$0xff] }
 0x5df   : > { %2134 = vmatpush.msrb.mxu2 %v1917_v52  ;;  %2154 = vmatpush.msrb.mxu3 %v1981_v12  ;;  %v2109_v17 = vld [vmem:[#allocation11 + $0x7a0] sm:$0xff]  ;;  %4909 = vst [vmem:[#allocation36_spill] sm:$0xff] %v3955_v27  ;;  %v3968_v19 = vld [vmem:[#allocation11 + $0x468] sm:$0xff] }
 0x5e0   : > { %v1909_v18 = vld [vmem:[#allocation11 + $0x160] sm:$0xff]  ;;  %2194 = vmatpush.msra.mxu1 %v2109_v17  ;;  %4912 = vst [vmem:[#allocation39_spill] sm:$0xff] %v3968_v19  ;;  %v3970_v26 = vld [vmem:[#allocation11 + $0x668] sm:$0xff] }
 0x5e1   : > { %v1973_v20 = vld [vmem:[#allocation11 + $0x360] sm:$0xff]  ;;  %2135 = vmatpush.msrb.mxu2 %v1913_v7  ;;  %2155 = vmatpush.msrb.mxu3 %v1977_v15  ;;  %4913 = vst [vmem:[#allocation40_spill] sm:$0xff] %v3970_v26  ;;  %v3980_v2 = vld [vmem:[#allocation11 + $0x448] sm:$0xff] }
 0x5e2   : > { %v2041_v21 = vld [vmem:[#allocation11 + $0x580] sm:$0xff]  ;;  %4916 = vst [vmem:[#allocation43_spill] sm:$0xff] %v3980_v2 }
 0x5e3   : > { %v1905_v22 = vld [vmem:[#allocation11 + $0x140] sm:$0xff]  ;;  %2136 = vmatpush.msrb.mxu2 %v1909_v18  ;;  %2156 = vmatpush.msrb.mxu3 %v1973_v20 }
 0x5e4   : > { %v1969_v25 = vld [vmem:[#allocation11 + $0x340] sm:$0xff] }
 0x5e5   : > { %v2037_v28 = vld [vmem:[#allocation11 + $0x560] sm:$0xff]  ;;  %2137 = vmatpush.msrb.mxu2 %v1905_v22  ;;  %2157 = vmatpush.msrb.mxu3 %v1969_v25 }
 0x5e6   : > { %v2101_v29 = vld [vmem:[#allocation11 + $0x760] sm:$0xff] }
 0x5e7   : > { %v1901_v30 = vld [vmem:[#allocation11 + $0x120] sm:$0xff] }
 0x5e8   : > { %2138 = vmatpush.msrb.mxu2 %v1901_v30  ;;  %v1953_v61 = vld [vmem:[#allocation11 + $0x2c0] sm:$0xff] }
 0x5e9   : > { %v2021_v24 = vld [vmem:[#allocation11 + $0x4e0] sm:$0xff] }
 0x5ea   : > { %v2085_v38 = vld [vmem:[#allocation11 + $0x6e0] sm:$0xff] }
 0x5eb   : > { %v1885_v43 = vld [vmem:[#allocation11 + $0xa0] sm:$0xff] }
 0x5ec   : > { %v1949_v4 = vld [vmem:[#allocation11 + $0x2a0] sm:$0xff] }
 0x5ed   : > { %v1881_v51 = vld [vmem:[#allocation11 + $0x80] sm:$0xff] }
 0x5ee   : > { %v2013_v52 = vld [vmem:[#allocation11 + $0x4a0] sm:$0xff] }
 0x5ef   : > { %v1877_v12 = vld [vmem:[#allocation11 + $0x60] sm:$0xff] }
 0x5f0   : > { %v1937_v14 = vld [vmem:[#allocation11 + $0x240] sm:$0xff] }
 0x5f1   : > { %v1869_v7 = vld [vmem:[#allocation11 + $0x20] sm:$0xff] }
 0x5f2   : > { %v1933_v15 = vld [vmem:[#allocation11 + $0x220] sm:$0xff] }
 0x5f3   : > { %v2009_v17 = vld [vmem:[#allocation11 + $0x480] sm:$0xff] }
 0x5f4   : > { %v2077_v18 = vld [vmem:[#allocation11 + $0x6a0] sm:$0xff] }
 0x5f5   : > { %v2005_v20 = vld [vmem:[#allocation11 + $0x460] sm:$0xff] }
 0x5f6   : > { %v2069_v22 = vld [vmem:[#allocation11 + $0x660] sm:$0xff] }
 0x5f7   : > { %v1997_v25 = vld [vmem:[#allocation11 + $0x420] sm:$0xff] }
 0x5f8   : > { %v2061_v30 = vld [vmem:[#allocation11 + $0x620] sm:$0xff] }
 0x64d   : > { %v1621_v33 = vpop.xlane.xlu0 %1620 }
 0x64e   : > { %v1624_v34 = vsub.f32 1.2, %v1621_v33 }
 0x650   : > { %v1625_v39 = vmax.f32 %v1624_v34, 0.0  ;;  %v2033_v34 = vld [vmem:[#allocation11 + $0x540] sm:$0xff] }
 0x652   : > { %v1627_v42 = vmul.f32 %v1625_v39, %v1621_v33  ;;  %v1965_v33 = vld [vmem:[#allocation11 + $0x320] sm:$0xff] }
 0x653   : > { %2158 = vmatpush.msrb.mxu3 %v1965_v33  ;;  %v2057_v33 = vld [vmem:[#allocation11 + $0x600] sm:$0xff] }
 0x654   : > { %v1628_v44 = vsub.f32 %v1626_v37, %v1627_v42  ;;  %v1656_v48 = vpop.f32.mrf.mxu1  ;;  %v2097_v37 = vld [vmem:[#allocation11 + $0x740] sm:$0xff] }
 0x655   : > { %v1660_v49 = vmul.f32 %v1656_v48, %v1625_v39  ;;  %v1897_v39 = vld [vmem:[#allocation11 + $0x100] sm:$0xff] }
 0x656   : > { %vm1629_vm15 = vcmp.gt.f32.partialorder %v1628_v44, 0.0  ;;  %v1961_v42 = vld [vmem:[#allocation11 + $0x300] sm:$0xff]  ;;  %2139 = vmatpush.msrb.mxu2 %v1897_v39  ;;  %v3786_v39 = vld [vmem:[#allocation11 + $0x3e8] sm:$0xff] }
 0x657   : > { %v1661_v50 = vsub.f32 %v1659_v47, %v1660_v49  ;;  %v3172_v53 = vsel %vm1629_vm15, 1.0, %v3436_v9  ;;  %v1707_v9 = vld.sshfl [vmem:[#allocation1 + $0x10] sm:$0xff pattern:$0x73625140]  ;;  %2159 = vmatpush.msrb.mxu3 %v1961_v42 }
 0x658   : > { %3185 = vmatpush.msk.msrb.mxu0 %vm1636_vm14, %v1707_v9  ;;  %2123 = vst [vmem:[#allocation1 + $0x10] ss:$2 sm:$0xff] %v3639_v3  ;;  %v2105_v3 = vld [vmem:[#allocation11 + $0x780] sm:$0xff]  ;;  %v2054_v42 = vld [vmem:[#allocation11 + $0x5e8] sm:$0xff] }
 0x659   : > { %v3767_v54 = vmul.f32 %v3172_v53, %v1661_v50  ;;  %2195 = vmatpush.msra.mxu1 %v2105_v3  ;;  %v2029_v44 = vld [vmem:[#allocation11 + $0x520] sm:$0xff] }
 0x65a   : > { %2172 = vmatpush.msra.mxu0 %v2053_v10  ;;  %v2093_v47 = vld [vmem:[#allocation11 + $0x720] sm:$0xff] }
 0x65b   : > { %v1663_v57 = vmul.f32 %v3767_v54, %v3752_v6  ;;  %2196 = vmatpush.msra.mxu1 %v2101_v29  ;;  %v1893_v48 = vld [vmem:[#allocation11 + $0xe0] sm:$0xff] }
 0x65c   : > { %2173 = vmatpush.msra.mxu0 %v2049_v13  ;;  %v1957_v49 = vld [vmem:[#allocation11 + $0x2e0] sm:$0xff]  ;;  %2140 = vmatpush.msrb.mxu2 %v1893_v48  ;;  %v3794_v48 = vld [vmem:[#allocation11 + $0x3c8] sm:$0xff] }
 0x65d   : > { %v1664_v58 = vsel %vm1529_vm7, %v1663_v57, 0.0  ;;  %2197 = vmatpush.msra.mxu1 %v2097_v37  ;;  %v2025_v50 = vld [vmem:[#allocation11 + $0x500] sm:$0xff]  ;;  %2160 = vmatpush.msrb.mxu3 %v1957_v49  ;;  %v3784_v37 = vld [vmem:[#allocation11 + $0x1e8] sm:$0xff] }
 0x65e   : > { %1665 = vadd.xlane.f32.xlu0 %v1664_v58  ;;  %2174 = vmatpush.msra.mxu0 %v2045_v16  ;;  %v2089_v53 = vld [vmem:[#allocation11 + $0x700] sm:$0xff]  ;;  %v3798_v49 = vld [vmem:[#allocation11 + $0x1a8] sm:$0xff] }
 0x65f   : > { %v1889_v58 = vld [vmem:[#allocation11 + $0xc0] sm:$0xff]  ;;  %2198 = vmatpush.msra.mxu1 %v2093_v47  ;;  %2161 = vmatpush.msrb.mxu3 %v1953_v61  ;;  %v3792_v47 = vld [vmem:[#allocation11 + $0x1c8] sm:$0xff]  ;;  %v3806_v61 = vld.sshfl [vmem:[#allocation1] sm:$0xff pattern:$0x75316420] }
 0x660   : > { %2175 = vmatpush.msra.mxu0 %v2041_v21  ;;  %2141 = vmatpush.msrb.mxu2 %v1889_v58  ;;  %v2017_v9 = vld [vmem:[#allocation11 + $0x4c0] sm:$0xff]  ;;  %v3804_v58 = vld [vmem:[#allocation11 + $0x5a8] sm:$0xff] }
 0x661   : > { %2199 = vmatpush.msra.mxu1 %v2089_v53  ;;  %v2081_v10 = vld [vmem:[#allocation11 + $0x6c0] sm:$0xff]  ;;  %2162 = vmatpush.msrb.mxu3 %v1949_v4  ;;  %v2114_v53 = vld [vmem:[#allocation11 + $0x7c8] sm:$0xff] }
 0x662   : > { %2176 = vmatpush.msra.mxu0 %v2037_v28  ;;  %2142 = vmatpush.msrb.mxu2 %v1885_v43  ;;  %v1941_v13 = vld [vmem:[#allocation11 + $0x260] sm:$0xff]  ;;  %v3812_v43 = vld [vmem:[#allocation11 + $0x188] sm:$0xff] }
 0x663   : > { %2200 = vmatpush.msra.mxu1 %v2085_v38  ;;  %v1929_v16 = vld [vmem:[#allocation11 + $0x200] sm:$0xff]  ;;  %v2452_v38 = vld [vmem:[#allocation6] sm:$0x77] }
 0x664   : > { %2177 = vmatpush.msra.mxu0 %v2033_v34  ;;  %2143 = vmatpush.msrb.mxu2 %v1881_v51  ;;  %v2073_v21 = vld [vmem:[#allocation11 + $0x680] sm:$0xff]  ;;  %v3814_v4 = vld [vmem:[#allocation11 + $0x388] sm:$0xff] }
 0x665   : > { %2201 = vmatpush.msra.mxu1 %v2081_v10  ;;  %v2001_v3 = vld [vmem:[#allocation11 + $0x440] sm:$0xff]  ;;  %v3824_v10 = vld [vmem:[#allocation11 + $0x368] sm:$0xff] }
 0x666   : > { %2178 = vmatpush.msra.mxu0 %v2029_v44  ;;  %2144 = vmatpush.msrb.mxu2 %v1877_v12  ;;  %v2065_v28 = vld [vmem:[#allocation11 + $0x640] sm:$0xff]  ;;  %v2118_v44 = vld [vmem:[#allocation11 + $0x7e8] sm:$0xff] }
 0x667   : > { %2202 = vmatpush.msra.mxu1 %v2077_v18  ;;  %v1993_v29 = vld [vmem:[#allocation11 + $0x400] sm:$0xff]  ;;  %v3828_v51 = vld [vmem:[#allocation11 + $0x588] sm:$0xff] }
 0x668   : > { %2179 = vmatpush.msra.mxu0 %v2025_v50  ;;  %v3800_v50 = vld [vmem:[#allocation11 + $0x5c8] sm:$0xff] }
 0x669   : > { %2203 = vmatpush.msra.mxu1 %v2073_v21  ;;  %v3840_v12 = vld [vmem:[#allocation11 + $0x568] sm:$0xff]  ;;  %v2453_v21 = vld [vmem:[#allocation6 + $0x8] sm:$0x77] }
 0x66a   : > { %2180 = vmatpush.msra.mxu0 %v2021_v24  ;;  %v3810_v24 = vld.sshfl [vmem:[#allocation1 + $0x8] sm:$0xff pattern:$0x75316420]  ;;  %v3864_v18 = vld.sshfl [vmem:[#allocation1 + $0x10] sm:$0xff pattern:$0x75316420] }
 0x66b   : > { %2204 = vmatpush.msra.mxu1 %v2069_v22  ;;  %2456 = vst [vmem:[#allocation1] ss:$2 sm:$0xff] %v2452_v38  ;;  %v3874_v22 = vld [vmem:[#allocation11 + $0x2e8] sm:$0xff] }
 0x66c   : > { %2181 = vmatpush.msra.mxu0 %v2017_v9  ;;  %v3822_v9 = vld [vmem:[#allocation11 + $0x168] sm:$0xff] }
 0x66d   : > { %2205 = vmatpush.msra.mxu1 %v2065_v28  ;;  %v3880_v28 = vld [vmem:[#allocation11 + $0x728] sm:$0xff] }
 0x66e   : > { %2182 = vmatpush.msra.mxu0 %v2013_v52  ;;  %v3836_v52 = vld [vmem:[#allocation11 + $0x348] sm:$0xff] }
 0x66f   : > { %2206 = vmatpush.msra.mxu1 %v2061_v30  ;;  %v3886_v30 = vld [vmem:[#allocation11 + $0x2c8] sm:$0xff] }
 0x670   : > { %2183 = vmatpush.msra.mxu0 %v2009_v17  ;;  %v3906_v38 = vld [vmem:[#allocation11 + $0x88] sm:$0xff] }
 0x671   : > { %2207 = vmatpush.msra.mxu1 %v2057_v33  ;;  %v3890_v33 = vld [vmem:[#allocation11 + $0x508] sm:$0xff] }
 0x672   : > { %2184 = vmatpush.msra.mxu0 %v2005_v20  ;;  %v3868_v20 = vld.sshfl [vmem:[#allocation1 + $0x18] sm:$0xff pattern:$0x75316420] }
 0x673   : > { %2458 = vst [vmem:[#allocation1 + $0x10] ss:$2 sm:$0xff] %v2453_v21  ;;  %v3918_v21 = vld [vmem:[#allocation11 + $0x68] sm:$0xff] }
 0x674   : > { %2185 = vmatpush.msra.mxu0 %v2001_v3  ;;  %v3872_v3 = vld [vmem:[#allocation11 + $0xe8] sm:$0xff] }
 0x676   : > { %2186 = vmatpush.msra.mxu0 %v1997_v25  ;;  %v3878_v25 = vld [vmem:[#allocation11 + $0x528] sm:$0xff] }
 0x678   : > { %2187 = vmatpush.msra.mxu0 %v1993_v29  ;;  %v3884_v29 = vld [vmem:[#allocation11 + $0xc8] sm:$0xff] }
 0x6d1   : > { %v1666_v57 = vpop.xlane.xlu0 %1665 }
 0x6d2   : > { %v1667_v62 = vmul.f32 %v1666_v57, %v3752_v6  ;;  %v1945_v6 = vld [vmem:[#allocation11 + $0x280] sm:$0xff]  ;;  %v3802_v57 = vld [vmem:[#allocation11 + $0x3a8] sm:$0xff] }
 0x6d3   : > { %2163 = vmatpush.msrb.mxu3 %v1945_v6  ;;  %v3834_v6 = vld [vmem:[#allocation11 + $0x148] sm:$0xff] }
 0x6d4   : > { %v1668_v8 = vsub.f32 %v3767_v54, %v1667_v62  ;;  %v1873_v54 = vld [vmem:[#allocation11 + $0x40] sm:$0xff]  ;;  %v2110_v62 = vld [vmem:[#allocation11 + $0x7a8] sm:$0xff] }
 0x6d5   : > { %2164 = vmatpush.msrb.mxu3 %v1941_v13  ;;  %2145 = vmatpush.msrb.mxu2 %v1873_v54  ;;  %v3842_v13 = vld [vmem:[#allocation11 + $0x768] sm:$0xff] }
 0x6d6   : > { %v1669_v11 = vmul.f32 %v1668_v8, %v3749_v5  ;;  %v1865_v5 = vld [vmem:[#allocation11] sm:$0xff]  ;;  %v3844_v54 = vld [vmem:[#allocation11 + $0x128] sm:$0xff] }
 0x6d7   : > { %2165 = vmatpush.msrb.mxu3 %v1937_v14  ;;  %2146 = vmatpush.msrb.mxu2 %v1869_v7  ;;  %v3846_v14 = vld [vmem:[#allocation11 + $0x328] sm:$0xff] }
 0x6d8   : > { %1671 = vxpose.xlu1.b32.start.end [1/1] (short) (narrow) %v1669_v11, 32  ;;  %v3830_v11 = vld [vmem:[#allocation11 + $0x788] sm:$0xff] }
 0x6d9   : > { %2166 = vmatpush.msrb.mxu3 %v1933_v15  ;;  %2147 = vmatpush.msrb.mxu2 %v1865_v5  ;;  %v3852_v7 = vld [vmem:[#allocation11 + $0x548] sm:$0xff] }
 0x6da   : > { %v3854_v15 = vld [vmem:[#allocation11 + $0x748] sm:$0xff] }
 0x6db   : > { %2167 = vmatpush.msrb.mxu3 %v1929_v16  ;;  %v3856_v5 = vld [vmem:[#allocation11 + $0x108] sm:$0xff] }
 0x6dc   : > { %v3858_v16 = vld [vmem:[#allocation11 + $0x308] sm:$0xff] }
 0x77c   : > { %v1687_v34 = vpop.trf.xlu1 }
 0x77d   : > { %3176 = vmatmul.msk.f32.vlgmr.msra.gmra.mxu2 %vm1632_vm2, %v1687_v34  ;;  %3181 = vmatmul.msk.f32.vlgmr.msra.gmra.mxu3 %vm1632_vm2, %v1687_v34 }
 0x77e   : > { %3186 = vmatmul.msk.f32.vlgmr.msrb.gmra.mxu0 %vm1632_vm2, %v1687_v34  ;;  %3191 = vmatmul.msk.f32.vlgmr.msrb.gmra.mxu1 %vm1632_vm2, %v1687_v34  ;;  %v3892_v34 = vld [vmem:[#allocation11 + $0x708] sm:$0xff] }
 0x77f   : > { %2212 = vmatpush.msra.mxu2 %v3784_v37  ;;  %2232 = vmatpush.msra.mxu3 %v3786_v39 }
 0x780   : > { %2252 = vmatpush.msrb.mxu0 %v2054_v42  ;;  %2272 = vmatpush.msrb.mxu1 %v2118_v44  ;;  %v3894_v42 = vld [vmem:[#allocation11 + $0xa8] sm:$0xff] }
 0x781   : > { %2213 = vmatpush.msra.mxu2 %v3792_v47  ;;  %2233 = vmatpush.msra.mxu3 %v3794_v48  ;;  %v3896_v44 = vld [vmem:[#allocation11 + $0x2a8] sm:$0xff] }
 0x782   : > { %2253 = vmatpush.msrb.mxu0 %v3800_v50  ;;  %2273 = vmatpush.msrb.mxu1 %v2114_v53  ;;  %v3902_v53 = vld [vmem:[#allocation11 + $0x4e8] sm:$0xff] }
 0x783   : > { %2214 = vmatpush.msra.mxu2 %v3798_v49  ;;  %2234 = vmatpush.msra.mxu3 %v3802_v57 }
 0x784   : > { %v1688_v8 = vpop.trf.xlu1  ;;  %2254 = vmatpush.msrb.mxu0 %v3804_v58  ;;  %2274 = vmatpush.msrb.mxu1 %v2110_v62  ;;  %v3904_v62 = vld [vmem:[#allocation11 + $0x6e8] sm:$0xff] }
 0x785   : > { %2215 = vmatpush.msra.mxu2 %v3812_v43  ;;  %2235 = vmatpush.msra.mxu3 %v3814_v4 }
 0x786   : > { %3177 = vmatmul.msk.f32.gmra.mxu2 %vm1632_vm2, %v1688_v8  ;;  %3182 = vmatmul.msk.f32.gmra.mxu3 %vm1632_vm2, %v1688_v8 }
 0x787   : > { %3187 = vmatmul.msk.f32.gmra.mxu0 %vm1632_vm2, %v1688_v8  ;;  %3192 = vmatmul.msk.f32.gmra.mxu1 %vm1632_vm2, %v1688_v8  ;;  %v3908_v8 = vld [vmem:[#allocation11 + $0x288] sm:$0xff] }
 0x788   : > { %2216 = vmatpush.msra.mxu2 %v3822_v9  ;;  %2236 = vmatpush.msra.mxu3 %v3824_v10 }
 0x789   : > { %2255 = vmatpush.msrb.mxu0 %v3828_v51  ;;  %2275 = vmatpush.msrb.mxu1 %v3830_v11 }
 0x78a   : > { %2217 = vmatpush.msra.mxu2 %v3834_v6  ;;  %2237 = vmatpush.msra.mxu3 %v3836_v52 }
 0x78b   : > { %2256 = vmatpush.msrb.mxu0 %v3840_v12  ;;  %2276 = vmatpush.msrb.mxu1 %v3842_v13 }
 0x78c   : > { %2218 = vmatpush.msra.mxu2 %v3844_v54  ;;  %2238 = vmatpush.msra.mxu3 %v3846_v14  ;;  %v1689_v17 = vpop.trf.xlu1 }
 0x78d   : > { %2257 = vmatpush.msrb.mxu0 %v3852_v7  ;;  %2277 = vmatpush.msrb.mxu1 %v3854_v15 }
 0x78e   : > { %2219 = vmatpush.msra.mxu2 %v3856_v5  ;;  %2239 = vmatpush.msra.mxu3 %v3858_v16 }
 0x78f   : > { %3178 = vmatmul.msk.f32.gmra.mxu2 %vm1632_vm2, %v1689_v17  ;;  %3183 = vmatmul.msk.f32.gmra.mxu3 %vm1632_vm2, %v1689_v17 }
 0x790   : > { %3188 = vmatmul.msk.f32.gmra.mxu0 %vm1632_vm2, %v1689_v17  ;;  %3193 = vmatmul.msk.f32.gmra.mxu1 %vm1632_vm2, %v1689_v17 }
 0x791   : > { %2220 = vmatpush.msra.mxu2 %v3872_v3  ;;  %2240 = vmatpush.msra.mxu3 %v3874_v22 }
 0x792   : > { %2258 = vmatpush.msrb.mxu0 %v3878_v25  ;;  %2278 = vmatpush.msrb.mxu1 %v3880_v28 }
 0x793   : > { %2221 = vmatpush.msra.mxu2 %v3884_v29  ;;  %2241 = vmatpush.msra.mxu3 %v3886_v30 }
 0x794   : > { %2259 = vmatpush.msrb.mxu0 %v3890_v33  ;;  %2279 = vmatpush.msrb.mxu1 %v3892_v34  ;;  %v1690_v17 = vpop.trf.xlu1 }
 0x795   : > { %2222 = vmatpush.msra.mxu2 %v3894_v42  ;;  %2242 = vmatpush.msra.mxu3 %v3896_v44 }
 0x796   : > { %2260 = vmatpush.msrb.mxu0 %v3902_v53  ;;  %2280 = vmatpush.msrb.mxu1 %v3904_v62 }
 0x797   : > { %2223 = vmatpush.msra.mxu2 %v3906_v38  ;;  %2243 = vmatpush.msra.mxu3 %v3908_v8 }
 0x798   : > { %3179 = vmatmul.msk.f32.gmra.mxu2 %vm1632_vm2, %v1690_v17  ;;  %3184 = vmatmul.msk.f32.gmra.mxu3 %vm1632_vm2, %v1690_v17 }
 0x799   : > { %3189 = vmatmul.msk.f32.gmra.mxu0 %vm1632_vm2, %v1690_v17  ;;  %3194 = vmatmul.msk.f32.gmra.mxu1 %vm1632_vm2, %v1690_v17  ;;  %v3948_v17 = vld [vmem:[#allocation11 + $0x488] sm:$0xff] }
 0x79a   : > { %2224 = vmatpush.msra.mxu2 %v3918_v21  ;;  %2244 = vmatpush.msra.mxu3 %v3920_v60 }
 0x79b   : > { %2261 = vmatpush.msrb.mxu0 %v3924_v59  ;;  %2281 = vmatpush.msrb.mxu1 %v3926_v0  ;;  %v3988_v0 = vld [vmem:[#allocation11 + $0x3b0] sm:$0xff] }
 0x79c   : > { %2225 = vmatpush.msra.mxu2 %v3930_v32  ;;  %2245 = vmatpush.msra.mxu3 %v3932_v41  ;;  %4919 = vst [vmem:[#allocation46_spill] sm:$0xff] %v3988_v0 }
 0x79d   : > { %2262 = vmatpush.msrb.mxu0 %v3936_v56  ;;  %2282 = vmatpush.msrb.mxu1 %v3938_v23  ;;  %v3986_v23 = vld [vmem:[#allocation11 + $0x1b0] sm:$0xff] }
 0x79e   : > { %2226 = vmatpush.msra.mxu2 %v3941_v31  ;;  %2246 = vmatpush.msra.mxu3 %v3943_v40  ;;  %4918 = vst [vmem:[#allocation45_spill] sm:$0xff] %v3986_v23 }
 0x79f   : > { %2263 = vmatpush.msrb.mxu0 %v3948_v17  ;;  %2283 = vmatpush.msrb.mxu1 %v3950_v55  ;;  %v3982_v55 = vld [vmem:[#allocation11 + $0x648] sm:$0xff] }
 0x7a0   : > { %2227 = vmatpush.msra.mxu2 %v3953_v1  ;;  %2247 = vmatpush.msra.mxu3 %v3955_v27  ;;  %4917 = vst [vmem:[#allocation44_spill] sm:$0xff] %v3982_v55  ;;  %v3992_v27 = vld [vmem:[#allocation11 + $0x428] sm:$0xff] }
 0x7a1   : > { %2148 = vmatmul.f32.vlgmr.msrb.gmra.mxu2 %v3806_v61  ;;  %2168 = vmatmul.f32.vlgmr.msrb.gmra.mxu3 %v3810_v24  ;;  %4920 = vst [vmem:[#allocation47_spill] sm:$0xff] %v3992_v27 }
 0x7a2   : > { %2292 = vmatpush.msrb.mxu2 %v3961_v36  ;;  %2312 = vmatpush.msrb.mxu3 %v3963_v46  ;;  %v3994_v36 = vld [vmem:[#allocation11 + $0x628] sm:$0xff]  ;;  %v3998_v46 = vld [vmem:[#allocation11 + $0x190] sm:$0xff] }
 0x7a3   : > { %2264 = vmatpush.msrb.mxu0 %v3968_v19  ;;  %2284 = vmatpush.msrb.mxu1 %v3970_v26  ;;  %4921 = vst [vmem:[#allocation48_spill] sm:$0xff] %v3994_v36  ;;  %v4000_v19 = vld [vmem:[#allocation11 + $0x390] sm:$0xff]  ;;  %v4004_v26 = vld [vmem:[#allocation11 + $0x408] sm:$0xff] }
 0x7a4   : > { %2293 = vmatpush.msrb.mxu2 %v3974_v35  ;;  %2313 = vmatpush.msrb.mxu3 %v3976_v45  ;;  %4922 = vst [vmem:[#allocation49_spill] sm:$0xff] %v3998_v46  ;;  %v4010_v45 = vld [vmem:[#allocation11 + $0x170] sm:$0xff] }
 0x7a5   : > { %2265 = vmatpush.msrb.mxu0 %v3980_v2  ;;  %2285 = vmatpush.msrb.mxu1 %v3982_v55  ;;  %4923 = vst [vmem:[#allocation50_spill] sm:$0xff] %v4000_v19  ;;  %v4012_v35 = vld [vmem:[#allocation11 + $0x370] sm:$0xff] }
 0x7a6   : > { %2294 = vmatpush.msrb.mxu2 %v3986_v23  ;;  %2314 = vmatpush.msrb.mxu3 %v3988_v0  ;;  %4924 = vst [vmem:[#allocation51_spill] sm:$0xff] %v4004_v26  ;;  %v4016_v23 = vld [vmem:[#allocation11 + $0x5f0] sm:$0xff]  ;;  %v4018_v0 = vld [vmem:[#allocation11 + $0x608] sm:$0xff] }
 0x7a7   : > { %2266 = vmatpush.msrb.mxu0 %v3992_v27  ;;  %2286 = vmatpush.msrb.mxu1 %v3994_v36  ;;  %4925 = vst [vmem:[#allocation52_spill] sm:$0xff] %v4010_v45  ;;  %v4022_v36 = vld [vmem:[#allocation11 + $0x150] sm:$0xff] }
 0x7a8   : > { %2295 = vmatpush.msrb.mxu2 %v3998_v46  ;;  %2315 = vmatpush.msrb.mxu3 %v4000_v19  ;;  %4926 = vst [vmem:[#allocation53_spill] sm:$0xff] %v4012_v35  ;;  %v4026_v19 = vld [vmem:[#allocation11 + $0x350] sm:$0xff] }
 0x7a9   : > { %2267 = vmatpush.msrb.mxu0 %v4004_v26  ;;  %2228 = vmatmul.f32.vlgmr.msra.gmra.mxu2 %v3806_v61  ;;  %4927 = vst [vmem:[#allocation54_spill] sm:$0xff] %v4016_v23  ;;  %v4028_v46 = vld [vmem:[#allocation11 + $0x5d0] sm:$0xff] }
 0x7aa   : > { %4928 = vst [vmem:[#allocation55_spill] sm:$0xff] %v4018_v0  ;;  %2188 = vmatmul.f32.vlgmr.msra.gmra.mxu0 %v3864_v18  ;;  %2248 = vmatmul.f32.vlgmr.msra.gmra.mxu3 %v3810_v24  ;;  %v2119_v55 = vld [vmem:[#allocation11 + $0x7f0] sm:$0xff] }
 0x7ab   : > { %4929 = vst [vmem:[#allocation56_spill] sm:$0xff] %v4022_v36  ;;  %2296 = vmatpush.msrb.mxu2 %v4010_v45  ;;  %2316 = vmatpush.msrb.mxu3 %v4012_v35  ;;  %v4032_v26 = vld [vmem:[#allocation11 + $0x130] sm:$0xff] }
 0x7ac   : > { %4930 = vst [vmem:[#allocation57_spill] sm:$0xff] %v4026_v19  ;;  %2332 = vmatpush.msra.mxu0 %v4016_v23  ;;  %2287 = vmatpush.msrb.mxu1 %v4018_v0  ;;  %v4036_v27 = vld [vmem:[#allocation11 + $0x330] sm:$0xff] }
 0x7ad   : > { %4931 = vst [vmem:[#allocation58_spill] sm:$0xff] %v4028_v46  ;;  %2208 = vmatmul.f32.vlgmr.msra.gmra.mxu1 %v3868_v20  ;;  %2297 = vmatpush.msrb.mxu2 %v4022_v36  ;;  %v4038_v45 = vld [vmem:[#allocation11 + $0x5b0] sm:$0xff] }
 0x7ae   : > { %4932 = vst [vmem:[#allocation59_spill] sm:$0xff] %v4032_v26  ;;  %2317 = vmatpush.msrb.mxu3 %v4026_v19  ;;  %2333 = vmatpush.msra.mxu0 %v4028_v46  ;;  %v2115_v35 = vld [vmem:[#allocation11 + $0x7d0] sm:$0xff] }
 0x7af   : > { %4933 = vst [vmem:[#allocation60_spill] sm:$0xff] %v4036_v27  ;;  %v4042_v2 = vld [vmem:[#allocation11 + $0x110] sm:$0xff]  ;;  %2352 = vmatpush.msra.mxu1 %v2119_v55  ;;  %2298 = vmatpush.msrb.mxu2 %v4032_v26 }
 0x7b0   : > { %4934 = vst [vmem:[#allocation61_spill] sm:$0xff] %v4038_v45  ;;  %v4045_v23 = vld [vmem:[#allocation11 + $0x310] sm:$0xff]  ;;  %2318 = vmatpush.msrb.mxu3 %v4036_v27  ;;  %2334 = vmatpush.msra.mxu0 %v4038_v45 }
 0x7b1   : > { %4935 = vst [vmem:[#allocation62_spill] sm:$0xff] %v4042_v2  ;;  %v4047_v0 = vld [vmem:[#allocation11 + $0x590] sm:$0xff]  ;;  %2353 = vmatpush.msra.mxu1 %v2115_v35  ;;  %2299 = vmatpush.msrb.mxu2 %v4042_v2 }
 0x7b2   : > { %4936 = vst [vmem:[#allocation63_spill] sm:$0xff] %v4045_v23  ;;  %v2111_v36 = vld [vmem:[#allocation11 + $0x7b0] sm:$0xff]  ;;  %2319 = vmatpush.msrb.mxu3 %v4045_v23  ;;  %2335 = vmatpush.msra.mxu0 %v4047_v0 }
 0x7b3   : > { %4937 = vst [vmem:[#allocation64_spill] sm:$0xff] %v4047_v0  ;;  %v4052_v19 = vld [vmem:[#allocation11 + $0xf0] sm:$0xff]  ;;  %2354 = vmatpush.msra.mxu1 %v2111_v36  ;;  %2268 = vmatmul.f32.vlgmr.msrb.gmra.mxu0 %v3864_v18 }
 0x7b4   : > { %4938 = vst [vmem:[#allocation65_spill] sm:$0xff] %v4052_v19  ;;  %v4054_v46 = vld [vmem:[#allocation11 + $0x2f0] sm:$0xff]  ;;  %2300 = vmatpush.msrb.mxu2 %v4052_v19 }
 0x7b5   : > { %4939 = vst [vmem:[#allocation66_spill] sm:$0xff] %v4054_v46  ;;  %v4058_v55 = vld [vmem:[#allocation11 + $0x570] sm:$0xff]  ;;  %2320 = vmatpush.msrb.mxu3 %v4054_v46  ;;  %2288 = vmatmul.f32.vlgmr.msrb.gmra.mxu1 %v3868_v20 }
 0x7b6   : > { %4940 = vst [vmem:[#allocation67_spill] sm:$0xff] %v4058_v55  ;;  %v2107_v26 = vld [vmem:[#allocation11 + $0x790] sm:$0xff]  ;;  %2336 = vmatpush.msra.mxu0 %v4058_v55 }
 0x7b7   : > { %v4061_v27 = vld [vmem:[#allocation11 + $0xd0] sm:$0xff]  ;;  %2355 = vmatpush.msra.mxu1 %v2107_v26 }
 0x7b8   : > { %4941 = vst [vmem:[#allocation68_spill] sm:$0xff] %v4061_v27  ;;  %v4065_v35 = vld [vmem:[#allocation11 + $0x2d0] sm:$0xff]  ;;  %2301 = vmatpush.msrb.mxu2 %v4061_v27 }
 0x7b9   : > { %4942 = vst [vmem:[#allocation69_spill] sm:$0xff] %v4065_v35  ;;  %v4067_v45 = vld [vmem:[#allocation11 + $0x550] sm:$0xff]  ;;  %2321 = vmatpush.msrb.mxu3 %v4065_v35 }
 0x7ba   : > { %4943 = vst [vmem:[#allocation70_spill] sm:$0xff] %v4067_v45  ;;  %v2103_v0 = vld [vmem:[#allocation11 + $0x770] sm:$0xff]  ;;  %2337 = vmatpush.msra.mxu0 %v4067_v45 }
 0x7bb   : > { %v4070_v23 = vld [vmem:[#allocation11 + $0xb0] sm:$0xff]  ;;  %2356 = vmatpush.msra.mxu1 %v2103_v0 }
 0x7bc   : > { %4944 = vst [vmem:[#allocation71_spill] sm:$0xff] %v4070_v23  ;;  %v4074_v36 = vld [vmem:[#allocation11 + $0x2b0] sm:$0xff]  ;;  %2302 = vmatpush.msrb.mxu2 %v4070_v23 }
 0x7bd   : > { %4945 = vst [vmem:[#allocation72_spill] sm:$0xff] %v4074_v36  ;;  %v4076_v2 = vld [vmem:[#allocation11 + $0x530] sm:$0xff]  ;;  %2322 = vmatpush.msrb.mxu3 %v4074_v36 }
 0x7be   : > { %4946 = vst [vmem:[#allocation73_spill] sm:$0xff] %v4076_v2  ;;  %v4080_v46 = vld [vmem:[#allocation11 + $0x750] sm:$0xff]  ;;  %2338 = vmatpush.msra.mxu0 %v4076_v2 }
 0x7bf   : > { %4947 = vst [vmem:[#allocation74_spill] sm:$0xff] %v4080_v46  ;;  %v4082_v19 = vld [vmem:[#allocation11 + $0x90] sm:$0xff]  ;;  %2357 = vmatpush.msra.mxu1 %v4080_v46 }
 0x7c0   : > { %4948 = vst [vmem:[#allocation75_spill] sm:$0xff] %v4082_v19  ;;  %v4085_v26 = vld [vmem:[#allocation11 + $0x290] sm:$0xff]  ;;  %2303 = vmatpush.msrb.mxu2 %v4082_v19 }
 0x7c1   : > { %4949 = vst [vmem:[#allocation76_spill] sm:$0xff] %v4085_v26  ;;  %v4087_v55 = vld [vmem:[#allocation11 + $0x510] sm:$0xff]  ;;  %2323 = vmatpush.msrb.mxu3 %v4085_v26 }
 0x7c2   : > { %4950 = vst [vmem:[#allocation77_spill] sm:$0xff] %v4087_v55  ;;  %v4091_v27 = vld [vmem:[#allocation11 + $0x730] sm:$0xff]  ;;  %2339 = vmatpush.msra.mxu0 %v4087_v55 }
 0x7c3   : > { %4951 = vst [vmem:[#allocation78_spill] sm:$0xff] %v4091_v27  ;;  %v4093_v35 = vld [vmem:[#allocation11 + $0x70] sm:$0xff]  ;;  %2358 = vmatpush.msra.mxu1 %v4091_v27 }
 0x7c4   : > { %4952 = vst [vmem:[#allocation79_spill] sm:$0xff] %v4093_v35  ;;  %v4097_v45 = vld [vmem:[#allocation11 + $0x270] sm:$0xff]  ;;  %2304 = vmatpush.msrb.mxu2 %v4093_v35 }
 0x7c5   : > { %4953 = vst [vmem:[#allocation80_spill] sm:$0xff] %v4097_v45  ;;  %v4099_v0 = vld [vmem:[#allocation11 + $0x4f0] sm:$0xff]  ;;  %2324 = vmatpush.msrb.mxu3 %v4097_v45 }
 0x7c6   : > { %4954 = vst [vmem:[#allocation81_spill] sm:$0xff] %v4099_v0  ;;  %v4103_v23 = vld [vmem:[#allocation11 + $0x710] sm:$0xff]  ;;  %2340 = vmatpush.msra.mxu0 %v4099_v0 }
 0x7c7   : > { %4955 = vst [vmem:[#allocation82_spill] sm:$0xff] %v4103_v23  ;;  %v4105_v36 = vld [vmem:[#allocation11 + $0x50] sm:$0xff]  ;;  %2359 = vmatpush.msra.mxu1 %v4103_v23 }
 0x7c8   : > { %4956 = vst [vmem:[#allocation83_spill] sm:$0xff] %v4105_v36  ;;  %v4109_v2 = vld [vmem:[#allocation11 + $0x250] sm:$0xff]  ;;  %2305 = vmatpush.msrb.mxu2 %v4105_v36 }
 0x7c9   : > { %4957 = vst [vmem:[#allocation84_spill] sm:$0xff] %v4109_v2  ;;  %v4111_v46 = vld [vmem:[#allocation11 + $0x4d0] sm:$0xff]  ;;  %2325 = vmatpush.msrb.mxu3 %v4109_v2 }
 0x7ca   : > { %4958 = vst [vmem:[#allocation85_spill] sm:$0xff] %v4111_v46  ;;  %v4115_v19 = vld [vmem:[#allocation11 + $0x6f0] sm:$0xff]  ;;  %2341 = vmatpush.msra.mxu0 %v4111_v46  ;;  %v4143_v46 = vld [vmem:[#allocation11 + $0x1f8] sm:$0xff] }
 0x7cb   : > { %4959 = vst [vmem:[#allocation86_spill] sm:$0xff] %v4115_v19  ;;  %v4117_v26 = vld [vmem:[#allocation11 + $0x30] sm:$0xff]  ;;  %2360 = vmatpush.msra.mxu1 %v4115_v19  ;;  %v4147_v19 = vld [vmem:[#allocation11 + $0x3f8] sm:$0xff] }
 0x7cc   : > { %4960 = vst [vmem:[#allocation87_spill] sm:$0xff] %v4117_v26  ;;  %v4121_v55 = vld [vmem:[#allocation11 + $0x230] sm:$0xff]  ;;  %2306 = vmatpush.msrb.mxu2 %v4117_v26 }
 0x7cd   : > { %4961 = vst [vmem:[#allocation88_spill] sm:$0xff] %v4121_v55  ;;  %v4123_v27 = vld [vmem:[#allocation11 + $0x4b0] sm:$0xff]  ;;  %2326 = vmatpush.msrb.mxu3 %v4121_v55  ;;  %v4155_v55 = vld [vmem:[#allocation11 + $0x1d8] sm:$0xff] }
 0x7ce   : > { %4962 = vst [vmem:[#allocation89_spill] sm:$0xff] %v4123_v27  ;;  %v4127_v35 = vld [vmem:[#allocation11 + $0x6d0] sm:$0xff]  ;;  %2342 = vmatpush.msra.mxu0 %v4123_v27 }
 0x7cf   : > { %4963 = vst [vmem:[#allocation90_spill] sm:$0xff] %v4127_v35  ;;  %v4129_v45 = vld [vmem:[#allocation11 + $0x10] sm:$0xff]  ;;  %2361 = vmatpush.msra.mxu1 %v4127_v35  ;;  %v4159_v35 = vld [vmem:[#allocation11 + $0x3d8] sm:$0xff] }
 0x7d0   : > { %4964 = vst [vmem:[#allocation91_spill] sm:$0xff] %v4129_v45  ;;  %v4133_v0 = vld [vmem:[#allocation11 + $0x210] sm:$0xff]  ;;  %2307 = vmatpush.msrb.mxu2 %v4129_v45  ;;  %v4171_v45 = vld [vmem:[#allocation11 + $0x3b8] sm:$0xff] }
 0x7d1   : > { %4965 = vst [vmem:[#allocation92_spill] sm:$0xff] %v4133_v0  ;;  %v4135_v23 = vld [vmem:[#allocation11 + $0x490] sm:$0xff]  ;;  %2327 = vmatpush.msrb.mxu3 %v4133_v0  ;;  %2308 = vmatmul.f32.vlgmr.msrb.gmra.mxu2 %v3806_v61 }
 0x7d2   : > { %4966 = vst [vmem:[#allocation93_spill] sm:$0xff] %v4135_v23  ;;  %v4139_v36 = vld [vmem:[#allocation11 + $0x6b0] sm:$0xff]  ;;  %2343 = vmatpush.msra.mxu0 %v4135_v23  ;;  %2328 = vmatmul.f32.vlgmr.msrb.gmra.mxu3 %v3810_v24 }
 0x7d3   : > { %4967 = vst [vmem:[#allocation94_spill] sm:$0xff] %v4139_v36  ;;  %v4149_v2 = vld [vmem:[#allocation11 + $0x470] sm:$0xff]  ;;  %2362 = vmatpush.msra.mxu1 %v4139_v36  ;;  %2372 = vmatpush.msra.mxu2 %v4143_v46  ;;  %v4167_v36 = vld [vmem:[#allocation11 + $0x1b8] sm:$0xff] }
 0x7d4   : > { %4968 = vst [vmem:[#allocation95_spill] sm:$0xff] %v4143_v46  ;;  %v4153_v27 = vld [vmem:[#allocation11 + $0x690] sm:$0xff]  ;;  %2392 = vmatpush.msra.mxu3 %v4147_v19  ;;  %2344 = vmatpush.msra.mxu0 %v4149_v2 }
 0x7d5   : > { %4969 = vst [vmem:[#allocation96_spill] sm:$0xff] %v4147_v19  ;;  %v4161_v0 = vld [vmem:[#allocation11 + $0x450] sm:$0xff]  ;;  %2363 = vmatpush.msra.mxu1 %v4153_v27  ;;  %2373 = vmatpush.msra.mxu2 %v4155_v55  ;;  %v4179_v19 = vld [vmem:[#allocation11 + $0x198] sm:$0xff] }
 0x7d6   : > { %4970 = vst [vmem:[#allocation97_spill] sm:$0xff] %v4149_v2  ;;  %v4165_v23 = vld [vmem:[#allocation11 + $0x670] sm:$0xff]  ;;  %2393 = vmatpush.msra.mxu3 %v4159_v35  ;;  %2345 = vmatpush.msra.mxu0 %v4161_v0  ;;  %v4183_v2 = vld [vmem:[#allocation11 + $0x398] sm:$0xff] }
 0x7d7   : > { %4971 = vst [vmem:[#allocation98_spill] sm:$0xff] %v4153_v27  ;;  %v4173_v26 = vld [vmem:[#allocation11 + $0x430] sm:$0xff]  ;;  %2364 = vmatpush.msra.mxu1 %v4165_v23  ;;  %2374 = vmatpush.msra.mxu2 %v4167_v36 }
 0x7d8   : > { %4972 = vst [vmem:[#allocation99_spill] sm:$0xff] %v4155_v55  ;;  %v4177_v46 = vld [vmem:[#allocation11 + $0x650] sm:$0xff]  ;;  %2394 = vmatpush.msra.mxu3 %v4171_v45  ;;  %2346 = vmatpush.msra.mxu0 %v4173_v26 }
 0x7d9   : > { %4973 = vst [vmem:[#allocation100_spill] sm:$0xff] %v4159_v35  ;;  %v4185_v27 = vld [vmem:[#allocation11 + $0x410] sm:$0xff]  ;;  %2365 = vmatpush.msra.mxu1 %v4177_v46  ;;  %2375 = vmatpush.msra.mxu2 %v4179_v19  ;;  %v4195_v35 = vld [vmem:[#allocation11 + $0x378] sm:$0xff] }
 0x7da   : > { %4974 = vst [vmem:[#allocation101_spill] sm:$0xff] %v4161_v0  ;;  %v4189_v55 = vld [vmem:[#allocation11 + $0x630] sm:$0xff]  ;;  %v4193_v0 = vld [vmem:[#allocation11 + $0x178] sm:$0xff]  ;;  %2395 = vmatpush.msra.mxu3 %v4183_v2  ;;  %2347 = vmatpush.msra.mxu0 %v4185_v27 }
 0x7db   : > { %4975 = vst [vmem:[#allocation102_spill] sm:$0xff] %v4165_v23  ;;  %v4199_v23 = vld [vmem:[#allocation11 + $0x5f8] sm:$0xff]  ;;  %2366 = vmatpush.msra.mxu1 %v4189_v55  ;;  %2348 = vmatmul.f32.vlgmr.msra.gmra.mxu0 %v3864_v18 }
 0x7dc   : > { %4976 = vst [vmem:[#allocation103_spill] sm:$0xff] %v4167_v36  ;;  %v4201_v36 = vld [vmem:[#allocation11 + $0x610] sm:$0xff]  ;;  %2376 = vmatpush.msra.mxu2 %v4193_v0  ;;  %2396 = vmatpush.msra.mxu3 %v4195_v35 }
 0x7dd   : > { %4977 = vst [vmem:[#allocation104_spill] sm:$0xff] %v4171_v45  ;;  %v4211_v45 = vld [vmem:[#allocation11 + $0x5d8] sm:$0xff]  ;;  %2412 = vmatpush.msrb.mxu0 %v4199_v23  ;;  %2367 = vmatpush.msra.mxu1 %v4201_v36 }
 0x7de   : > { %4978 = vst [vmem:[#allocation105_spill] sm:$0xff] %v4173_v26  ;;  %v4205_v26 = vld [vmem:[#allocation11 + $0x158] sm:$0xff]  ;;  %2368 = vmatmul.f32.vlgmr.msra.gmra.mxu1 %v3868_v20 }
 0x7df   : > { %4979 = vst [vmem:[#allocation106_spill] sm:$0xff] %v4177_v46  ;;  %v4209_v46 = vld [vmem:[#allocation11 + $0x358] sm:$0xff]  ;;  %2377 = vmatpush.msra.mxu2 %v4205_v26  ;;  %2413 = vmatpush.msrb.mxu0 %v4211_v45 }
 0x7e0   : > { %4980 = vst [vmem:[#allocation107_spill] sm:$0xff] %v4179_v19  ;;  %2397 = vmatpush.msra.mxu3 %v4209_v46  ;;  %v4235_v19 = vld [vmem:[#allocation11 + $0x598] sm:$0xff] }
 0x7e1   : > { %4981 = vst [vmem:[#allocation108_spill] sm:$0xff] %v4183_v2  ;;  %v4217_v2 = vld [vmem:[#allocation11 + $0x138] sm:$0xff] }
 0x7e2   : > { %4982 = vst [vmem:[#allocation109_spill] sm:$0xff] %v4185_v27  ;;  %v4215_v27 = vld [vmem:[#allocation11 + $0x7f8] sm:$0xff]  ;;  %2378 = vmatpush.msra.mxu2 %v4217_v2 }
 0x7e3   : > { %4983 = vst [vmem:[#allocation110_spill] sm:$0xff] %v4189_v55  ;;  %v4221_v55 = vld [vmem:[#allocation11 + $0x338] sm:$0xff]  ;;  %2432 = vmatpush.msrb.mxu1 %v4215_v27 }
 0x7e4   : > { %4984 = vst [vmem:[#allocation111_spill] sm:$0xff] %v4193_v0  ;;  %v4223_v0 = vld [vmem:[#allocation11 + $0x5b8] sm:$0xff]  ;;  %2398 = vmatpush.msra.mxu3 %v4221_v55 }
 0x7e5   : > { %4985 = vst [vmem:[#allocation112_spill] sm:$0xff] %v4195_v35  ;;  %v4227_v35 = vld [vmem:[#allocation11 + $0x7d8] sm:$0xff]  ;;  %2414 = vmatpush.msrb.mxu0 %v4223_v0 }
 0x7e6   : > { %4986 = vst [vmem:[#allocation113_spill] sm:$0xff] %v4199_v23  ;;  %v4229_v23 = vld [vmem:[#allocation11 + $0x118] sm:$0xff]  ;;  %2433 = vmatpush.msrb.mxu1 %v4227_v35 }
 0x7e7   : > { %4987 = vst [vmem:[#allocation114_spill] sm:$0xff] %v4201_v36  ;;  %v4233_v36 = vld [vmem:[#allocation11 + $0x318] sm:$0xff]  ;;  %2379 = vmatpush.msra.mxu2 %v4229_v23  ;;  %2415 = vmatpush.msrb.mxu0 %v4235_v19 }
 0x7e8   : > { %4988 = vst [vmem:[#allocation115_spill] sm:$0xff] %v4205_v26  ;;  %v4239_v26 = vld [vmem:[#allocation11 + $0x7b8] sm:$0xff]  ;;  %2399 = vmatpush.msra.mxu3 %v4233_v36 }
 0x7e9   : > { %4989 = vst [vmem:[#allocation116_spill] sm:$0xff] %v4209_v46  ;;  %v4248_v46 = vld [vmem:[#allocation11 + $0x2f8] sm:$0xff]  ;;  %2434 = vmatpush.msrb.mxu1 %v4239_v26 }
 0x7ea   : > { %4990 = vst [vmem:[#allocation117_spill] sm:$0xff] %v4211_v45  ;;  %v1861_v45 = vld [vmem:[%s4729_s2] sm:$0xff]  ;;  %2400 = vmatpush.msra.mxu3 %v4248_v46 }
 0x7eb   : > { %4991 = vst [vmem:[#allocation118_spill] sm:$0xff] %v4215_v27  ;;  %v4246_v27 = vld [vmem:[#allocation11 + $0xf8] sm:$0xff]  ;;  %2803 = vxpose.xlu1.b32.start [1/4] (short) (narrow) %v1861_v45, 8 }
 0x7ec   : > { %4992 = vst [vmem:[#allocation119_spill] sm:$0xff] %v4217_v2  ;;  %v4257_v2 = vld [vmem:[#allocation11 + $0xd8] sm:$0xff]  ;;  %2380 = vmatpush.msra.mxu2 %v4246_v27 }
 0x7ed   : > { %4993 = vst [vmem:[#allocation120_spill] sm:$0xff] %v4221_v55  ;;  %v4252_v55 = vld [vmem:[#allocation11 + $0x578] sm:$0xff] }
 0x7ee   : > { %4994 = vst [vmem:[#allocation121_spill] sm:$0xff] %v4223_v0  ;;  %v4254_v0 = vld [vmem:[#allocation11 + $0x798] sm:$0xff]  ;;  %2416 = vmatpush.msrb.mxu0 %v4252_v55  ;;  %2381 = vmatpush.msra.mxu2 %v4257_v2 }
 0x7ef   : > { %4995 = vst [vmem:[#allocation122_spill] sm:$0xff] %v4227_v35  ;;  %v4259_v35 = vld [vmem:[#allocation11 + $0x2d8] sm:$0xff]  ;;  %2435 = vmatpush.msrb.mxu1 %v4254_v0 }
 0x7f0   : > { %4996 = vst [vmem:[#allocation123_spill] sm:$0xff] %v4229_v23  ;;  %v4263_v23 = vld [vmem:[#allocation11 + $0x558] sm:$0xff]  ;;  %2401 = vmatpush.msra.mxu3 %v4259_v35 }
 0x7f1   : > { %4997 = vst [vmem:[#allocation124_spill] sm:$0xff] %v4233_v36  ;;  %v4265_v36 = vld [vmem:[#allocation11 + $0x778] sm:$0xff]  ;;  %2417 = vmatpush.msrb.mxu0 %v4263_v23 }
 0x7f2   : > { %4998 = vst [vmem:[#allocation125_spill] sm:$0xff] %v4235_v19  ;;  %v4269_v19 = vld [vmem:[#allocation11 + $0xb8] sm:$0xff]  ;;  %2436 = vmatpush.msrb.mxu1 %v4265_v36 }
 0x7f3   : > { %4999 = vst [vmem:[#allocation126_spill] sm:$0xff] %v4239_v26  ;;  %v4271_v26 = vld [vmem:[#allocation11 + $0x2b8] sm:$0xff]  ;;  %2382 = vmatpush.msra.mxu2 %v4269_v19 }
 0x7f4   : > { %5000 = vst [vmem:[#allocation127_spill] sm:$0xff] %v4246_v27  ;;  %v4275_v45 = vld [vmem:[#allocation11 + $0x538] sm:$0xff]  ;;  %2402 = vmatpush.msra.mxu3 %v4271_v26 }
 0x7f5   : > { %5001 = vst [vmem:[#allocation128_spill] sm:$0xff] %v4248_v46  ;;  %v4277_v27 = vld [vmem:[#allocation11 + $0x758] sm:$0xff]  ;;  %2418 = vmatpush.msrb.mxu0 %v4275_v45 }
 0x7f6   : > { %5002 = vst [vmem:[#allocation129_spill] sm:$0xff] %v4252_v55  ;;  %v4281_v46 = vld [vmem:[#allocation11 + $0x98] sm:$0xff]  ;;  %2437 = vmatpush.msrb.mxu1 %v4277_v27 }
 0x7f7   : > { %5003 = vst [vmem:[#allocation130_spill] sm:$0xff] %v4254_v0  ;;  %v4283_v55 = vld [vmem:[#allocation11 + $0x298] sm:$0xff]  ;;  %2383 = vmatpush.msra.mxu2 %v4281_v46 }
 0x7f8   : > { %5004 = vst [vmem:[#allocation131_spill] sm:$0xff] %v4257_v2  ;;  %v4287_v0 = vld [vmem:[#allocation11 + $0x518] sm:$0xff]  ;;  %2403 = vmatpush.msra.mxu3 %v4283_v55 }
 0x7f9   : > { %5005 = vst [vmem:[#allocation132_spill] sm:$0xff] %v4259_v35  ;;  %v4289_v2 = vld [vmem:[#allocation11 + $0x738] sm:$0xff]  ;;  %2419 = vmatpush.msrb.mxu0 %v4287_v0 }
 0x7fa   : > { %5006 = vst [vmem:[#allocation133_spill] sm:$0xff] %v4263_v23  ;;  %v4296_v23 = vld [vmem:[#allocation11 + $0x78] sm:$0xff]  ;;  %2438 = vmatpush.msrb.mxu1 %v4289_v2 }
 0x7fb   : > { %5007 = vst [vmem:[#allocation134_spill] sm:$0xff] %v4265_v36  ;;  %v1862_v36 = vld [vmem:[%s4729_s2 + $0x8] sm:$0xff]  ;;  %2384 = vmatpush.msra.mxu2 %v4296_v23 }
 0x7fc   : > { %5008 = vst [vmem:[#allocation135_spill] sm:$0xff] %v4269_v19  ;;  %v4300_v35 = vld [vmem:[#allocation11 + $0x278] sm:$0xff]  ;;  %2804 = vxpose.xlu1.b32.cont [2/4] (short) (narrow) %v1862_v36, 8 }
 0x7fd   : > { %5009 = vst [vmem:[#allocation136_spill] sm:$0xff] %v4271_v26  ;;  %v4302_v26 = vld [vmem:[#allocation11 + $0x4f8] sm:$0xff]  ;;  %2404 = vmatpush.msra.mxu3 %v4300_v35 }
 0x7fe   : > { %5010 = vst [vmem:[#allocation137_spill] sm:$0xff] %v4275_v45  ;;  %v4306_v45 = vld [vmem:[#allocation11 + $0x718] sm:$0xff]  ;;  %2420 = vmatpush.msrb.mxu0 %v4302_v26 }
 0x7ff   : > { %5011 = vst [vmem:[#allocation138_spill] sm:$0xff] %v4277_v27  ;;  %v4308_v27 = vld [vmem:[#allocation11 + $0x58] sm:$0xff]  ;;  %2439 = vmatpush.msrb.mxu1 %v4306_v45 }
 0x800   : > { %5012 = vst [vmem:[#allocation139_spill] sm:$0xff] %v4281_v46  ;;  %v4311_v19 = vld [vmem:[#allocation11 + $0x258] sm:$0xff]  ;;  %2385 = vmatpush.msra.mxu2 %v4308_v27 }
 0x801   : > { %5013 = vst [vmem:[#allocation140_spill] sm:$0xff] %v4283_v55  ;;  %v4313_v46 = vld [vmem:[#allocation11 + $0x4d8] sm:$0xff]  ;;  %2405 = vmatpush.msra.mxu3 %v4311_v19 }
 0x802   : > { %5014 = vst [vmem:[#allocation141_spill] sm:$0xff] %v4287_v0  ;;  %v4317_v55 = vld [vmem:[#allocation11 + $0x6f8] sm:$0xff]  ;;  %2421 = vmatpush.msrb.mxu0 %v4313_v46 }
 0x803   : > { %5015 = vst [vmem:[#allocation142_spill] sm:$0xff] %v4289_v2  ;;  %v4319_v0 = vld [vmem:[#allocation11 + $0x38] sm:$0xff]  ;;  %2440 = vmatpush.msrb.mxu1 %v4317_v55 }
 0x804   : > { %5016 = vst [vmem:[#allocation143_spill] sm:$0xff] %v4296_v23  ;;  %v4323_v2 = vld [vmem:[#allocation11 + $0x238] sm:$0xff]  ;;  %2386 = vmatpush.msra.mxu2 %v4319_v0 }
 0x805   : > { %5017 = vst [vmem:[#allocation144_spill] sm:$0xff] %v4300_v35  ;;  %v4325_v36 = vld [vmem:[#allocation11 + $0x4b8] sm:$0xff]  ;;  %2406 = vmatpush.msra.mxu3 %v4323_v2 }
 0x806   : > { %5018 = vst [vmem:[#allocation145_spill] sm:$0xff] %v4302_v26  ;;  %v4329_v23 = vld [vmem:[#allocation11 + $0x6d8] sm:$0xff]  ;;  %2422 = vmatpush.msrb.mxu0 %v4325_v36 }
 0x807   : > { %5019 = vst [vmem:[#allocation146_spill] sm:$0xff] %v4306_v45  ;;  %v4331_v35 = vld [vmem:[#allocation11 + $0x18] sm:$0xff]  ;;  %2441 = vmatpush.msrb.mxu1 %v4329_v23 }
 0x808   : > { %5020 = vst [vmem:[#allocation147_spill] sm:$0xff] %v4308_v27  ;;  %v4335_v26 = vld [vmem:[#allocation11 + $0x218] sm:$0xff]  ;;  %2387 = vmatpush.msra.mxu2 %v4331_v35 }
 0x809   : > { %5021 = vst [vmem:[#allocation148_spill] sm:$0xff] %v4311_v19  ;;  %v4337_v45 = vld [vmem:[#allocation11 + $0x498] sm:$0xff]  ;;  %2407 = vmatpush.msra.mxu3 %v4335_v26  ;;  %2388 = vmatmul.f32.vlgmr.msra.gmra.mxu2 %v3806_v61 }
 0x80a   : > { %5022 = vst [vmem:[#allocation149_spill] sm:$0xff] %v4313_v46  ;;  %v4341_v27 = vld [vmem:[#allocation11 + $0x6b8] sm:$0xff]  ;;  %2423 = vmatpush.msrb.mxu0 %v4337_v45  ;;  %2408 = vmatmul.f32.vlgmr.msra.gmra.mxu3 %v3810_v24 }
 0x80b   : > { %5023 = vst [vmem:[#allocation150_spill] sm:$0xff] %v4317_v55  ;;  %v1863_v55 = vld [vmem:[%s4729_s2 + $0x10] sm:$0xff]  ;;  %v4350_v46 = vld [vmem:[#allocation11 + $0x478] sm:$0xff]  ;;  %2442 = vmatpush.msrb.mxu1 %v4341_v27 }
 0x80c   : > { %5024 = vst [vmem:[#allocation151_spill] sm:$0xff] %v4323_v2  ;;  %v4352_v19 = vld [vmem:[#allocation11 + $0x698] sm:$0xff]  ;;  %2805 = vxpose.xlu1.b32.cont [3/4] (short) (narrow) %v1863_v55, 8  ;;  %2424 = vmatpush.msrb.mxu0 %v4350_v46  ;;  %v3291_v2 = vld [vmem:[#allocation11 + $0x1e0] sm:$0xff] }
 0x80d   : > { %5025 = vst [vmem:[#allocation152_spill] sm:$0xff] %v4325_v36  ;;  %v4359_v36 = vld [vmem:[#allocation11 + $0x678] sm:$0xff]  ;;  %2443 = vmatpush.msrb.mxu1 %v4352_v19  ;;  %2479 = vmatpush.msrb.mxu2 %v3291_v2  ;;  %v3293_v55 = vld [vmem:[#allocation11 + $0x1c0] sm:$0xff]  ;;  %v1864_v2 = vld [vmem:[%s4729_s2 + $0x18] sm:$0xff] }
 0x80e   : > { %5026 = vst [vmem:[#allocation153_spill] sm:$0xff] %v4329_v23  ;;  %v4357_v23 = vld [vmem:[#allocation11 + $0x458] sm:$0xff] }
 0x80f   : > { %5027 = vst [vmem:[#allocation154_spill] sm:$0xff] %v4335_v26  ;;  %v4365_v26 = vld [vmem:[#allocation11 + $0x658] sm:$0xff]  ;;  %2425 = vmatpush.msrb.mxu0 %v4357_v23  ;;  %2444 = vmatpush.msrb.mxu1 %v4359_v36 }
 0x810   : > { %5028 = vst [vmem:[#allocation155_spill] sm:$0xff] %v4337_v45  ;;  %v4363_v45 = vld [vmem:[#allocation11 + $0x438] sm:$0xff]  ;;  %2480 = vmatpush.msrb.mxu2 %v3293_v55  ;;  %v3298_v55 = vld [vmem:[#allocation11 + $0x380] sm:$0xff] }
 0x811   : > { %5029 = vst [vmem:[#allocation156_spill] sm:$0xff] %v4341_v27  ;;  %v3292_v27 = vld [vmem:[#allocation11 + $0x3e0] sm:$0xff]  ;;  %v4369_v61 = vld [vmem:[#allocation11 + $0x418] sm:$0xff]  ;;  %2426 = vmatpush.msrb.mxu0 %v4363_v45  ;;  %2445 = vmatpush.msrb.mxu1 %v4365_v26 }
 0x812   : > { %5030 = vst [vmem:[#allocation157_spill] sm:$0xff] %v4350_v46  ;;  %2499 = vmatpush.msrb.mxu3 %v3292_v27  ;;  %v4371_v24 = vld [vmem:[#allocation11 + $0x638] sm:$0xff]  ;;  %v3294_v46 = vld [vmem:[#allocation11 + $0x3c0] sm:$0xff] }
 0x813   : > { %5031 = vst [vmem:[#allocation158_spill] sm:$0xff] %v4352_v19  ;;  %v4378_v27 = vld [vmem:[#allocation11 + $0x618] sm:$0xff]  ;;  %v3295_v19 = vld [vmem:[#allocation11 + $0x1a0] sm:$0xff]  ;;  %2427 = vmatpush.msrb.mxu0 %v4369_v61  ;;  %2446 = vmatpush.msrb.mxu1 %v4371_v24 }
 0x814   : > { %5032 = vst [vmem:[#allocation159_spill] sm:$0xff] %v4357_v23  ;;  %2500 = vmatpush.msrb.mxu3 %v3294_v46  ;;  %2481 = vmatpush.msrb.mxu2 %v3295_v19  ;;  %v3297_v46 = vld [vmem:[#allocation11 + $0x180] sm:$0xff] }
 0x815   : > { %5033 = vst [vmem:[#allocation160_spill] sm:$0xff] %v4359_v36  ;;  %v3296_v36 = vld [vmem:[#allocation11 + $0x3a0] sm:$0xff]  ;;  %2428 = vmatmul.f32.vlgmr.msrb.gmra.mxu0 %v3864_v18  ;;  %2806 = vxpose.xlu1.b32.end [4/4] (short) (narrow) %v1864_v2, 8 }
 0x816   : > { %5034 = vst [vmem:[#allocation161_spill] sm:$0xff] %v4363_v45  ;;  %2501 = vmatpush.msrb.mxu3 %v3296_v36  ;;  %2447 = vmatpush.msrb.mxu1 %v4378_v27  ;;  %v3300_v19 = vld [vmem:[#allocation11 + $0x5e0] sm:$0xff]  ;;  %v4391_v45 = vpop.f32.mrf.mxu1 }
 0x817   : > { %5035 = vst [vmem:[#allocation162_spill] sm:$0xff] %v4365_v26  ;;  %2482 = vmatpush.msrb.mxu2 %v3297_v46  ;;  %2448 = vmatmul.f32.vlgmr.msrb.gmra.mxu1 %v3868_v20  ;;  %v3299_v26 = vld [vmem:[#allocation11 + $0x160] sm:$0xff] }
 0x818   : > { %5036 = vst [vmem:[#allocation163_spill] sm:$0xff] %v4369_v61  ;;  %2502 = vmatpush.msrb.mxu3 %v3298_v55  ;;  %2519 = vmatpush.msra.mxu0 %v3300_v19  ;;  %v3301_v36 = vld [vmem:[#allocation11 + $0x360] sm:$0xff] }
 0x819   : > { %5037 = vst [vmem:[#allocation164_spill] sm:$0xff] %v4371_v24  ;;  %2483 = vmatpush.msrb.mxu2 %v3299_v26  ;;  %v3302_v61 = vld [vmem:[#allocation11 + $0x7e0] sm:$0xff] }
 0x81a   : > { %5038 = vst [vmem:[#allocation165_spill] sm:$0xff] %v4378_v27  ;;  %2503 = vmatpush.msrb.mxu3 %v3301_v36  ;;  %2539 = vmatpush.msra.mxu1 %v3302_v61  ;;  %v3303_v24 = vld [vmem:[#allocation11 + $0x140] sm:$0xff] }
 0x81b   : > { %2484 = vmatpush.msrb.mxu2 %v3303_v24  ;;  %v3304_v18 = vld [vmem:[#allocation11 + $0x5c0] sm:$0xff]  ;;  %5040 = vst [vmem:[#allocation167_spill] sm:$0xff] %v4391_v45 }
 0x81c   : > { %2520 = vmatpush.msra.mxu0 %v3304_v18  ;;  %v3305_v2 = vld [vmem:[#allocation11 + $0x340] sm:$0xff] }
 0x81d   : > { %2504 = vmatpush.msrb.mxu3 %v3305_v2  ;;  %v3306_v27 = vld [vmem:[#allocation11 + $0x7c0] sm:$0xff] }
 0x81e   : > { %2540 = vmatpush.msra.mxu1 %v3306_v27  ;;  %v3307_v46 = vld [vmem:[#allocation11 + $0x120] sm:$0xff] }
 0x81f   : > { %2485 = vmatpush.msrb.mxu2 %v3307_v46  ;;  %v3308_v20 = vld [vmem:[#allocation11 + $0x5a0] sm:$0xff] }
 0x820   : > { %2521 = vmatpush.msra.mxu0 %v3308_v20  ;;  %v3309_v55 = vld [vmem:[#allocation11 + $0x320] sm:$0xff] }
 0x821   : > { %2505 = vmatpush.msrb.mxu3 %v3309_v55  ;;  %v3310_v26 = vld [vmem:[#allocation11 + $0x7a0] sm:$0xff] }
 0x822   : > { %2541 = vmatpush.msra.mxu1 %v3310_v26  ;;  %v3311_v19 = vld [vmem:[#allocation11 + $0x100] sm:$0xff] }
 0x823   : > { %2486 = vmatpush.msrb.mxu2 %v3311_v19  ;;  %v3312_v36 = vld [vmem:[#allocation11 + $0x580] sm:$0xff] }
 0x824   : > { %2522 = vmatpush.msra.mxu0 %v3312_v36  ;;  %v3313_v61 = vld [vmem:[#allocation11 + $0x300] sm:$0xff] }
 0x825   : > { %2506 = vmatpush.msrb.mxu3 %v3313_v61  ;;  %v3314_v24 = vld [vmem:[#allocation11 + $0x780] sm:$0xff] }
 0x826   : > { %2542 = vmatpush.msra.mxu1 %v3314_v24  ;;  %v3315_v18 = vld [vmem:[#allocation11 + $0xe0] sm:$0xff]  ;;  %v4385_v24 = vpop.f32.mrf.mxu2 }
 0x827   : > { %2487 = vmatpush.msrb.mxu2 %v3315_v18  ;;  %v3316_v2 = vld [vmem:[#allocation11 + $0x560] sm:$0xff]  ;;  %v4387_v18 = vpop.f32.mrf.mxu3 }
 0x828   : > { %2523 = vmatpush.msra.mxu0 %v3316_v2  ;;  %v3317_v27 = vld [vmem:[#allocation11 + $0x2e0] sm:$0xff] }
 0x829   : > { %2507 = vmatpush.msrb.mxu3 %v3317_v27  ;;  %v3318_v46 = vld [vmem:[#allocation11 + $0x760] sm:$0xff] }
 0x82a   : > { %2543 = vmatpush.msra.mxu1 %v3318_v46  ;;  %v3319_v20 = vld [vmem:[#allocation11 + $0xc0] sm:$0xff]  ;;  %v4389_v46 = vpop.f32.mrf.mxu0 }
 0x82b   : > { %2488 = vmatpush.msrb.mxu2 %v3319_v20  ;;  %v3320_v55 = vld [vmem:[#allocation11 + $0x540] sm:$0xff]  ;;  %5039 = vst [vmem:[#allocation166_spill] sm:$0xff] %v4389_v46 }
 0x82c   : > { %2524 = vmatpush.msra.mxu0 %v3320_v55  ;;  %v3321_v26 = vld [vmem:[#allocation11 + $0x2c0] sm:$0xff] }
 0x82d   : > { %2508 = vmatpush.msrb.mxu3 %v3321_v26  ;;  %v3322_v19 = vld [vmem:[#allocation11 + $0x740] sm:$0xff] }
 0x82e   : > { %2544 = vmatpush.msra.mxu1 %v3322_v19  ;;  %v3323_v36 = vld [vmem:[#allocation11 + $0xa0] sm:$0xff]  ;;  %v4393_v45 = vpop.f32.mrf.mxu2 }
 0x82f   : > { %2489 = vmatpush.msrb.mxu2 %v3323_v36  ;;  %v3324_v61 = vld [vmem:[#allocation11 + $0x520] sm:$0xff] }
 0x830   : > { %2525 = vmatpush.msra.mxu0 %v3324_v61  ;;  %v3325_v2 = vld [vmem:[#allocation11 + $0x2a0] sm:$0xff] }
 0x831   : > { %2509 = vmatpush.msrb.mxu3 %v3325_v2  ;;  %v3326_v27 = vld [vmem:[#allocation11 + $0x720] sm:$0xff] }
 0x832   : > { %2545 = vmatpush.msra.mxu1 %v3326_v27  ;;  %v3327_v20 = vld [vmem:[#allocation11 + $0x80] sm:$0xff] }
 0x833   : > { %2490 = vmatpush.msrb.mxu2 %v3327_v20  ;;  %v3328_v55 = vld [vmem:[#allocation11 + $0x500] sm:$0xff] }
 0x834   : > { %2526 = vmatpush.msra.mxu0 %v3328_v55  ;;  %v3329_v26 = vld [vmem:[#allocation11 + $0x280] sm:$0xff] }
 0x835   : > { %2510 = vmatpush.msrb.mxu3 %v3329_v26  ;;  %v3330_v19 = vld [vmem:[#allocation11 + $0x700] sm:$0xff] }
 0x836   : > { %2546 = vmatpush.msra.mxu1 %v3330_v19  ;;  %v3331_v36 = vld [vmem:[#allocation11 + $0x60] sm:$0xff] }
 0x837   : > { %2491 = vmatpush.msrb.mxu2 %v3331_v36  ;;  %v3332_v61 = vld [vmem:[#allocation11 + $0x4e0] sm:$0xff] }
 0x838   : > { %2527 = vmatpush.msra.mxu0 %v3332_v61  ;;  %v3333_v23 = vld [vmem:[#allocation11 + $0x260] sm:$0xff] }
 0x839   : > { %2511 = vmatpush.msrb.mxu3 %v3333_v23  ;;  %v3334_v2 = vld [vmem:[#allocation11 + $0x6e0] sm:$0xff]  ;;  %v4395_v23 = vpop.f32.mrf.mxu3 }
 0x83a   : > { %2547 = vmatpush.msra.mxu1 %v3334_v2  ;;  %v3335_v27 = vld [vmem:[#allocation11 + $0x40] sm:$0xff] }
 0x83b   : > { %2492 = vmatpush.msrb.mxu2 %v3335_v27  ;;  %v3336_v46 = vld [vmem:[#allocation11 + $0x4c0] sm:$0xff] }
 0x83c   : > { %2528 = vmatpush.msra.mxu0 %v3336_v46  ;;  %v3337_v20 = vld [vmem:[#allocation11 + $0x240] sm:$0xff] }
 0x83d   : > { %2512 = vmatpush.msrb.mxu3 %v3337_v20  ;;  %v3338_v55 = vld [vmem:[#allocation11 + $0x6c0] sm:$0xff]  ;;  %v4398_v20 = vpop.f32.mrf.mxu0 }
 0x83e   : > { %2548 = vmatpush.msra.mxu1 %v3338_v55  ;;  %v3339_v26 = vld [vmem:[#allocation11 + $0x20] sm:$0xff] }
 0x83f   : > { %2493 = vmatpush.msrb.mxu2 %v3339_v26  ;;  %v3340_v19 = vld [vmem:[#allocation11 + $0x4a0] sm:$0xff] }
 0x840   : > { %2529 = vmatpush.msra.mxu0 %v3340_v19  ;;  %v3341_v36 = vld [vmem:[#allocation11 + $0x220] sm:$0xff] }
 0x841   : > { %2513 = vmatpush.msrb.mxu3 %v3341_v36  ;;  %v3342_v61 = vld [vmem:[#allocation11 + $0x6a0] sm:$0xff]  ;;  %v4403_v36 = vpop.f32.mrf.mxu1 }
 0x842   : > { %2549 = vmatpush.msra.mxu1 %v3342_v61  ;;  %v3343_v2 = vld [vmem:[#allocation11] sm:$0xff] }
 0x843   : > { %2494 = vmatpush.msrb.mxu2 %v3343_v2  ;;  %v3344_v27 = vld [vmem:[#allocation11 + $0x480] sm:$0xff]  ;;  %v4411_v2 = vpop.f32.mrf.mxu3 }
 0x844   : > { %2530 = vmatpush.msra.mxu0 %v3344_v27  ;;  %v3345_v46 = vld [vmem:[#allocation11 + $0x200] sm:$0xff]  ;;  %v5054_v27 = vld [vmem:[#allocation55_spill] sm:$0xff] }
 0x845   : > { %2559 = vmatpush.msra.mxu2 %v3784_v37  ;;  %2514 = vmatpush.msrb.mxu3 %v3345_v46  ;;  %v3346_v55 = vld [vmem:[#allocation11 + $0x460] sm:$0xff] }
 0x846   : > { %2531 = vmatpush.msra.mxu0 %v3346_v55  ;;  %v3347_v26 = vld [vmem:[#allocation11 + $0x680] sm:$0xff]  ;;  %v5055_v55 = vld [vmem:[#allocation45_spill] sm:$0xff] }
 0x847   : > { %2579 = vmatpush.msra.mxu3 %v3786_v39  ;;  %2560 = vmatpush.msra.mxu2 %v3792_v47  ;;  %v3348_v19 = vld [vmem:[#allocation11 + $0x440] sm:$0xff] }
 0x848   : > { %2550 = vmatpush.msra.mxu1 %v3347_v26  ;;  %2532 = vmatpush.msra.mxu0 %v3348_v19  ;;  %v3349_v37 = vld [vmem:[#allocation11 + $0x660] sm:$0xff]  ;;  %v5056_v19 = vld [vmem:[#allocation49_spill] sm:$0xff] }
 0x849   : > { %2580 = vmatpush.msra.mxu3 %v3794_v48  ;;  %2561 = vmatpush.msra.mxu2 %v3798_v49  ;;  %v3350_v61 = vld [vmem:[#allocation11 + $0x420] sm:$0xff]  ;;  %v4409_v48 = vpop.f32.mrf.mxu2  ;;  %v3353_v49 = vld [vmem:[#allocation11 + $0x5e8] sm:$0xff] }
 0x84a   : > { %2551 = vmatpush.msra.mxu1 %v3349_v37  ;;  %2533 = vmatpush.msra.mxu0 %v3350_v61  ;;  %v3351_v39 = vld [vmem:[#allocation11 + $0x640] sm:$0xff]  ;;  %v5057_v37 = vld [vmem:[#allocation52_spill] sm:$0xff] }
 0x84b   : > { %2581 = vmatpush.msra.mxu3 %v3802_v57  ;;  %2562 = vmatpush.msra.mxu2 %v3812_v43  ;;  %v3352_v47 = vld [vmem:[#allocation11 + $0x400] sm:$0xff]  ;;  %v4417_v43 = vpop.f32.mrf.mxu0 }
 0x84c   : > { %2552 = vmatpush.msra.mxu1 %v3351_v39  ;;  %2534 = vmatpush.msra.mxu0 %v3352_v47  ;;  %v3354_v57 = vld [vmem:[#allocation11 + $0x620] sm:$0xff]  ;;  %v5059_v39 = vld [vmem:[#allocation56_spill] sm:$0xff] }
 0x84d   : > { %2582 = vmatpush.msra.mxu3 %v3814_v4  ;;  %2563 = vmatpush.msra.mxu2 %v3822_v9  ;;  %v3355_v4 = vld [vmem:[#allocation11 + $0x600] sm:$0xff]  ;;  %v3356_v9 = vld [vmem:[#allocation11 + $0x7e8] sm:$0xff] }
 0x84e   : > { %2599 = vmatpush.msrb.mxu0 %v3353_v49  ;;  %2553 = vmatpush.msra.mxu1 %v3354_v57  ;;  %v5058_v61 = vld [vmem:[#allocation38_spill] sm:$0xff]  ;;  %v5061_v49 = vld [vmem:[#allocation59_spill] sm:$0xff] }
 0x84f   : > { %2583 = vmatpush.msra.mxu3 %v3824_v10  ;;  %2564 = vmatpush.msra.mxu2 %v3834_v6  ;;  %v4423_v10 = vpop.f32.mrf.mxu1  ;;  %v3357_v6 = vld [vmem:[#allocation11 + $0x7c8] sm:$0xff]  ;;  %v5060_v47 = vld [vmem:[#allocation42_spill] sm:$0xff] }
 0x850   : > { %2600 = vmatpush.msrb.mxu0 %v3800_v50  ;;  %2554 = vmatpush.msra.mxu1 %v3355_v4  ;;  %v2922_v50 = vmul.f32 %v3628_v63, %v3628_v63  ;;  %v3358_v63 = vld [vmem:[#allocation11 + $0x7a8] sm:$0xff]  ;;  %v5062_v57 = vld [vmem:[#allocation46_spill] sm:$0xff] }
 0x851   : > { %2584 = vmatpush.msra.mxu3 %v3836_v52  ;;  %2565 = vmatpush.msra.mxu2 %v3844_v54  ;;  %v4432_v52 = vpop.f32.mrf.mxu2  ;;  %v4434_v54 = vpop.f32.mrf.mxu3  ;;  %v5063_v4 = vld [vmem:[#allocation62_spill] sm:$0xff] }
 0x852   : > { %2601 = vmatpush.msrb.mxu0 %v3804_v58  ;;  %2619 = vmatpush.msrb.mxu1 %v3356_v9  ;;  %v2924_v58 = vsub.f32 1.0, %v2922_v50  ;;  %v5064_v9 = vld [vmem:[#allocation50_spill] sm:$0xff]  ;;  %v5065_v50 = vld [vmem:[#allocation65_spill] sm:$0xff] }
 0x853   : > { %2585 = vmatpush.msra.mxu3 %v3846_v14  ;;  %2566 = vmatpush.msra.mxu2 %v3856_v5  ;;  %v2459_v14 = vld.sshfl [vmem:[#allocation1] sm:$0xff pattern:$0x75316420]  ;;  %v4437_v5 = vld.sshfl [vmem:[#allocation1 + $0x8] sm:$0xff pattern:$0x75316420] }
 0x854   : > { %2602 = vmatpush.msrb.mxu0 %v3828_v51  ;;  %2620 = vmatpush.msrb.mxu1 %v3357_v6  ;;  %2928 = vst [vmem:[#allocation1] ss:$2 sm:$0xff] %v2924_v58  ;;  %v4445_v51 = vpop.f32.mrf.mxu0  ;;  %v5066_v6 = vld [vmem:[#allocation53_spill] sm:$0xff]  ;;  %v5067_v58 = vld [vmem:[#allocation68_spill] sm:$0xff] }
 0x855   : > { %2586 = vmatpush.msra.mxu3 %v3858_v16  ;;  %2567 = vmatpush.msra.mxu2 %v3872_v3  ;;  %v5043_v16 = vld [vmem:[#allocation39_spill] sm:$0xff]  ;;  %v5044_v3 = vld [vmem:[#allocation34_spill] sm:$0xff] }
 0x856   : > { %2603 = vmatpush.msrb.mxu0 %v3840_v12  ;;  %2621 = vmatpush.msrb.mxu1 %v3358_v63 }
 0x857   : > { %2587 = vmatpush.msra.mxu3 %v3874_v22  ;;  %2568 = vmatpush.msra.mxu2 %v3884_v29  ;;  %v4453_v12 = vpop.f32.mrf.mxu1  ;;  %v5045_v22 = vld [vmem:[#allocation43_spill] sm:$0xff] }
 0x858   : > { %2604 = vmatpush.msrb.mxu0 %v3852_v7  ;;  %2622 = vmatpush.msrb.mxu1 %v3830_v11  ;;  %v5047_v29 = vld [vmem:[#allocation47_spill] sm:$0xff] }
 0x859   : > { %2588 = vmatpush.msra.mxu3 %v3886_v30  ;;  %2569 = vmatpush.msra.mxu2 %v3894_v42  ;;  %v2149_v11 = vpop.f32.mrf.mxu2  ;;  %v5049_v42 = vld [vmem:[#allocation51_spill] sm:$0xff] }
 0x85a   : > { %2605 = vmatpush.msrb.mxu0 %v3878_v25  ;;  %2623 = vmatpush.msrb.mxu1 %v3842_v13  ;;  %v2169_v13 = vpop.f32.mrf.mxu3 }
 0x85b   : > { %2589 = vmatpush.msra.mxu3 %v3896_v44  ;;  %2570 = vmatpush.msra.mxu2 %v3906_v38  ;;  %v2170_v7 = vadd.f32 %v2169_v13, %v2149_v11  ;;  %v5070_v11 = vld [vmem:[#allocation60_spill] sm:$0xff] }
 0x85c   : > { %2606 = vmatpush.msrb.mxu0 %v3890_v33  ;;  %2624 = vmatpush.msrb.mxu1 %v3854_v15  ;;  %v2189_v15 = vpop.f32.mrf.mxu0  ;;  %v5048_v33 = vld [vmem:[#allocation40_spill] sm:$0xff] }
 0x85d   : > { %2590 = vmatpush.msra.mxu3 %v3908_v8  ;;  %2571 = vmatpush.msra.mxu2 %v3918_v21  ;;  %v5052_v8 = vld [vmem:[#allocation48_spill] sm:$0xff] }
 0x85e   : > { %2607 = vmatpush.msrb.mxu0 %v3902_v53  ;;  %2625 = vmatpush.msrb.mxu1 %v3880_v28  ;;  %v5046_v28 = vld [vmem:[#allocation35_spill] sm:$0xff]  ;;  %v5050_v53 = vld [vmem:[#allocation44_spill] sm:$0xff] }
 0x85f   : > { %2591 = vmatpush.msra.mxu3 %v3920_v60  ;;  %2572 = vmatpush.msra.mxu2 %v3930_v32  ;;  %v2190_v60 = vadd.f32 %v2189_v15, %v2170_v7  ;;  %v5042_v32 = vld [vmem:[#allocation33_spill] sm:$0xff]  ;;  %v5071_v7 = vld [vmem:[#allocation75_spill] sm:$0xff] }
 0x860   : > { %2608 = vmatpush.msrb.mxu0 %v3924_v59  ;;  %2626 = vmatpush.msrb.mxu1 %v3892_v34  ;;  %v5041_v59 = vld [vmem:[#allocation36_spill] sm:$0xff] }
 0x861   : > { %2592 = vmatpush.msra.mxu3 %v3932_v41  ;;  %2573 = vmatpush.msra.mxu2 %v3941_v31  ;;  %v2209_v41 = vpop.f32.mrf.mxu1 }
 0x862   : > { %2609 = vmatpush.msrb.mxu0 %v3936_v56  ;;  %2627 = vmatpush.msrb.mxu1 %v3904_v62  ;;  %v2210_v31 = vadd.f32 %v2209_v41, %v2190_v60  ;;  %v2229_v56 = vpop.f32.mrf.mxu2  ;;  %v2249_v25 = vpop.f32.mrf.mxu3  ;;  %v5051_v62 = vld [vmem:[#allocation37_spill] sm:$0xff]  ;;  %v5072_v60 = vld [vmem:[#allocation63_spill] sm:$0xff] }
 0x863   : > { %2593 = vmatpush.msra.mxu3 %v3943_v40  ;;  %2574 = vmatpush.msra.mxu2 %v3953_v1  ;;  %v2250_v1 = vadd.f32 %v2249_v25, %v2229_v56  ;;  %v2461_v56 = vld.sshfl [vmem:[#allocation1 + $0x10] sm:$0xff pattern:$0x75316420] }
 0x864   : > { %2610 = vmatpush.msrb.mxu0 %v3948_v17  ;;  %2628 = vmatpush.msrb.mxu1 %v5042_v32  ;;  %v2467_v40 = vsub.f32 %v2210_v31, %v2459_v14  ;;  %v2269_v34 = vpop.f32.mrf.mxu0  ;;  %v5053_v17 = vld [vmem:[#allocation41_spill] sm:$0xff]  ;;  %v5073_v32 = vld [vmem:[#allocation79_spill] sm:$0xff] }
 0x865   : > { %2594 = vmatpush.msra.mxu3 %v5041_v59  ;;  %v2270_v44 = vadd.f32 %v2269_v34, %v2250_v1  ;;  %v5068_v14 = vld [vmem:[#allocation57_spill] sm:$0xff]  ;;  %v5075_v31 = vld [vmem:[#allocation83_spill] sm:$0xff] }
 0x866   : > { %2611 = vmatpush.msrb.mxu0 %v5043_v16  ;;  %2629 = vmatpush.msrb.mxu1 %v5044_v3  ;;  %v4476_v30 = vclamps-f32 %v2467_v40, 1.0  ;;  %v5074_v16 = vld [vmem:[#allocation66_spill] sm:$0xff]  ;;  %v5077_v25 = vld [vmem:[#allocation87_spill] sm:$0xff] }
 0x868   : > { %2612 = vmatpush.msrb.mxu0 %v5045_v22  ;;  %2630 = vmatpush.msrb.mxu1 %v5046_v28  ;;  %v5076_v22 = vld [vmem:[#allocation69_spill] sm:$0xff]  ;;  %v5078_v28 = vld [vmem:[#allocation72_spill] sm:$0xff] }
 0x869   : > { %2495 = vmatmul.f32.vlgmr.msrb.gmra.mxu2 %v4476_v30  ;;  %v2289_v38 = vpop.f32.mrf.mxu1 }
 0x86a   : > { %2613 = vmatpush.msrb.mxu0 %v5047_v29  ;;  %2631 = vmatpush.msrb.mxu1 %v5048_v33  ;;  %v2290_v21 = vadd.f32 %v2289_v38, %v2270_v44  ;;  %v2309_v63 = vpop.f32.mrf.mxu2  ;;  %v2329_v13 = vpop.f32.mrf.mxu3  ;;  %v5079_v29 = vld [vmem:[#allocation91_spill] sm:$0xff]  ;;  %v5080_v33 = vld [vmem:[#allocation76_spill] sm:$0xff] }
 0x86b   : > { %2639 = vmatpush.msrb.mxu2 %v5051_v62  ;;  %v2330_v15 = vadd.f32 %v2329_v13, %v2309_v63  ;;  %v5082_v44 = vld [vmem:[#allocation80_spill] sm:$0xff]  ;;  %v5103_v63 = vld [vmem:[#allocation73_spill] sm:$0xff]  ;;  %v5105_v13 = vld [vmem:[#allocation127_spill] sm:$0xff] }
 0x86c   : > { %2614 = vmatpush.msrb.mxu0 %v5049_v42  ;;  %2632 = vmatpush.msrb.mxu1 %v5050_v53  ;;  %v2468_v46 = vsub.f32 %v2290_v21, %v4437_v5  ;;  %v5069_v5 = vld [vmem:[#allocation71_spill] sm:$0xff]  ;;  %v2349_v59 = vpop.f32.mrf.mxu0  ;;  %v5084_v62 = vld [vmem:[#allocation16_spill] sm:$0xff] }
 0x86d   : > { %2640 = vmatpush.msrb.mxu2 %v5053_v17  ;;  %v2350_v41 = vadd.f32 %v2349_v59, %v2330_v15  ;;  %v5081_v42 = vld [vmem:[#allocation95_spill] sm:$0xff]  ;;  %v2923_v38 = vmul.f32 %v5084_v62, %v5084_v62  ;;  %v5086_v21 = vld [vmem:[#allocation84_spill] sm:$0xff]  ;;  %v5109_v59 = vld [vmem:[#allocation81_spill] sm:$0xff] }
 0x86e   : > { %2633 = vmatpush.msrb.mxu1 %v5052_v8  ;;  %v4488_v26 = vclamps-f32 %v2468_v46, 1.0  ;;  %v5083_v53 = vld [vmem:[#allocation99_spill] sm:$0xff]  ;;  %v5085_v8 = vld [vmem:[#allocation54_spill] sm:$0xff]  ;;  %v5107_v15 = vld [vmem:[#allocation112_spill] sm:$0xff] }
 0x86f   : > { %2641 = vmatpush.msrb.mxu2 %v5055_v55  ;;  %v5087_v17 = vld [vmem:[#allocation103_spill] sm:$0xff]  ;;  %v5088_v46 = vld [vmem:[#allocation58_spill] sm:$0xff]  ;;  %v5089_v55 = vld [vmem:[#allocation88_spill] sm:$0xff] }
 0x870   : > { %2634 = vmatpush.msrb.mxu1 %v5054_v27  ;;  %2515 = vmatmul.f32.vlgmr.msrb.gmra.mxu3 %v4488_v26  ;;  %v2925_v27 = vsub.f32 1.0, %v2923_v38  ;;  %v5122_v62 = vld [vmem:[#allocation132_spill] sm:$0xff] }
 0x871   : > { %2642 = vmatpush.msrb.mxu2 %v5056_v19  ;;  %2659 = vmatpush.msrb.mxu3 %v5058_v61  ;;  %v2369_v3 = vpop.f32.mrf.mxu1  ;;  %v2462_v19 = vld.sshfl [vmem:[#allocation1 + $0x18] sm:$0xff pattern:$0x75316420]  ;;  %v5091_v61 = vld [vmem:[#allocation61_spill] sm:$0xff] }
 0x872   : > { %2575 = vmatmul.f32.vlgmr.msra.gmra.mxu2 %v4476_v30  ;;  %v2370_v40 = vadd.f32 %v2369_v3, %v2350_v41  ;;  %2930 = vst [vmem:[#allocation1 + $0x10] ss:$2 sm:$0xff] %v2925_v27  ;;  %v5111_v41 = vld [vmem:[#allocation135_spill] sm:$0xff] }
 0x873   : > { %2643 = vmatpush.msrb.mxu2 %v5057_v37  ;;  %2660 = vmatpush.msrb.mxu3 %v5060_v47  ;;  %v5090_v37 = vld [vmem:[#allocation107_spill] sm:$0xff] }
 0x874   : > { %v2469_v1 = vsub.f32 %v2370_v40, %v2461_v56  ;;  %v5093_v47 = vld [vmem:[#allocation111_spill] sm:$0xff]  ;;  %v5115_v56 = vld [vmem:[#allocation89_spill] sm:$0xff] }
 0x875   : > { %2644 = vmatpush.msrb.mxu2 %v5059_v39  ;;  %2661 = vmatpush.msrb.mxu3 %v5062_v57  ;;  %v5092_v39 = vld [vmem:[#allocation92_spill] sm:$0xff]  ;;  %v5114_v3 = vld [vmem:[#allocation139_spill] sm:$0xff] }
 0x876   : > { %v4519_v34 = vclamps-f32 %v2469_v1, 1.0  ;;  %v5095_v57 = vld [vmem:[#allocation96_spill] sm:$0xff]  ;;  %v5118_v1 = vld [vmem:[#allocation93_spill] sm:$0xff] }
 0x877   : > { %2645 = vmatpush.msrb.mxu2 %v5061_v49  ;;  %2662 = vmatpush.msrb.mxu3 %v5064_v9  ;;  %v5094_v49 = vld [vmem:[#allocation64_spill] sm:$0xff]  ;;  %v5097_v9 = vld [vmem:[#allocation67_spill] sm:$0xff] }
 0x878   : > { %2595 = vmatmul.f32.vlgmr.msra.gmra.mxu3 %v4488_v26  ;;  %2535 = vmatmul.f32.vlgmr.msra.gmra.mxu0 %v4519_v34 }
 0x879   : > { %2646 = vmatpush.msrb.mxu2 %v5063_v4  ;;  %2663 = vmatpush.msrb.mxu3 %v5066_v6  ;;  %v5096_v4 = vld [vmem:[#allocation115_spill] sm:$0xff] }
 0x87a   : > { %2679 = vmatpush.msra.mxu0 %v5085_v8  ;;  %v5099_v6 = vld [vmem:[#allocation119_spill] sm:$0xff] }
 0x87b   : > { %2647 = vmatpush.msrb.mxu2 %v5065_v50  ;;  %2664 = vmatpush.msrb.mxu3 %v5068_v14  ;;  %v5098_v50 = vld [vmem:[#allocation100_spill] sm:$0xff] }
 0x87c   : > { %2680 = vmatpush.msra.mxu0 %v5088_v46  ;;  %v5101_v14 = vld [vmem:[#allocation104_spill] sm:$0xff]  ;;  %v5125_v46 = vld [vmem:[#allocation105_spill] sm:$0xff] }
 0x87d   : > { %2648 = vmatpush.msrb.mxu2 %v5067_v58  ;;  %2665 = vmatpush.msrb.mxu3 %v5070_v11  ;;  %v5100_v58 = vld [vmem:[#allocation70_spill] sm:$0xff]  ;;  %v5104_v11 = vld [vmem:[#allocation108_spill] sm:$0xff] }
 0x87e   : > { %2681 = vmatpush.msra.mxu0 %v5091_v61  ;;  %v5127_v61 = vld [vmem:[#allocation109_spill] sm:$0xff] }
 0x87f   : > { %2649 = vmatpush.msrb.mxu2 %v5069_v5  ;;  %2666 = vmatpush.msrb.mxu3 %v5072_v60  ;;  %v5102_v5 = vld [vmem:[#allocation123_spill] sm:$0xff] }
 0x880   : > { %2682 = vmatpush.msra.mxu0 %v5094_v49  ;;  %v5108_v60 = vld [vmem:[#allocation131_spill] sm:$0xff]  ;;  %v5189_v49 = vld [vmem:[#allocation162_spill] sm:$0xff] }
 0x881   : > { %2650 = vmatpush.msrb.mxu2 %v5071_v7  ;;  %2667 = vmatpush.msrb.mxu3 %v5074_v16  ;;  %v5106_v7 = vld [vmem:[#allocation77_spill] sm:$0xff] }
 0x882   : > { %2615 = vmatmul.f32.vlgmr.msrb.gmra.mxu0 %v4519_v34  ;;  %v5112_v16 = vld [vmem:[#allocation85_spill] sm:$0xff] }
 0x883   : > { %2651 = vmatpush.msrb.mxu2 %v5073_v32  ;;  %2668 = vmatpush.msrb.mxu3 %v5076_v22  ;;  %v5110_v32 = vld [vmem:[#allocation116_spill] sm:$0xff] }
 0x884   : > { %2683 = vmatpush.msra.mxu0 %v5097_v9  ;;  %v5116_v22 = vld [vmem:[#allocation124_spill] sm:$0xff] }
 0x885   : > { %2652 = vmatpush.msrb.mxu2 %v5075_v31  ;;  %2669 = vmatpush.msrb.mxu3 %v5078_v28  ;;  %v5113_v31 = vld [vmem:[#allocation120_spill] sm:$0xff] }
 0x886   : > { %2684 = vmatpush.msra.mxu0 %v5100_v58  ;;  %v3360_v9 = vld [vmem:[#allocation11 + $0x7d0] sm:$0xff] }
 0x887   : > { %2653 = vmatpush.msrb.mxu2 %v5077_v25  ;;  %2670 = vmatpush.msrb.mxu3 %v5080_v33  ;;  %v5117_v25 = vld [vmem:[#allocation143_spill] sm:$0xff]  ;;  %v3361_v58 = vld [vmem:[#allocation11 + $0x7b0] sm:$0xff] }
 0x888   : > { %2685 = vmatpush.msra.mxu0 %v5103_v63  ;;  %v5140_v63 = vld [vmem:[#allocation129_spill] sm:$0xff] }
 0x889   : > { %2654 = vmatpush.msrb.mxu2 %v5079_v29  ;;  %2671 = vmatpush.msrb.mxu3 %v5082_v44  ;;  %v5119_v29 = vld [vmem:[#allocation128_spill] sm:$0xff] }
 0x88a   : > { %2655 = vmatmul.f32.vlgmr.msrb.gmra.mxu2 %v4476_v30  ;;  %2686 = vmatpush.msra.mxu0 %v5106_v7  ;;  %v5143_v7 = vld [vmem:[#allocation74_spill] sm:$0xff] }
 0x88b   : > { %2719 = vmatpush.msra.mxu2 %v5081_v42  ;;  %2672 = vmatpush.msrb.mxu3 %v5086_v21  ;;  %v5120_v42 = vld [vmem:[#allocation147_spill] sm:$0xff]  ;;  %v5123_v21 = vld [vmem:[#allocation101_spill] sm:$0xff] }
 0x88c   : > { %2687 = vmatpush.msra.mxu0 %v5109_v59  ;;  %v2389_v40 = vpop.f32.mrf.mxu2 }
 0x88d   : > { %2720 = vmatpush.msra.mxu2 %v5083_v53  ;;  %2673 = vmatpush.msrb.mxu3 %v5089_v55  ;;  %v2409_v28 = vpop.f32.mrf.mxu3  ;;  %v5121_v53 = vld [vmem:[#allocation97_spill] sm:$0xff]  ;;  %v5126_v55 = vld [vmem:[#allocation140_spill] sm:$0xff] }
 0x88e   : > { %2688 = vmatpush.msra.mxu0 %v5112_v16  ;;  %v2410_v33 = vadd.f32 %v2409_v28, %v2389_v40  ;;  %v5151_v16 = vld [vmem:[#allocation145_spill] sm:$0xff]  ;;  %v5158_v40 = vld [vmem:[#allocation98_spill] sm:$0xff]  ;;  %v5161_v28 = vld [vmem:[#allocation159_spill] sm:$0xff] }
 0x88f   : > { %2721 = vmatpush.msra.mxu2 %v5087_v17  ;;  %2674 = vmatpush.msrb.mxu3 %v5092_v39  ;;  %v5124_v17 = vld [vmem:[#allocation136_spill] sm:$0xff] }
 0x890   : > { %2675 = vmatmul.f32.vlgmr.msrb.gmra.mxu3 %v4488_v26  ;;  %2689 = vmatpush.msra.mxu0 %v5115_v56  ;;  %v5156_v56 = vld [vmem:[#allocation94_spill] sm:$0xff]  ;;  %v5186_v39 = vld [vmem:[#allocation156_spill] sm:$0xff] }
 0x891   : > { %2722 = vmatpush.msra.mxu2 %v5090_v37  ;;  %2739 = vmatpush.msra.mxu3 %v5095_v57  ;;  %v5133_v57 = vld [vmem:[#allocation117_spill] sm:$0xff] }
 0x892   : > { %2690 = vmatpush.msra.mxu0 %v5118_v1  ;;  %v2429_v44 = vpop.f32.mrf.mxu0  ;;  %v5162_v1 = vld [vmem:[#allocation106_spill] sm:$0xff] }
 0x893   : > { %2723 = vmatpush.msra.mxu2 %v5093_v47  ;;  %2740 = vmatpush.msra.mxu3 %v5098_v50  ;;  %v2430_v38 = vadd.f32 %v2429_v44, %v2410_v33  ;;  %v5129_v47 = vld [vmem:[#allocation144_spill] sm:$0xff]  ;;  %v5136_v50 = vld [vmem:[#allocation121_spill] sm:$0xff]  ;;  %v5164_v33 = vld [vmem:[#allocation110_spill] sm:$0xff] }
 0x894   : > { %2691 = vmatpush.msra.mxu0 %v5121_v53  ;;  %v2449_v8 = vpop.f32.mrf.mxu1  ;;  %v5166_v44 = vld [vmem:[#allocation114_spill] sm:$0xff]  ;;  %v5167_v53 = vld [vmem:[#allocation31_spill] sm:$0xff] }
 0x895   : > { %2724 = vmatpush.msra.mxu2 %v5096_v4  ;;  %2741 = vmatpush.msra.mxu3 %v5101_v14  ;;  %v2450_v27 = vadd.f32 %v2449_v8, %v2430_v38  ;;  %v5135_v4 = vld [vmem:[#allocation151_spill] sm:$0xff]  ;;  %v5139_v14 = vld [vmem:[#allocation125_spill] sm:$0xff]  ;;  %v5172_v8 = vld [vmem:[#allocation122_spill] sm:$0xff] }
 0x896   : > { %2692 = vmatpush.msra.mxu0 %v5123_v21  ;;  %v5170_v38 = vld [vmem:[#allocation27_spill] sm:$0xff] }
 0x897   : > { %2725 = vmatpush.msra.mxu2 %v5099_v6  ;;  %2742 = vmatpush.msra.mxu3 %v5104_v11  ;;  %v2470_v37 = vsub.f32 %v2450_v27, %v2462_v19  ;;  %v3359_v19 = vld [vmem:[#allocation11 + $0x7f0] sm:$0xff]  ;;  %v5138_v6 = vld [vmem:[#allocation154_spill] sm:$0xff]  ;;  %v5173_v21 = vld [vmem:[#allocation23_spill] sm:$0xff] }
 0x898   : > { %2693 = vmatpush.msra.mxu0 %v5125_v46  ;;  %vm5174_vm7 = vcmp.gt.f32.partialorder %v5173_v21, 0.0  ;;  %v5177_v27 = vld [vmem:[#allocation19_spill] sm:$0xff]  ;;  %v5179_v46 = vld [vmem:[#allocation130_spill] sm:$0xff] }
 0x899   : > { %2726 = vmatpush.msra.mxu2 %v5102_v5  ;;  %2743 = vmatpush.msra.mxu3 %v5107_v15  ;;  %v5145_v15 = vld [vmem:[#allocation137_spill] sm:$0xff] }
 0x89a   : > { %2694 = vmatpush.msra.mxu0 %v5127_v61  ;;  %v5185_v61 = vld [vmem:[#allocation153_spill] sm:$0xff] }
 0x89b   : > { %2727 = vmatpush.msra.mxu2 %v5105_v13  ;;  %2744 = vmatpush.msra.mxu3 %v5110_v32  ;;  %v5142_v13 = vld [vmem:[#allocation133_spill] sm:$0xff] }
 0x89c   : > { %2695 = vmatmul.f32.vlgmr.msra.gmra.mxu0 %v4519_v34  ;;  %v5148_v32 = vld [vmem:[#allocation141_spill] sm:$0xff] }
 0x89d   : > { %2728 = vmatpush.msra.mxu2 %v5108_v60  ;;  %2745 = vmatpush.msra.mxu3 %v5113_v31  ;;  %v5146_v60 = vld [vmem:[#allocation78_spill] sm:$0xff]  ;;  %v5153_v31 = vld [vmem:[#allocation149_spill] sm:$0xff] }
 0x89f   : > { %2729 = vmatpush.msra.mxu2 %v5111_v41  ;;  %2746 = vmatpush.msra.mxu3 %v5116_v22  ;;  %v5149_v41 = vld [vmem:[#allocation82_spill] sm:$0xff]  ;;  %v5157_v22 = vld [vmem:[#allocation155_spill] sm:$0xff] }
 0x8a1   : > { %2730 = vmatpush.msra.mxu2 %v5114_v3  ;;  %2747 = vmatpush.msra.mxu3 %v5119_v29  ;;  %v4599_v5 = vpop.trf.xlu1  ;;  %v5154_v3 = vld [vmem:[#allocation90_spill] sm:$0xff]  ;;  %v5163_v29 = vld [vmem:[#allocation161_spill] sm:$0xff] }
 0x8a3   : > { %2731 = vmatpush.msra.mxu2 %v5117_v25  ;;  %2748 = vmatpush.msra.mxu3 %v5122_v62  ;;  %v5160_v25 = vld [vmem:[#allocation102_spill] sm:$0xff] }
 0x8a4   : > { %v5169_v62 = vld [vmem:[#allocation118_spill] sm:$0xff] }
 0x8a5   : > { %2732 = vmatpush.msra.mxu2 %v5120_v42  ;;  %2749 = vmatpush.msra.mxu3 %v5124_v17  ;;  %v5165_v42 = vld [vmem:[#allocation163_spill] sm:$0xff]  ;;  %v5175_v17 = vld [vmem:[#allocation126_spill] sm:$0xff] }
 0x8a7   : > { %2733 = vmatpush.msra.mxu2 %v4319_v0  ;;  %2750 = vmatpush.msra.mxu3 %v5126_v55  ;;  %v4578_v0 = vclamps-f32 %v2470_v37, 1.0  ;;  %v5182_v55 = vld [vmem:[#allocation142_spill] sm:$0xff] }
 0x8a8   : > { %v5183_v37 = vld [vmem:[#allocation146_spill] sm:$0xff] }
 0x8a9   : > { %2734 = vmatpush.msra.mxu2 %v4331_v35  ;;  %2751 = vmatpush.msra.mxu3 %v5129_v47  ;;  %v5130_v35 = vld [vmem:[#allocation113_spill] sm:$0xff]  ;;  %v5187_v47 = vld [vmem:[#allocation158_spill] sm:$0xff] }
 0x8aa   : > { %2735 = vmatmul.f32.vlgmr.msra.gmra.mxu2 %v4476_v30  ;;  %2759 = vmatpush.msrb.mxu0 %v5130_v35  ;;  %v5132_v30 = vld [vmem:[#allocation148_spill] sm:$0xff] }
 0x8ab   : > { %3199 = vmatpush.msk.msrb.mxu2 %vm1417_vm0, %v4432_v52  ;;  %2555 = vmatmul.f32.vlgmr.msra.gmra.mxu1 %v4578_v0  ;;  %v5188_v35 = vld [vmem:[#allocation160_spill] sm:$0xff] }
 0x8ac   : > { %2752 = vmatpush.msra.mxu3 %v5132_v30  ;;  %2699 = vmatpush.msra.mxu1 %v3359_v19  ;;  %v5190_v30 = vld [vmem:[#allocation164_spill] sm:$0xff]  ;;  %v5191_v19 = vld [vmem:[#allocation165_spill] sm:$0xff] }
 0x8ad   : > { %3200 = vmatpush.msk.msrb.mxu2 %vm1413_vm12, %v4409_v48  ;;  %2760 = vmatpush.msrb.mxu0 %v5133_v57  ;;  %v5192_v57 = vld [vmem:[#allocation32_spill] sm:$0xff] }
 0x8ae   : > { %2753 = vmatpush.msra.mxu3 %v5135_v4  ;;  %2700 = vmatpush.msra.mxu1 %v3360_v9  ;;  %v5194_v52 = vld [vmem:[#allocation28_spill] sm:$0xff]  ;;  %v5198_v9 = vld [vmem:[#allocation167_spill] sm:$0xff] }
 0x8af   : > { %3201 = vmatpush.msk.msrb.mxu2 %vm1409_vm8, %v4393_v45  ;;  %2761 = vmatpush.msrb.mxu0 %v5136_v50  ;;  %v3362_v45 = vld [vmem:[#allocation11 + $0x790] sm:$0xff]  ;;  %vm5178_vm8 = vcmp.gt.f32.partialorder %v5177_v27, 0.0  ;;  %vm5195_vm12 = vcmp.gt.f32.partialorder %v5194_v52, 0.0  ;;  %v2997_v27 = vstv %s4694_s19 }
 0x8b0   : > { %2754 = vmatpush.msra.mxu3 %v5138_v6  ;;  %2701 = vmatpush.msra.mxu1 %v3361_v58  ;;  %v5196_v4 = vld [vmem:[#allocation24_spill] sm:$0xff] }
 0x8b1   : > { %3202 = vmatpush.msk.msrb.mxu2 %vm1405_vm4, %v4385_v24  ;;  %2762 = vmatpush.msrb.mxu0 %v5139_v14  ;;  %v3363_v24 = vld [vmem:[#allocation11 + $0x770] sm:$0xff]  ;;  %vm5168_vm4 = vcmp.gt.f32.partialorder %v5167_v53, 0.0 }
 0x8b2   : > { %2755 = vmatmul.f32.vlgmr.msra.gmra.mxu3 %v4488_v26  ;;  %2702 = vmatpush.msra.mxu1 %v3362_v45  ;;  %v5199_v50 = vld [vmem:[#allocation20_spill] sm:$0xff] }
 0x8b3   : > { %2763 = vmatpush.msrb.mxu0 %v5140_v63  ;;  %2635 = vmatmul.f32.vlgmr.msrb.gmra.mxu1 %v4578_v0  ;;  %vm5200_vm0 = vcmp.gt.f32.partialorder %v5199_v50, 0.0 }
 0x8b4   : > { %3203 = vmatmul.msk.f32.vlgmr.msrb.gmra.mxu2 %vm1562_vm11, %v4599_v5  ;;  %2703 = vmatpush.msra.mxu1 %v3363_v24 }
 0x8b5   : > { %3204 = vmatpush.msk.msrb.mxu3 %vm1418_vm1, %v4434_v54  ;;  %2764 = vmatpush.msrb.mxu0 %v5142_v13 }
 0x8b6   : > { %2704 = vmatpush.msra.mxu1 %v5143_v7 }
 0x8b7   : > { %3205 = vmatpush.msk.msrb.mxu3 %vm1414_vm13, %v4411_v2  ;;  %2765 = vmatpush.msrb.mxu0 %v5145_v15  ;;  %v5152_v2 = vld [vmem:[#allocation86_spill] sm:$0xff]  ;;  %vm5197_vm13 = vcmp.gt.f32.partialorder %v5196_v4, 0.0 }
 0x8b8   : > { %2705 = vmatpush.msra.mxu1 %v5146_v60 }
 0x8b9   : > { %3206 = vmatpush.msk.msrb.mxu3 %vm1410_vm9, %v4395_v23  ;;  %2766 = vmatpush.msrb.mxu0 %v5148_v32  ;;  %v5155_v23 = vld [vmem:[#allocation152_spill] sm:$0xff]  ;;  %vm5193_vm9 = vcmp.gt.f32.partialorder %v5192_v57, 0.0 }
 0x8ba   : > { %2706 = vmatpush.msra.mxu1 %v5149_v41 }
 0x8bb   : > { %3207 = vmatpush.msk.msrb.mxu3 %vm1406_vm5, %v4387_v18  ;;  %2767 = vmatpush.msrb.mxu0 %v5151_v16  ;;  %v5159_v18 = vld [vmem:[#allocation157_spill] sm:$0xff]  ;;  %vm5171_vm5 = vcmp.gt.f32.partialorder %v5170_v38, 0.0 }
 0x8bc   : > { %3208 = vmatmul.msk.f32.vlgmr.msrb.gmra.mxu3 %vm1562_vm11, %v4599_v5  ;;  %2707 = vmatpush.msra.mxu1 %v5152_v2  ;;  %v2931_v2 = vld.sshfl [vmem:[#allocation1] sm:$0xff pattern:$0x75316420] }
 0x8bd   : > { %2768 = vmatpush.msrb.mxu0 %v5153_v31 }
 0x8be   : > { %2708 = vmatpush.msra.mxu1 %v5154_v3 }
 0x8bf   : > { %2769 = vmatpush.msrb.mxu0 %v5155_v23  ;;  %v2932_v23 = vld.sshfl [vmem:[#allocation1 + $0x8] sm:$0xff pattern:$0x75316420] }
 0x8c0   : > { %2709 = vmatpush.msra.mxu1 %v5156_v56 }
 0x8c1   : > { %2770 = vmatpush.msrb.mxu0 %v5157_v22 }
 0x8c2   : > { %2710 = vmatpush.msra.mxu1 %v5158_v40 }
 0x8c3   : > { %2771 = vmatpush.msrb.mxu0 %v5159_v18  ;;  %v2943_v18 = vld [vmem:[#allocation3 + $0x8] sm:$0x77] }
 0x8c4   : > { %2711 = vmatpush.msra.mxu1 %v5160_v25  ;;  %v2964_v25 = vld [vmem:[#allocation4 + $0x8] sm:$0x77] }
 0x8c5   : > { %2772 = vmatpush.msrb.mxu0 %v5161_v28 }
 0x8c6   : > { %2712 = vmatpush.msra.mxu1 %v5162_v1 }
 0x8c7   : > { %2773 = vmatpush.msrb.mxu0 %v5163_v29 }
 0x8c8   : > { %2713 = vmatpush.msra.mxu1 %v5164_v33  ;;  %v2945_v33 = vmul.f32 0.9, %v2943_v18 }
 0x8c9   : > { %2774 = vmatpush.msrb.mxu0 %v5165_v42 }
 0x8ca   : > { %2714 = vmatpush.msra.mxu1 %v5166_v44  ;;  %2775 = vmatmul.f32.vlgmr.msrb.gmra.mxu0 %v4519_v34  ;;  %v5176_v34 = vld [vmem:[#allocation166_spill] sm:$0xff] }
 0x8cb   : > { %2715 = vmatmul.f32.vlgmr.msra.gmra.mxu1 %v4578_v0  ;;  %3209 = vmatpush.msk.msra.mxu0 %vm5168_vm4, %v4445_v51  ;;  %v5180_v51 = vld [vmem:[#allocation134_spill] sm:$0xff] }
 0x8cc   : > { %2779 = vmatpush.msrb.mxu1 %v5169_v62  ;;  %v2966_v62 = vmul.f32 0.999, %v2964_v25 }
 0x8cd   : > { %3210 = vmatpush.msk.msra.mxu0 %vm5171_vm5, %v4417_v43  ;;  %v5181_v43 = vld [vmem:[#allocation138_spill] sm:$0xff] }
 0x8ce   : > { %2780 = vmatpush.msrb.mxu1 %v5172_v8 }
 0x8cf   : > { %3211 = vmatpush.msk.msra.mxu0 %vm5174_vm7, %v4398_v20  ;;  %v5184_v20 = vld [vmem:[#allocation150_spill] sm:$0xff] }
 0x8d0   : > { %2781 = vmatpush.msrb.mxu1 %v5175_v17 }
 0x8d1   : > { %3212 = vmatpush.msk.msra.mxu0 %vm5178_vm8, %v5176_v34 }
 0x8d2   : > { %2782 = vmatpush.msrb.mxu1 %v5179_v46  ;;  %3213 = vmatmul.msk.f32.vlgmr.msra.gmra.mxu0 %vm1562_vm11, %v4599_v5 }
 0x8d4   : > { %2783 = vmatpush.msrb.mxu1 %v5180_v51 }
 0x8d6   : > { %2784 = vmatpush.msrb.mxu1 %v5181_v43 }
 0x8d8   : > { %2785 = vmatpush.msrb.mxu1 %v5182_v55 }
 0x8da   : > { %2786 = vmatpush.msrb.mxu1 %v5183_v37 }
 0x8dc   : > { %2787 = vmatpush.msrb.mxu1 %v5184_v20 }
 0x8de   : > { %2788 = vmatpush.msrb.mxu1 %v5185_v61 }
 0x8e0   : > { %2789 = vmatpush.msrb.mxu1 %v5186_v39 }
 0x8e2   : > { %2790 = vmatpush.msrb.mxu1 %v5187_v47 }
 0x8e4   : > { %2791 = vmatpush.msrb.mxu1 %v5188_v35 }
 0x8e6   : > { %2792 = vmatpush.msrb.mxu1 %v5189_v49 }
 0x8e8   : > { %2793 = vmatpush.msrb.mxu1 %v5190_v30 }
 0x8ea   : > { %2794 = vmatpush.msrb.mxu1 %v5191_v19 }
 0x8eb   : > { %2795 = vmatmul.f32.vlgmr.msrb.gmra.mxu1 %v4578_v0 }
 0x8ec   : > { %3214 = vmatpush.msk.msra.mxu1 %vm5193_vm9, %v4453_v12  ;;  %v2496_v0 = vpop.f32.mrf.mxu2 }
 0x8ee   : > { %3215 = vmatpush.msk.msra.mxu1 %vm5195_vm12, %v4423_v10 }
 0x8f0   : > { %3216 = vmatpush.msk.msra.mxu1 %vm5197_vm13, %v4403_v36 }
 0x8f2   : > { %3217 = vmatpush.msk.msra.mxu1 %vm5200_vm0, %v5198_v9 }
 0x8f3   : > { %3218 = vmatmul.msk.f32.vlgmr.msra.gmra.mxu1 %vm1562_vm11, %v4599_v5  ;;  %v2516_v48 = vpop.f32.mrf.mxu3  ;;  %vm2957_vm11 = vcmask 1043456  }
 0x8f4   : > { %v2517_v24 = vadd.f32 %v2516_v48, %v2496_v0 }
 0x8f5   : > { %v2576_v6 = vpop.f32.mrf.mxu2  ;;  %v2536_v14 = vpop.f32.mrf.mxu0 }
 0x8f6   : > { %v2537_v36 = vadd.f32 %v2536_v14, %v2517_v24 }
 0x8fb   : > { %v2596_v58 = vpop.f32.mrf.mxu3 }
 0x8fc   : > { %v2597_v26 = vadd.f32 %v2596_v58, %v2576_v6 }
 0x8ff   : > { %v2616_v13 = vpop.f32.mrf.mxu0 }
 0x900   : > { %v2617_v60 = vadd.f32 %v2616_v13, %v2597_v26  ;;  %v2933_v26 = vld.sshfl [vmem:[#allocation1 + $0x10] sm:$0xff pattern:$0x75316420] }
 0x90d   : > { %v2656_v12 = vpop.f32.mrf.mxu2 }
 0x913   : > { %v2676_v45 = vpop.f32.mrf.mxu3 }
 0x914   : > { %v2677_v49 = vadd.f32 %v2676_v45, %v2656_v12 }
 0x919   : > { %v2696_v43 = vpop.f32.mrf.mxu0 }
 0x91a   : > { %v2697_v57 = vadd.f32 %v2696_v43, %v2677_v49 }
 0x928   : > { %v2556_v63 = vpop.f32.mrf.mxu1 }
 0x929   : > { %v2557_v11 = vadd.f32 %v2556_v63, %v2537_v36  ;;  %v2992_v36 = vstv %s4703_s20 }
 0x92b   : > { %v2799_v59 = vmul.f32 0.1, %v2557_v11 }
 0x92d   : > { %v4689_v10 = vpop.f32.mrf.mxu2 }
 0x930   : > { %v2636_v15 = vpop.f32.mrf.mxu1 }
 0x931   : > { %v2637_v32 = vadd.f32 %v2636_v15, %v2617_v60 }
 0x933   : > { %v2800_v54 = vmul.f32 0.1, %v2637_v32 }
 0x935   : > { %v2756_v7 = vpop.f32.mrf.mxu3 }
 0x936   : > { %v2757_v48 = vadd.f32 %v2756_v7, %v4689_v10 }
 0x937   : > { %v2855_v5 = vpop.f32.mrf.mxu2 }
 0x938   : > { %v2856_v41 = vadd.f32 %v2855_v5, %v2799_v59 }
 0x93a   : > { %v2918_v16 = vmul.f32 0.5, %v2856_v41 }
 0x93c   : > { %v2939_v56 = vmul.f32 %v2931_v2, %v2918_v16  ;;  %v2934_v16 = vld.sshfl [vmem:[#allocation1 + $0x18] sm:$0xff pattern:$0x75316420] }
 0x93e   : > { %v2968_v28 = vmul.f32 0.001, %v2939_v56  ;;  %v2947_v42 = vmul.f32 0.1, %v2939_v56 }
 0x93f   : > { %v2875_v31 = vpop.f32.mrf.mxu3 }
 0x940   : > { %v2876_v3 = vadd.f32 %v2875_v31, %v2800_v54  ;;  %v2972_v38 = vmul.f32 %v2968_v28, %v2939_v56  ;;  %v2944_v56 = vld [vmem:[#allocation3] sm:$0x77] }
 0x942   : > { %v2919_v22 = vmul.f32 0.5, %v2876_v3 }
 0x944   : > { %v2940_v40 = vmul.f32 %v2932_v23, %v2919_v22 }
 0x946   : > { %v2948_v1 = vmul.f32 0.1, %v2940_v40  ;;  %v2969_v29 = vmul.f32 0.001, %v2940_v40 }
 0x947   : > { %v2776_v47 = vpop.f32.mrf.mxu0 }
 0x948   : > { %v2955_v44 = vrot.slane %v2948_v1, 4  ;;  %v2973_v53 = vmul.f32 %v2969_v29, %v2940_v40  ;;  %v2716_v30 = vpop.f32.mrf.mxu1  ;;  %v2777_v14 = vadd.f32 %v2776_v47, %v2757_v48  ;;  %v2965_v1 = vld [vmem:[#allocation4] sm:$0x77] }
 0x949   : > { %v2717_v50 = vadd.f32 %v2716_v30, %v2697_v57 }
 0x94a   : > { %v2958_v8 = vsel %vm2957_vm11, %v2947_v42, %v2955_v44  ;;  %v2980_v21 = vrot.slane %v2973_v53, 4  ;;  %v2946_v42 = vmul.f32 0.9, %v2944_v56 }
 0x94b   : > { %v2962_v17 = vadd.f32 %v2958_v8, %v2945_v33  ;;  %v2801_v58 = vmul.f32 0.1, %v2717_v50 }
 0x94c   : > { %v2982_v34 = vsel %vm2957_vm11, %v2972_v38, %v2980_v21  ;;  %v5201_v38 = vld [vmem:[#allocation14_spill] sm:$0xff]  ;;  %v2967_v21 = vmul.f32 0.999, %v2965_v1 }
 0x94d   : > { %v2986_v46 = vadd.f32 %v2982_v34, %v2966_v62  ;;  %3058 = vst [vmem:[#allocation3 + $0x8] sm:$0x77] %v2962_v17  ;;  %v2993_v59 = vmul.f32 %v2992_v36, %v2962_v17 }
 0x94f   : > { %v2998_v51 = vmul.f32 %v2997_v27, %v2986_v46  ;;  %3060 = vst [vmem:[#allocation4 + $0x8] sm:$0x77] %v2986_v46  ;;  %v2895_v6 = vpop.f32.mrf.mxu0  ;;  %v2995_v22 = vmul.f32 0.001, %v2993_v59 }
 0x950   : > { %v2896_v45 = vadd.f32 %v2895_v6, %v2801_v58 }
 0x951   : > { %3283 = vrsqrt.f32 %v2998_v51  ;;  %vm3007_vm1 = vcmp.eq.f32.partialorder %v2998_v51, inf  ;;  %v3010_v52 = vand.u32 2147483648, %v2998_v51  ;;  %vm3009_vm3 = vcmp.eq.f32.partialorder %v2998_v51, 0.0 }
 0x952   : > { %v2920_v13 = vmul.f32 0.5, %v2896_v45 }
 0x954   : > { %v2941_v54 = vmul.f32 %v2933_v26, %v2920_v13  ;;  %v5202_v13 = vld [vmem:[#allocation15_spill] sm:$0xff] }
 0x956   : > { %v2970_v18 = vmul.f32 0.001, %v2941_v54  ;;  %v2949_v44 = vmul.f32 0.1, %v2941_v54 }
 0x957   : > { %v3284_v55 = vpop.eup %3283 }
 0x958   : > { %v3001_v37 = vmul.f32 %v3284_v55, %v2998_v51  ;;  %v2974_v17 = vmul.f32 %v2970_v18, %v2941_v54 }
 0x95a   : > { %v3002_v20 = vmul.f32 %v3284_v55, %v3001_v37 }
 0x95c   : > { %v3003_v61 = vmul.f32 0.5, %v3002_v20 }
 0x95e   : > { %v3004_v39 = vsub.f32 1.5, %v3003_v61 }
 0x960   : > { %v3005_v35 = vmul.f32 %v3284_v55, %v3004_v39 }
 0x962   : > { %v3006_v19 = vmul.f32 %v3005_v35, %v2998_v51 }
 0x964   : > { %v3008_v4 = vsel %vm3007_vm1, %v2998_v51, %v3006_v19 }
 0x965   : > { %v3011_v9 = vsel %vm3009_vm3, %v3010_v52, %v3008_v4 }
 0x966   : > { %v3024_v0 = vadd.f32 1e-08, %v3011_v9 }
 0x968   : > { %3285 = vrcp.f32 %v3024_v0  ;;  %v2796_v12 = vpop.f32.mrf.mxu1  ;;  %v3037_v32 = vand.u32 2147483648, %v3024_v0  ;;  %v3035_v41 = vand.u32 2147483647, %v3024_v0  ;;  %vm3031_vm10 = vweird.f32 %v3024_v0 }
 0x969   : > { %v2797_v63 = vadd.f32 %v2796_v12, %v2777_v14 }
 0x96a   : > { %v3038_v3 = vor.u32 1.1754944e-38, %v3037_v32  ;;  %vm3036_vm2 = vcmp.eq.f32.partialorder %v3035_v41, 8.507059e+37 }
 0x96b   : > { %v2802_v15 = vmul.f32 0.1, %v2797_v63 }
 0x96e   : > { %v3286_v24 = vpop.eup %3285 }
 0x96f   : > { %v3027_v11 = vmul.f32 %v3286_v24, %v3024_v0  ;;  %vm3032_vm6 = vweird.f32 %v3286_v24 }
 0x970   : > { %v2915_v60 = vpop.f32.mrf.mxu1  ;;  %vm3033_vm14 = vmor %vm3031_vm10, %vm3032_vm6 }
 0x971   : > { %v3028_v5 = vsub.f32 1.0, %v3027_v11  ;;  %v2916_v10 = vadd.f32 %v2915_v60, %v2802_v15 }
 0x973   : > { %v3029_v7 = vmul.f32 %v3286_v24, %v3028_v5  ;;  %v2921_v2 = vmul.f32 0.5, %v2916_v10 }
 0x975   : > { %v3030_v31 = vadd.f32 %v3286_v24, %v3029_v7  ;;  %v2942_v23 = vmul.f32 %v2934_v16, %v2921_v2 }
 0x977   : > { %v3034_v40 = vsel %vm3033_vm14, %v3286_v24, %v3030_v31  ;;  %v2950_v28 = vmul.f32 0.1, %v2942_v23  ;;  %v2971_v29 = vmul.f32 0.001, %v2942_v23 }
 0x978   : > { %v3039_v25 = vsel %vm3036_vm2, %v3038_v3, %v3034_v40 }
 0x979   : > { %v3040_v33 = vmul.f32 %v3039_v25, %v2995_v22  ;;  %v2956_v53 = vrot.slane %v2950_v28, 4  ;;  %v2975_v62 = vmul.f32 %v2971_v29, %v2942_v23 }
 0x97b   : > { %v3056_v8 = vsub.f32 %v5201_v38, %v3040_v33  ;;  %v2959_v34 = vsel %vm2957_vm11, %v2949_v44, %v2956_v53  ;;  %v2981_v46 = vrot.slane %v2975_v62, 4 }
 0x97c   : > { %v2963_v51 = vadd.f32 %v2959_v34, %v2946_v42 }
 0x97d   : > { %3062 = vst [vmem:[#allocation2] sm:$0x77] %v3056_v8  ;;  %v2983_v43 = vsel %vm2957_vm11, %v2974_v17, %v2981_v46 }
 0x97e   : > { %v2987_v55 = vadd.f32 %v2983_v43, %v2967_v21  ;;  %3059 = vst [vmem:[#allocation3] sm:$0x77] %v2963_v51  ;;  %v2994_v48 = vmul.f32 %v2992_v36, %v2963_v51 }
 0x980   : > { %v2999_v37 = vmul.f32 %v2997_v27, %v2987_v55  ;;  %3061 = vst [vmem:[#allocation4] sm:$0x77] %v2987_v55  ;;  %v2996_v45 = vmul.f32 0.001, %v2994_v48 }
 0x982   : > { %3287 = vrsqrt.f32 %v2999_v37  ;;  %vm3019_vm15 = vcmp.eq.f32.partialorder %v2999_v37, inf  ;;  %v3022_v19 = vand.u32 2147483648, %v2999_v37  ;;  %vm3021_vm4 = vcmp.eq.f32.partialorder %v2999_v37, 0.0 }
 0x988   : > { %v3288_v20 = vpop.eup %3287 }
 0x989   : > { %v3013_v61 = vmul.f32 %v3288_v20, %v2999_v37 }
 0x98b   : > { %v3014_v39 = vmul.f32 %v3288_v20, %v3013_v61 }
 0x98d   : > { %v3015_v47 = vmul.f32 0.5, %v3014_v39 }
 0x98f   : > { %v3016_v35 = vsub.f32 1.5, %v3015_v47 }
 0x991   : > { %v3017_v49 = vmul.f32 %v3288_v20, %v3016_v35 }
 0x993   : > { %v3018_v30 = vmul.f32 %v3017_v49, %v2999_v37 }
 0x995   : > { %v3020_v57 = vsel %vm3019_vm15, %v2999_v37, %v3018_v30 }
 0x996   : > { %v3023_v52 = vsel %vm3021_vm4, %v3022_v19, %v3020_v57 }
 0x997   : > { %v3025_v4 = vadd.f32 1e-08, %v3023_v52 }
 0x999   : > { %3289 = vrcp.f32 %v3025_v4  ;;  %v3052_v0 = vand.u32 2147483648, %v3025_v4  ;;  %v3050_v58 = vand.u32 2147483647, %v3025_v4  ;;  %vm3046_vm7 = vweird.f32 %v3025_v4 }
 0x99b   : > { %v3053_v14 = vor.u32 1.1754944e-38, %v3052_v0  ;;  %vm3051_vm9 = vcmp.eq.f32.partialorder %v3050_v58, 8.507059e+37 }
 0x99f   : > { %v3290_v9 = vpop.eup %3289 }
 0x9a0   : > { %v3042_v50 = vmul.f32 %v3290_v9, %v3025_v4  ;;  %vm3047_vm5 = vweird.f32 %v3290_v9 }
 0x9a1   : > { %vm3048_vm8 = vmor %vm3046_vm7, %vm3047_vm5 }
 0x9a2   : > { %v3043_v27 = vsub.f32 1.0, %v3042_v50 }
 0x9a4   : > { %v3044_v6 = vmul.f32 %v3290_v9, %v3043_v27 }
 0x9a6   : > { %v3045_v12 = vadd.f32 %v3290_v9, %v3044_v6 }
 0x9a8   : > { %v3049_v63 = vsel %vm3048_vm8, %v3290_v9, %v3045_v12 }
 0x9a9   : > { %v3054_v24 = vsel %vm3051_vm9, %v3053_v14, %v3049_v63 }
 0x9aa   : > { %v3055_v11 = vmul.f32 %v3054_v24, %v2996_v45  ;;  %3067 = sbr.rel (%p3220_p7) target bundleno = 2492 (0x9bc), region = 64 }
 0x9ac   : > { %v3057_v26 = vsub.f32 %v5202_v13, %v3055_v11 }
 0x9ae   : > { %3063 = vst [vmem:[#allocation2 + $0x8] sm:$0x77] %v3057_v26 }
 0x9af   : > { %3364 = vtanh.f32 %v3056_v8 }
 0x9b0   : > { %3366 = vtanh.f32 %v3057_v26 }
 0x9b5   : > { %v3365_v36 = vpop.eup %3364 }
 0x9b6   : > { %v3367_v15 = vpop.eup %3366  ;;  %v3070_v5 = vadd.f32 1.0, %v3365_v36 }
 0x9b7   : > { %v3071_v60 = vadd.f32 1.0, %v3367_v15 }
 0x9b8   : > { %v3072_v59 = vmul.f32 0.5, %v3070_v5 }
 0x9b9   : > { %v3073_v32 = vmul.f32 0.5, %v3071_v60 }
 0x9ba   : > { %3074 = vst [vmem:[%s4733_s6] sm:$0x77] %v3072_v59 }
 0x9bb   : > { %3075 = vst [vmem:[%s4733_s6 + $0x8] sm:$0x77] %v3073_v32 }
 0x9bc PF: > { %s18_s21 = sadd.s32 1, %s3427_s21  }
 0x9bd   : > { %p15_p8 = scmp.ge.s32.totalorder %s18_s21, 10  }
 0x9bf   :  { %17 = sbr.rel (!%p15_p8) target bundleno = 2 (0x2), region = 95 }
 0x9c4   :  { %3087 = vsyncpa [#allocation9], 1 }
 0x9c5   :  { %3089 = vsyncpa [#allocation9 + $0x1], 1 }
 0x9c6   :  { %3090 = vsyncpa [#allocation10], 1 }
 0x9c7   :  { %3092 = vsyncpa [#allocation10 + $0x1], 1 }

</bundles_post_ra>
